<compile_context>
chip_gen: v7x
topology: tpu7x:2x2x1
jax: 0.10.0
libtpu: 0.0.40
codegen_flags: <defaults>
</compile_context>

<pallas_src>
import functools

import jax
import jax.numpy as jnp
from jax.experimental import pallas as pl
from jax.experimental.pallas import tpu as pltpu

EPS = 1e-5  # torch.nn.InstanceNorm2d default eps


# ---------------------------------------------------------------------------
# in-kernel helpers (values stay in VMEM / vregs)
# ---------------------------------------------------------------------------
def _reflect_pad1_hwc(a):
    """Reflection-pad by 1 on the two leading (spatial) axes of an HWC value."""
    h, w, _ = a.shape
    a = jnp.concatenate([a[1:2], a, a[h - 2:h - 1]], axis=0)
    a = jnp.concatenate([a[:, 1:2], a, a[:, w - 2:w - 1]], axis=1)
    return a


# ---------------------------------------------------------------------------
# fused kernel: conv1 -> IN -> ReLU -> conv2 -> IN -> + residual
# (one batch image per grid step; refs are squeezed to (C, H*W))
# ---------------------------------------------------------------------------
def _residual_block_kernel(x_ref, w1_ref, g1_ref, bt1_ref,
                           w2_ref, g2_ref, bt2_ref, o_ref,
                           *, height, width, matmul_dtype):
    c = x_ref.shape[0]
    hw = height * width

    x_chw = x_ref[...].astype(jnp.float32)                        # (C, HW)
    # NCHW block -> channels-on-lanes, on-chip (2D transpose; no HBM traffic).
    x_hwc = jnp.transpose(x_chw, (1, 0)).reshape(height, width, c)

    def conv3x3(a_hwc, w_ref):
        # Per-tap accumulation: 9 matmuls with K=C (no im2col patch slab).
        ap = _reflect_pad1_hwc(a_hwc).astype(matmul_dtype)        # (H+2, W+2, C)
        wt = w_ref[...].astype(matmul_dtype)                      # (9, Cin, Cout)
        acc = jnp.zeros((hw, c), jnp.float32)
        for tap in range(9):
            dh, dw = tap // 3, tap % 3
            xs = ap[dh:dh + height, dw:dw + width, :].reshape(hw, c)
            acc = acc + jnp.dot(xs, wt[tap],
                                preferred_element_type=jnp.float32)
        return acc                                                # (HW, C) f32

    def instance_norm(a, g_ref, b_ref):
        # a: (HW, C) f32; per-image, per-channel statistics over spatial axis.
        mean = jnp.mean(a, axis=0, keepdims=True)                 # (1, C)
        cen = a - mean
        var = jnp.mean(cen * cen, axis=0, keepdims=True)          # two-pass var
        scale = jax.lax.rsqrt(var + EPS) * g_ref[...].astype(jnp.float32)
        return cen * scale + b_ref[...].astype(jnp.float32)

    # conv1 -> IN -> ReLU   (conv bias omitted: cancelled by IN mean subtract)
    h1 = jnp.maximum(
        instance_norm(conv3x3(x_hwc, w1_ref), g1_ref, bt1_ref), 0.0)

    # conv2 -> IN
    y = instance_norm(conv3x3(h1.reshape(height, width, c), w2_ref),
                      g2_ref, bt2_ref)                            # (HW, C)

    # back to the NCHW block layout + residual; store is lane-dense over HW.
    o_ref[...] = (jnp.transpose(y, (1, 0)) + x_chw).astype(o_ref.dtype)


# ---------------------------------------------------------------------------
# public wrapper (NCHW in / NCHW out, no HBM transposes)
# ---------------------------------------------------------------------------
@functools.partial(jax.jit, static_argnames=("matmul_dtype",))
def residual_block(x_nchw, params, matmul_dtype=jnp.bfloat16):
    """Forward pass of ResidualBlock.  x_nchw: (N, C, H, W)."""
    N, C, H, W = x_nchw.shape
    HW = H * W

    x2 = x_nchw.reshape(N, C, HW)               # contiguous reshape: free
    w1 = params["w1"].reshape(9, C, C)          # HWIO (3,3,Ci,Co) -> (tap,Ci,Co)
    w2 = params["w2"].reshape(9, C, C)

    kernel = functools.partial(_residual_block_kernel,
                               height=H, width=W, matmul_dtype=matmul_dtype)

    img_spec = pl.BlockSpec((None, C, HW), lambda n: (n, 0, 0))   # batch squeezed
    wgt_spec = pl.BlockSpec((9, C, C), lambda n: (0, 0, 0))
    vec_spec = pl.BlockSpec((1, C), lambda n: (0, 0))

    out = pl.pallas_call(
        kernel,
        out_shape=jax.ShapeDtypeStruct((N, C, HW), x_nchw.dtype),
        grid=(N,),
        in_specs=[img_spec,
                  wgt_spec, vec_spec, vec_spec,
                  wgt_spec, vec_spec, vec_spec],
        out_specs=img_spec,
        compiler_params=pltpu.CompilerParams(
            dimension_semantics=("parallel",),          # 2 TCs on v7x, free on v5e/v6e
            vmem_limit_bytes=48 * 1024 * 1024),
    )(x2, w1, params["g1"], params["bt1"], w2, params["g2"], params["bt2"])

    return out.reshape(N, C, H, W)


# ---------------------------------------------------------------------------
# plain-JAX reference (keeps conv biases -> also checks the IN cancellation)
# ---------------------------------------------------------------------------
def _reference(x_nchw, params):
    dn = ("NCHW", "HWIO", "NCHW")

    def conv(x, w_hwio, b):
        xp = jnp.pad(x, ((0, 0), (0, 0), (1, 1), (1, 1)), mode="reflect")
        y = jax.lax.conv_general_dilated(xp, w_hwio, (1, 1), "VALID",
                                         dimension_numbers=dn)
        return y + b.reshape(1, -1, 1, 1)

    def inorm(x, g, bt):
        m = jnp.mean(x, axis=(2, 3), keepdims=True)
        v = jnp.mean((x - m) ** 2, axis=(2, 3), keepdims=True)
        return (x - m) * jax.lax.rsqrt(v + EPS) * g.reshape(1, -1, 1, 1) \
            + bt.reshape(1, -1, 1, 1)

    h = jnp.maximum(inorm(conv(x_nchw, params["w1"], params["b1"]),
                          params["g1"], params["bt1"]), 0.0)
    return inorm(conv(h, params["w2"], params["b2"]),
                 params["g2"], params["bt2"]) + x_nchw


# ---------------------------------------------------------------------------
# main
# ---------------------------------------------------------------------------
if __name__ == "__main__":
    N, C, H, W = 2, 4, 16, 16

    key = jax.random.PRNGKey(0)
    kx, kw1, kw2, kg1, kg2 = jax.random.split(key, 5)

    x = jax.random.normal(kx, (N, C, H, W), dtype=jnp.float32)

    # Deterministic synthetic parameters (shapes implied by ResidualBlock(C)).
    # Conv weights in HWIO layout (3, 3, Cin, Cout); InstanceNorm affine params
    # perturbed from the PyTorch defaults (1, 0) so the path is nontrivial.
    params = {
        "w1": jax.random.normal(kw1, (3, 3, C, C), dtype=jnp.float32) * 0.1,
        "b1": jnp.full((1, C), 0.05, dtype=jnp.float32),
        "g1": jnp.ones((1, C), dtype=jnp.float32)
              + 0.1 * jax.random.normal(kg1, (1, C), dtype=jnp.float32),
        "bt1": jnp.full((1, C), 0.02, dtype=jnp.float32),
        "w2": jax.random.normal(kw2, (3, 3, C, C), dtype=jnp.float32) * 0.1,
        "b2": jnp.full((1, C), -0.03, dtype=jnp.float32),
        "g2": jnp.ones((1, C), dtype=jnp.float32)
              + 0.1 * jax.random.normal(kg2, (1, C), dtype=jnp.float32),
        "bt2": jnp.full((1, C), -0.01, dtype=jnp.float32),
    }

    ref = jax.block_until_ready(_reference(x, params))

    # Strict check: f32 MXU operands must closely match the f32 reference.
    out_f32 = jax.block_until_ready(
        residual_block(x, params, matmul_dtype=jnp.float32))
    assert out_f32.shape == (N, C, H, W)
    assert jnp.allclose(out_f32, ref, atol=1e-3, rtol=1e-3), "f32 kernel mismatch"

    # Production path: bf16 MXU operands (MXU-native on v5e/v6e/v7x).
    out_bf16 = jax.block_until_ready(residual_block(x, params))   # default bf16
    rel_l2 = jnp.linalg.norm(out_bf16 - ref) / jnp.linalg.norm(ref)
    assert rel_l2 < 0.05, f"bf16 kernel rel-L2 error too large: {rel_l2}"

    print("KERNEL_OK")
</pallas_src>

<mosaic_0001>
module attributes {stable_mosaic.version = 11 : i64} {
  func.func @_residual_block_kernel(%arg0: i32, %arg1: memref<1x4x256xf32, #tpu.memory_space<vmem>>, %arg2: memref<9x4x4xf32, #tpu.memory_space<vmem>>, %arg3: memref<1x4xf32, #tpu.memory_space<vmem>>, %arg4: memref<1x4xf32, #tpu.memory_space<vmem>>, %arg5: memref<9x4x4xf32, #tpu.memory_space<vmem>>, %arg6: memref<1x4xf32, #tpu.memory_space<vmem>>, %arg7: memref<1x4xf32, #tpu.memory_space<vmem>>, %arg8: memref<1x4x256xf32, #tpu.memory_space<vmem>>) attributes {dimension_semantics = [#tpu.dimension_semantics<parallel>], iteration_bounds = array<i64: 2>, scalar_prefetch = 0 : i64, scratch_operands = 0 : i64, tpu.core_type = #tpu.core_type<tc>, window_params = [{transform_indices = @transform_0, window_bounds = array<i64: 1, 4, 256>}, {pipeline_mode = #tpu.pipeline_mode<synchronous>, transform_indices = @transform_1, window_bounds = array<i64: 9, 4, 4>}, {pipeline_mode = #tpu.pipeline_mode<synchronous>, transform_indices = @transform_2, window_bounds = array<i64: 1, 4>}, {pipeline_mode = #tpu.pipeline_mode<synchronous>, transform_indices = @transform_3, window_bounds = array<i64: 1, 4>}, {pipeline_mode = #tpu.pipeline_mode<synchronous>, transform_indices = @transform_4, window_bounds = array<i64: 9, 4, 4>}, {pipeline_mode = #tpu.pipeline_mode<synchronous>, transform_indices = @transform_5, window_bounds = array<i64: 1, 4>}, {pipeline_mode = #tpu.pipeline_mode<synchronous>, transform_indices = @transform_6, window_bounds = array<i64: 1, 4>}, {transform_indices = @transform_7, window_bounds = array<i64: 1, 4, 256>}]} {
    %c0 = arith.constant 0 : index
    %c0_0 = arith.constant 0 : index
    %c0_1 = arith.constant 0 : index
    %0 = vector.load %arg1[%c0, %c0_0, %c0_1] : memref<1x4x256xf32, #tpu.memory_space<vmem>>, vector<1x4x256xf32>
    %1 = vector.shape_cast %0 : vector<1x4x256xf32> to vector<4x256xf32>
    %2 = tpu.transpose %1, [1, 0] : vector<4x256xf32> -> vector<256x4xf32>
    %3 = vector.shape_cast %2 : vector<256x4xf32> to vector<16x16x4xf32>
    %4 = vector.extract_strided_slice %3 {offsets = [1, 0, 0], sizes = [1, 16, 4], strides = [1, 1, 1]} : vector<16x16x4xf32> to vector<1x16x4xf32>
    %5 = vector.extract_strided_slice %3 {offsets = [14, 0, 0], sizes = [1, 16, 4], strides = [1, 1, 1]} : vector<16x16x4xf32> to vector<1x16x4xf32>
    %6 = tpu.concatenate %4, %3, %5 in 0 : vector<1x16x4xf32>, vector<16x16x4xf32>, vector<1x16x4xf32> -> vector<18x16x4xf32>
    %7 = vector.extract_strided_slice %6 {offsets = [0, 1, 0], sizes = [18, 1, 4], strides = [1, 1, 1]} : vector<18x16x4xf32> to vector<18x1x4xf32>
    %8 = vector.extract_strided_slice %6 {offsets = [0, 14, 0], sizes = [18, 1, 4], strides = [1, 1, 1]} : vector<18x16x4xf32> to vector<18x1x4xf32>
    %9 = tpu.concatenate %7, %6, %8 in 1 : vector<18x1x4xf32>, vector<18x16x4xf32>, vector<18x1x4xf32> -> vector<18x18x4xf32>
    %c0_2 = arith.constant 0 : index
    %c0_3 = arith.constant 0 : index
    %c0_4 = arith.constant 0 : index
    %10 = vector.load %arg2[%c0_2, %c0_3, %c0_4] : memref<9x4x4xf32, #tpu.memory_space<vmem>>, vector<9x4x4xf32>
    %cst = arith.constant 0.000000e+00 : f32
    %11 = vector.broadcast %cst : f32 to vector<256x4xf32>
    %12 = vector.extract_strided_slice %9 {offsets = [0, 0, 0], sizes = [16, 16, 4], strides = [1, 1, 1]} : vector<18x18x4xf32> to vector<16x16x4xf32>
    %13 = vector.shape_cast %12 : vector<16x16x4xf32> to vector<256x4xf32>
    %14 = vector.extract_strided_slice %10 {offsets = [0, 0, 0], sizes = [1, 4, 4], strides = [1, 1, 1]} : vector<9x4x4xf32> to vector<1x4x4xf32>
    %15 = vector.shape_cast %14 : vector<1x4x4xf32> to vector<4x4xf32>
    %cst_5 = arith.constant dense<0.000000e+00> : vector<256x4xf32>
    %16 = tpu.matmul %13, %15, %cst_5 {dimension_numbers = #tpu.dot_dimension_numbers<[1], [0], [0], [1], [0, 0, 1, 1], [], []>} : vector<256x4xf32>, vector<4x4xf32>, vector<256x4xf32> -> vector<256x4xf32>
    %17 = arith.addf %11, %16 : vector<256x4xf32>
    %18 = vector.extract_strided_slice %9 {offsets = [0, 1, 0], sizes = [16, 16, 4], strides = [1, 1, 1]} : vector<18x18x4xf32> to vector<16x16x4xf32>
    %19 = vector.shape_cast %18 : vector<16x16x4xf32> to vector<256x4xf32>
    %20 = vector.extract_strided_slice %10 {offsets = [1, 0, 0], sizes = [1, 4, 4], strides = [1, 1, 1]} : vector<9x4x4xf32> to vector<1x4x4xf32>
    %21 = vector.shape_cast %20 : vector<1x4x4xf32> to vector<4x4xf32>
    %cst_6 = arith.constant dense<0.000000e+00> : vector<256x4xf32>
    %22 = tpu.matmul %19, %21, %cst_6 {dimension_numbers = #tpu.dot_dimension_numbers<[1], [0], [0], [1], [0, 0, 1, 1], [], []>} : vector<256x4xf32>, vector<4x4xf32>, vector<256x4xf32> -> vector<256x4xf32>
    %23 = arith.addf %17, %22 : vector<256x4xf32>
    %24 = vector.extract_strided_slice %9 {offsets = [0, 2, 0], sizes = [16, 16, 4], strides = [1, 1, 1]} : vector<18x18x4xf32> to vector<16x16x4xf32>
    %25 = vector.shape_cast %24 : vector<16x16x4xf32> to vector<256x4xf32>
    %26 = vector.extract_strided_slice %10 {offsets = [2, 0, 0], sizes = [1, 4, 4], strides = [1, 1, 1]} : vector<9x4x4xf32> to vector<1x4x4xf32>
    %27 = vector.shape_cast %26 : vector<1x4x4xf32> to vector<4x4xf32>
    %cst_7 = arith.constant dense<0.000000e+00> : vector<256x4xf32>
    %28 = tpu.matmul %25, %27, %cst_7 {dimension_numbers = #tpu.dot_dimension_numbers<[1], [0], [0], [1], [0, 0, 1, 1], [], []>} : vector<256x4xf32>, vector<4x4xf32>, vector<256x4xf32> -> vector<256x4xf32>
    %29 = arith.addf %23, %28 : vector<256x4xf32>
    %30 = vector.extract_strided_slice %9 {offsets = [1, 0, 0], sizes = [16, 16, 4], strides = [1, 1, 1]} : vector<18x18x4xf32> to vector<16x16x4xf32>
    %31 = vector.shape_cast %30 : vector<16x16x4xf32> to vector<256x4xf32>
    %32 = vector.extract_strided_slice %10 {offsets = [3, 0, 0], sizes = [1, 4, 4], strides = [1, 1, 1]} : vector<9x4x4xf32> to vector<1x4x4xf32>
    %33 = vector.shape_cast %32 : vector<1x4x4xf32> to vector<4x4xf32>
    %cst_8 = arith.constant dense<0.000000e+00> : vector<256x4xf32>
    %34 = tpu.matmul %31, %33, %cst_8 {dimension_numbers = #tpu.dot_dimension_numbers<[1], [0], [0], [1], [0, 0, 1, 1], [], []>} : vector<256x4xf32>, vector<4x4xf32>, vector<256x4xf32> -> vector<256x4xf32>
    %35 = arith.addf %29, %34 : vector<256x4xf32>
    %36 = vector.extract_strided_slice %9 {offsets = [1, 1, 0], sizes = [16, 16, 4], strides = [1, 1, 1]} : vector<18x18x4xf32> to vector<16x16x4xf32>
    %37 = vector.shape_cast %36 : vector<16x16x4xf32> to vector<256x4xf32>
    %38 = vector.extract_strided_slice %10 {offsets = [4, 0, 0], sizes = [1, 4, 4], strides = [1, 1, 1]} : vector<9x4x4xf32> to vector<1x4x4xf32>
    %39 = vector.shape_cast %38 : vector<1x4x4xf32> to vector<4x4xf32>
    %cst_9 = arith.constant dense<0.000000e+00> : vector<256x4xf32>
    %40 = tpu.matmul %37, %39, %cst_9 {dimension_numbers = #tpu.dot_dimension_numbers<[1], [0], [0], [1], [0, 0, 1, 1], [], []>} : vector<256x4xf32>, vector<4x4xf32>, vector<256x4xf32> -> vector<256x4xf32>
    %41 = arith.addf %35, %40 : vector<256x4xf32>
    %42 = vector.extract_strided_slice %9 {offsets = [1, 2, 0], sizes = [16, 16, 4], strides = [1, 1, 1]} : vector<18x18x4xf32> to vector<16x16x4xf32>
    %43 = vector.shape_cast %42 : vector<16x16x4xf32> to vector<256x4xf32>
    %44 = vector.extract_strided_slice %10 {offsets = [5, 0, 0], sizes = [1, 4, 4], strides = [1, 1, 1]} : vector<9x4x4xf32> to vector<1x4x4xf32>
    %45 = vector.shape_cast %44 : vector<1x4x4xf32> to vector<4x4xf32>
    %cst_10 = arith.constant dense<0.000000e+00> : vector<256x4xf32>
    %46 = tpu.matmul %43, %45, %cst_10 {dimension_numbers = #tpu.dot_dimension_numbers<[1], [0], [0], [1], [0, 0, 1, 1], [], []>} : vector<256x4xf32>, vector<4x4xf32>, vector<256x4xf32> -> vector<256x4xf32>
    %47 = arith.addf %41, %46 : vector<256x4xf32>
    %48 = vector.extract_strided_slice %9 {offsets = [2, 0, 0], sizes = [16, 16, 4], strides = [1, 1, 1]} : vector<18x18x4xf32> to vector<16x16x4xf32>
    %49 = vector.shape_cast %48 : vector<16x16x4xf32> to vector<256x4xf32>
    %50 = vector.extract_strided_slice %10 {offsets = [6, 0, 0], sizes = [1, 4, 4], strides = [1, 1, 1]} : vector<9x4x4xf32> to vector<1x4x4xf32>
    %51 = vector.shape_cast %50 : vector<1x4x4xf32> to vector<4x4xf32>
    %cst_11 = arith.constant dense<0.000000e+00> : vector<256x4xf32>
    %52 = tpu.matmul %49, %51, %cst_11 {dimension_numbers = #tpu.dot_dimension_numbers<[1], [0], [0], [1], [0, 0, 1, 1], [], []>} : vector<256x4xf32>, vector<4x4xf32>, vector<256x4xf32> -> vector<256x4xf32>
    %53 = arith.addf %47, %52 : vector<256x4xf32>
    %54 = vector.extract_strided_slice %9 {offsets = [2, 1, 0], sizes = [16, 16, 4], strides = [1, 1, 1]} : vector<18x18x4xf32> to vector<16x16x4xf32>
    %55 = vector.shape_cast %54 : vector<16x16x4xf32> to vector<256x4xf32>
    %56 = vector.extract_strided_slice %10 {offsets = [7, 0, 0], sizes = [1, 4, 4], strides = [1, 1, 1]} : vector<9x4x4xf32> to vector<1x4x4xf32>
    %57 = vector.shape_cast %56 : vector<1x4x4xf32> to vector<4x4xf32>
    %cst_12 = arith.constant dense<0.000000e+00> : vector<256x4xf32>
    %58 = tpu.matmul %55, %57, %cst_12 {dimension_numbers = #tpu.dot_dimension_numbers<[1], [0], [0], [1], [0, 0, 1, 1], [], []>} : vector<256x4xf32>, vector<4x4xf32>, vector<256x4xf32> -> vector<256x4xf32>
    %59 = arith.addf %53, %58 : vector<256x4xf32>
    %60 = vector.extract_strided_slice %9 {offsets = [2, 2, 0], sizes = [16, 16, 4], strides = [1, 1, 1]} : vector<18x18x4xf32> to vector<16x16x4xf32>
    %61 = vector.shape_cast %60 : vector<16x16x4xf32> to vector<256x4xf32>
    %62 = vector.extract_strided_slice %10 {offsets = [8, 0, 0], sizes = [1, 4, 4], strides = [1, 1, 1]} : vector<9x4x4xf32> to vector<1x4x4xf32>
    %63 = vector.shape_cast %62 : vector<1x4x4xf32> to vector<4x4xf32>
    %cst_13 = arith.constant dense<0.000000e+00> : vector<256x4xf32>
    %64 = tpu.matmul %61, %63, %cst_13 {dimension_numbers = #tpu.dot_dimension_numbers<[1], [0], [0], [1], [0, 0, 1, 1], [], []>} : vector<256x4xf32>, vector<4x4xf32>, vector<256x4xf32> -> vector<256x4xf32>
    %65 = arith.addf %59, %64 : vector<256x4xf32>
    %cst_14 = arith.constant dense<0.000000e+00> : vector<4xf32>
    %66 = vector.multi_reduction <add>, %65, %cst_14 [0] : vector<256x4xf32> to vector<4xf32>
    %67 = vector.shape_cast %66 : vector<4xf32> to vector<1x4xf32>
    %cst_15 = arith.constant 2.560000e+02 : f32
    %68 = vector.broadcast %cst_15 : f32 to vector<1x4xf32>
    %69 = arith.divf %67, %68 : vector<1x4xf32>
    %70 = vector.broadcast %69 : vector<1x4xf32> to vector<256x4xf32>
    %71 = arith.subf %65, %70 : vector<256x4xf32>
    %72 = arith.mulf %71, %71 : vector<256x4xf32>
    %cst_16 = arith.constant dense<0.000000e+00> : vector<4xf32>
    %73 = vector.multi_reduction <add>, %72, %cst_16 [0] : vector<256x4xf32> to vector<4xf32>
    %74 = vector.shape_cast %73 : vector<4xf32> to vector<1x4xf32>
    %cst_17 = arith.constant 2.560000e+02 : f32
    %75 = vector.broadcast %cst_17 : f32 to vector<1x4xf32>
    %76 = arith.divf %74, %75 : vector<1x4xf32>
    %cst_18 = arith.constant 9.99999974E-6 : f32
    %77 = vector.broadcast %cst_18 : f32 to vector<1x4xf32>
    %78 = arith.addf %76, %77 : vector<1x4xf32>
    %79 = math.rsqrt %78 : vector<1x4xf32>
    %c0_19 = arith.constant 0 : index
    %c0_20 = arith.constant 0 : index
    %80 = vector.load %arg3[%c0_19, %c0_20] : memref<1x4xf32, #tpu.memory_space<vmem>>, vector<1x4xf32>
    %81 = arith.mulf %79, %80 : vector<1x4xf32>
    %82 = vector.broadcast %81 : vector<1x4xf32> to vector<256x4xf32>
    %83 = arith.mulf %71, %82 : vector<256x4xf32>
    %c0_21 = arith.constant 0 : index
    %c0_22 = arith.constant 0 : index
    %84 = vector.load %arg4[%c0_21, %c0_22] : memref<1x4xf32, #tpu.memory_space<vmem>>, vector<1x4xf32>
    %85 = vector.broadcast %84 : vector<1x4xf32> to vector<256x4xf32>
    %86 = arith.addf %83, %85 : vector<256x4xf32>
    %cst_23 = arith.constant 0.000000e+00 : f32
    %87 = vector.broadcast %cst_23 : f32 to vector<256x4xf32>
    %88 = arith.maximumf %86, %87 : vector<256x4xf32>
    %89 = vector.shape_cast %88 : vector<256x4xf32> to vector<16x16x4xf32>
    %90 = vector.extract_strided_slice %89 {offsets = [1, 0, 0], sizes = [1, 16, 4], strides = [1, 1, 1]} : vector<16x16x4xf32> to vector<1x16x4xf32>
    %91 = vector.extract_strided_slice %89 {offsets = [14, 0, 0], sizes = [1, 16, 4], strides = [1, 1, 1]} : vector<16x16x4xf32> to vector<1x16x4xf32>
    %92 = tpu.concatenate %90, %89, %91 in 0 : vector<1x16x4xf32>, vector<16x16x4xf32>, vector<1x16x4xf32> -> vector<18x16x4xf32>
    %93 = vector.extract_strided_slice %92 {offsets = [0, 1, 0], sizes = [18, 1, 4], strides = [1, 1, 1]} : vector<18x16x4xf32> to vector<18x1x4xf32>
    %94 = vector.extract_strided_slice %92 {offsets = [0, 14, 0], sizes = [18, 1, 4], strides = [1, 1, 1]} : vector<18x16x4xf32> to vector<18x1x4xf32>
    %95 = tpu.concatenate %93, %92, %94 in 1 : vector<18x1x4xf32>, vector<18x16x4xf32>, vector<18x1x4xf32> -> vector<18x18x4xf32>
    %c0_24 = arith.constant 0 : index
    %c0_25 = arith.constant 0 : index
    %c0_26 = arith.constant 0 : index
    %96 = vector.load %arg5[%c0_24, %c0_25, %c0_26] : memref<9x4x4xf32, #tpu.memory_space<vmem>>, vector<9x4x4xf32>
    %cst_27 = arith.constant 0.000000e+00 : f32
    %97 = vector.broadcast %cst_27 : f32 to vector<256x4xf32>
    %98 = vector.extract_strided_slice %95 {offsets = [0, 0, 0], sizes = [16, 16, 4], strides = [1, 1, 1]} : vector<18x18x4xf32> to vector<16x16x4xf32>
    %99 = vector.shape_cast %98 : vector<16x16x4xf32> to vector<256x4xf32>
    %100 = vector.extract_strided_slice %96 {offsets = [0, 0, 0], sizes = [1, 4, 4], strides = [1, 1, 1]} : vector<9x4x4xf32> to vector<1x4x4xf32>
    %101 = vector.shape_cast %100 : vector<1x4x4xf32> to vector<4x4xf32>
    %cst_28 = arith.constant dense<0.000000e+00> : vector<256x4xf32>
    %102 = tpu.matmul %99, %101, %cst_28 {dimension_numbers = #tpu.dot_dimension_numbers<[1], [0], [0], [1], [0, 0, 1, 1], [], []>} : vector<256x4xf32>, vector<4x4xf32>, vector<256x4xf32> -> vector<256x4xf32>
    %103 = arith.addf %97, %102 : vector<256x4xf32>
    %104 = vector.extract_strided_slice %95 {offsets = [0, 1, 0], sizes = [16, 16, 4], strides = [1, 1, 1]} : vector<18x18x4xf32> to vector<16x16x4xf32>
    %105 = vector.shape_cast %104 : vector<16x16x4xf32> to vector<256x4xf32>
    %106 = vector.extract_strided_slice %96 {offsets = [1, 0, 0], sizes = [1, 4, 4], strides = [1, 1, 1]} : vector<9x4x4xf32> to vector<1x4x4xf32>
    %107 = vector.shape_cast %106 : vector<1x4x4xf32> to vector<4x4xf32>
    %cst_29 = arith.constant dense<0.000000e+00> : vector<256x4xf32>
    %108 = tpu.matmul %105, %107, %cst_29 {dimension_numbers = #tpu.dot_dimension_numbers<[1], [0], [0], [1], [0, 0, 1, 1], [], []>} : vector<256x4xf32>, vector<4x4xf32>, vector<256x4xf32> -> vector<256x4xf32>
    %109 = arith.addf %103, %108 : vector<256x4xf32>
    %110 = vector.extract_strided_slice %95 {offsets = [0, 2, 0], sizes = [16, 16, 4], strides = [1, 1, 1]} : vector<18x18x4xf32> to vector<16x16x4xf32>
    %111 = vector.shape_cast %110 : vector<16x16x4xf32> to vector<256x4xf32>
    %112 = vector.extract_strided_slice %96 {offsets = [2, 0, 0], sizes = [1, 4, 4], strides = [1, 1, 1]} : vector<9x4x4xf32> to vector<1x4x4xf32>
    %113 = vector.shape_cast %112 : vector<1x4x4xf32> to vector<4x4xf32>
    %cst_30 = arith.constant dense<0.000000e+00> : vector<256x4xf32>
    %114 = tpu.matmul %111, %113, %cst_30 {dimension_numbers = #tpu.dot_dimension_numbers<[1], [0], [0], [1], [0, 0, 1, 1], [], []>} : vector<256x4xf32>, vector<4x4xf32>, vector<256x4xf32> -> vector<256x4xf32>
    %115 = arith.addf %109, %114 : vector<256x4xf32>
    %116 = vector.extract_strided_slice %95 {offsets = [1, 0, 0], sizes = [16, 16, 4], strides = [1, 1, 1]} : vector<18x18x4xf32> to vector<16x16x4xf32>
    %117 = vector.shape_cast %116 : vector<16x16x4xf32> to vector<256x4xf32>
    %118 = vector.extract_strided_slice %96 {offsets = [3, 0, 0], sizes = [1, 4, 4], strides = [1, 1, 1]} : vector<9x4x4xf32> to vector<1x4x4xf32>
    %119 = vector.shape_cast %118 : vector<1x4x4xf32> to vector<4x4xf32>
    %cst_31 = arith.constant dense<0.000000e+00> : vector<256x4xf32>
    %120 = tpu.matmul %117, %119, %cst_31 {dimension_numbers = #tpu.dot_dimension_numbers<[1], [0], [0], [1], [0, 0, 1, 1], [], []>} : vector<256x4xf32>, vector<4x4xf32>, vector<256x4xf32> -> vector<256x4xf32>
    %121 = arith.addf %115, %120 : vector<256x4xf32>
    %122 = vector.extract_strided_slice %95 {offsets = [1, 1, 0], sizes = [16, 16, 4], strides = [1, 1, 1]} : vector<18x18x4xf32> to vector<16x16x4xf32>
    %123 = vector.shape_cast %122 : vector<16x16x4xf32> to vector<256x4xf32>
    %124 = vector.extract_strided_slice %96 {offsets = [4, 0, 0], sizes = [1, 4, 4], strides = [1, 1, 1]} : vector<9x4x4xf32> to vector<1x4x4xf32>
    %125 = vector.shape_cast %124 : vector<1x4x4xf32> to vector<4x4xf32>
    %cst_32 = arith.constant dense<0.000000e+00> : vector<256x4xf32>
    %126 = tpu.matmul %123, %125, %cst_32 {dimension_numbers = #tpu.dot_dimension_numbers<[1], [0], [0], [1], [0, 0, 1, 1], [], []>} : vector<256x4xf32>, vector<4x4xf32>, vector<256x4xf32> -> vector<256x4xf32>
    %127 = arith.addf %121, %126 : vector<256x4xf32>
    %128 = vector.extract_strided_slice %95 {offsets = [1, 2, 0], sizes = [16, 16, 4], strides = [1, 1, 1]} : vector<18x18x4xf32> to vector<16x16x4xf32>
    %129 = vector.shape_cast %128 : vector<16x16x4xf32> to vector<256x4xf32>
    %130 = vector.extract_strided_slice %96 {offsets = [5, 0, 0], sizes = [1, 4, 4], strides = [1, 1, 1]} : vector<9x4x4xf32> to vector<1x4x4xf32>
    %131 = vector.shape_cast %130 : vector<1x4x4xf32> to vector<4x4xf32>
    %cst_33 = arith.constant dense<0.000000e+00> : vector<256x4xf32>
    %132 = tpu.matmul %129, %131, %cst_33 {dimension_numbers = #tpu.dot_dimension_numbers<[1], [0], [0], [1], [0, 0, 1, 1], [], []>} : vector<256x4xf32>, vector<4x4xf32>, vector<256x4xf32> -> vector<256x4xf32>
    %133 = arith.addf %127, %132 : vector<256x4xf32>
    %134 = vector.extract_strided_slice %95 {offsets = [2, 0, 0], sizes = [16, 16, 4], strides = [1, 1, 1]} : vector<18x18x4xf32> to vector<16x16x4xf32>
    %135 = vector.shape_cast %134 : vector<16x16x4xf32> to vector<256x4xf32>
    %136 = vector.extract_strided_slice %96 {offsets = [6, 0, 0], sizes = [1, 4, 4], strides = [1, 1, 1]} : vector<9x4x4xf32> to vector<1x4x4xf32>
    %137 = vector.shape_cast %136 : vector<1x4x4xf32> to vector<4x4xf32>
    %cst_34 = arith.constant dense<0.000000e+00> : vector<256x4xf32>
    %138 = tpu.matmul %135, %137, %cst_34 {dimension_numbers = #tpu.dot_dimension_numbers<[1], [0], [0], [1], [0, 0, 1, 1], [], []>} : vector<256x4xf32>, vector<4x4xf32>, vector<256x4xf32> -> vector<256x4xf32>
    %139 = arith.addf %133, %138 : vector<256x4xf32>
    %140 = vector.extract_strided_slice %95 {offsets = [2, 1, 0], sizes = [16, 16, 4], strides = [1, 1, 1]} : vector<18x18x4xf32> to vector<16x16x4xf32>
    %141 = vector.shape_cast %140 : vector<16x16x4xf32> to vector<256x4xf32>
    %142 = vector.extract_strided_slice %96 {offsets = [7, 0, 0], sizes = [1, 4, 4], strides = [1, 1, 1]} : vector<9x4x4xf32> to vector<1x4x4xf32>
    %143 = vector.shape_cast %142 : vector<1x4x4xf32> to vector<4x4xf32>
    %cst_35 = arith.constant dense<0.000000e+00> : vector<256x4xf32>
    %144 = tpu.matmul %141, %143, %cst_35 {dimension_numbers = #tpu.dot_dimension_numbers<[1], [0], [0], [1], [0, 0, 1, 1], [], []>} : vector<256x4xf32>, vector<4x4xf32>, vector<256x4xf32> -> vector<256x4xf32>
    %145 = arith.addf %139, %144 : vector<256x4xf32>
    %146 = vector.extract_strided_slice %95 {offsets = [2, 2, 0], sizes = [16, 16, 4], strides = [1, 1, 1]} : vector<18x18x4xf32> to vector<16x16x4xf32>
    %147 = vector.shape_cast %146 : vector<16x16x4xf32> to vector<256x4xf32>
    %148 = vector.extract_strided_slice %96 {offsets = [8, 0, 0], sizes = [1, 4, 4], strides = [1, 1, 1]} : vector<9x4x4xf32> to vector<1x4x4xf32>
    %149 = vector.shape_cast %148 : vector<1x4x4xf32> to vector<4x4xf32>
    %cst_36 = arith.constant dense<0.000000e+00> : vector<256x4xf32>
    %150 = tpu.matmul %147, %149, %cst_36 {dimension_numbers = #tpu.dot_dimension_numbers<[1], [0], [0], [1], [0, 0, 1, 1], [], []>} : vector<256x4xf32>, vector<4x4xf32>, vector<256x4xf32> -> vector<256x4xf32>
    %151 = arith.addf %145, %150 : vector<256x4xf32>
    %cst_37 = arith.constant dense<0.000000e+00> : vector<4xf32>
    %152 = vector.multi_reduction <add>, %151, %cst_37 [0] : vector<256x4xf32> to vector<4xf32>
    %153 = vector.shape_cast %152 : vector<4xf32> to vector<1x4xf32>
    %cst_38 = arith.constant 2.560000e+02 : f32
    %154 = vector.broadcast %cst_38 : f32 to vector<1x4xf32>
    %155 = arith.divf %153, %154 : vector<1x4xf32>
    %156 = vector.broadcast %155 : vector<1x4xf32> to vector<256x4xf32>
    %157 = arith.subf %151, %156 : vector<256x4xf32>
    %158 = arith.mulf %157, %157 : vector<256x4xf32>
    %cst_39 = arith.constant dense<0.000000e+00> : vector<4xf32>
    %159 = vector.multi_reduction <add>, %158, %cst_39 [0] : vector<256x4xf32> to vector<4xf32>
    %160 = vector.shape_cast %159 : vector<4xf32> to vector<1x4xf32>
    %cst_40 = arith.constant 2.560000e+02 : f32
    %161 = vector.broadcast %cst_40 : f32 to vector<1x4xf32>
    %162 = arith.divf %160, %161 : vector<1x4xf32>
    %cst_41 = arith.constant 9.99999974E-6 : f32
    %163 = vector.broadcast %cst_41 : f32 to vector<1x4xf32>
    %164 = arith.addf %162, %163 : vector<1x4xf32>
    %165 = math.rsqrt %164 : vector<1x4xf32>
    %c0_42 = arith.constant 0 : index
    %c0_43 = arith.constant 0 : index
    %166 = vector.load %arg6[%c0_42, %c0_43] : memref<1x4xf32, #tpu.memory_space<vmem>>, vector<1x4xf32>
    %167 = arith.mulf %165, %166 : vector<1x4xf32>
    %168 = vector.broadcast %167 : vector<1x4xf32> to vector<256x4xf32>
    %169 = arith.mulf %157, %168 : vector<256x4xf32>
    %c0_44 = arith.constant 0 : index
    %c0_45 = arith.constant 0 : index
    %170 = vector.load %arg7[%c0_44, %c0_45] : memref<1x4xf32, #tpu.memory_space<vmem>>, vector<1x4xf32>
    %171 = vector.broadcast %170 : vector<1x4xf32> to vector<256x4xf32>
    %172 = arith.addf %169, %171 : vector<256x4xf32>
    %173 = tpu.transpose %172, [1, 0] : vector<256x4xf32> -> vector<4x256xf32>
    %174 = arith.addf %173, %1 : vector<4x256xf32>
    %c0_46 = arith.constant 0 : index
    %c0_47 = arith.constant 0 : index
    %c0_48 = arith.constant 0 : index
    %175 = vector.load %arg8[%c0_46, %c0_47, %c0_48] : memref<1x4x256xf32, #tpu.memory_space<vmem>>, vector<1x4x256xf32>
    %176 = vector.shape_cast %175 : vector<1x4x256xf32> to vector<4x256xf32>
    %177 = vector.shape_cast %174 : vector<4x256xf32> to vector<1x4x256xf32>
    tpu.vector_store %arg8[%c0_46, %c0_47, %c0_48], %177 {strides = array<i32>} : memref<1x4x256xf32, #tpu.memory_space<vmem>>, vector<1x4x256xf32>,
    return
  }
  func.func @transform_0(%arg0: i32) -> (i32, i32, i32) {
    %c0_i32 = arith.constant 0 : i32
    %c0_i32_0 = arith.constant 0 : i32
    %c0_i32_1 = arith.constant 0 : i32
    return %arg0, %c0_i32, %c0_i32_0 : i32, i32, i32
  }
  func.func @transform_1(%arg0: i32) -> (i32, i32, i32) {
    %c0_i32 = arith.constant 0 : i32
    %c0_i32_0 = arith.constant 0 : i32
    %c0_i32_1 = arith.constant 0 : i32
    %c0_i32_2 = arith.constant 0 : i32
    return %c0_i32, %c0_i32_0, %c0_i32_1 : i32, i32, i32
  }
  func.func @transform_2(%arg0: i32) -> (i32, i32) {
    %c0_i32 = arith.constant 0 : i32
    %c0_i32_0 = arith.constant 0 : i32
    %c0_i32_1 = arith.constant 0 : i32
    return %c0_i32, %c0_i32_0 : i32, i32
  }
  func.func @transform_3(%arg0: i32) -> (i32, i32) {
    %c0_i32 = arith.constant 0 : i32
    %c0_i32_0 = arith.constant 0 : i32
    %c0_i32_1 = arith.constant 0 : i32
    return %c0_i32, %c0_i32_0 : i32, i32
  }
  func.func @transform_4(%arg0: i32) -> (i32, i32, i32) {
    %c0_i32 = arith.constant 0 : i32
    %c0_i32_0 = arith.constant 0 : i32
    %c0_i32_1 = arith.constant 0 : i32
    %c0_i32_2 = arith.constant 0 : i32
    return %c0_i32, %c0_i32_0, %c0_i32_1 : i32, i32, i32
  }
  func.func @transform_5(%arg0: i32) -> (i32, i32) {
    %c0_i32 = arith.constant 0 : i32
    %c0_i32_0 = arith.constant 0 : i32
    %c0_i32_1 = arith.constant 0 : i32
    return %c0_i32, %c0_i32_0 : i32, i32
  }
  func.func @transform_6(%arg0: i32) -> (i32, i32) {
    %c0_i32 = arith.constant 0 : i32
    %c0_i32_0 = arith.constant 0 : i32
    %c0_i32_1 = arith.constant 0 : i32
    return %c0_i32, %c0_i32_0 : i32, i32
  }
  func.func @transform_7(%arg0: i32) -> (i32, i32, i32) {
    %c0_i32 = arith.constant 0 : i32
    %c0_i32_0 = arith.constant 0 : i32
    %c0_i32_1 = arith.constant 0 : i32
    return %arg0, %c0_i32, %c0_i32_0 : i32, i32, i32
  }
}

</mosaic_0001>

<bundles_post_ra>
// kernel: residual_block.1
= control target key start
LH: loop header
LB: loop body
LE: loop exit
PB: predicated region body
PF: predicated region fallthrough
CT: control target
= control target key end

     0   :  { %s9509_s24 = smov 0   ;;  %s12553_s0 = inlined_call_operand.vmem [shape: f32[2,4,256], index: 0, kind: input, shape index: {}]   ;;  %s12554_s1 = inlined_call_operand.vmem [shape: f32[9,4,4], index: 1, kind: input, shape index: {}]   ;;  %s12555_s2 = inlined_call_operand.vmem [shape: f32[1,4], index: 2, kind: input, shape index: {}]   ;;  %s12556_s3 = inlined_call_operand.vmem [shape: f32[1,4], index: 3, kind: input, shape index: {}]   ;;  %s12557_s4 = inlined_call_operand.vmem [shape: f32[9,4,4], index: 4, kind: input, shape index: {}]   ;;  %s12558_s5 = inlined_call_operand.vmem [shape: f32[1,4], index: 5, kind: input, shape index: {}]   ;;  %s12559_s6 = inlined_call_operand.vmem [shape: f32[1,4], index: 6, kind: input, shape index: {}]   ;;  %s12560_s7 = inlined_call_operand.vmem [shape: f32[2,4,256], index: 7, kind: output, shape index: {}]  }
   0x1 LB: > { %s6831_s25 = sadd.s32 4294967295, %s9467_s24   ;;  %p6835_p0 = scmp.ge.s32.totalorder %s9467_s24, 1  ;;  %s9467_s24 = sphi %s9509_s24, %s17_s24  }
   0x2   : > { %p237_p1 = scmp.lt.s32.totalorder %s9467_s24, 3 }
   0x4   : > { %p238_p2 = pnand %p6835_p0, %p237_p1 }
   0x6   : > { %241 = sbr.rel (%p238_p2) target bundleno = 2250 (0x8ca), region = 48 }
   0xd   : > { %p269_p3 = scmp.lt.s32.totalorder %s6831_s25, 1  ;;  %v557_v1 = vld [vmem:[%s12554_s1 + $0x4] sm:$0xf]  ;;  %vm732_vm0 = vcmask 1043456   ;;  %v556_v3 = vld [vmem:[%s12554_s1] sm:$0xf] }
   0xe   : > { %8034 = vmatprep.subr.msk.mxu0 %vm732_vm0, %v557_v1  ;;  %vm411_vm1 = vcmask 1040384   ;;  %vm671_vm2 = vcmask 31744   ;;  %vm595_vm3 = vcmask 1046528   ;;  %v9575_v33 = vld [vmem:[%s12554_s1 + $0x8] sm:$0xf]  ;;  %vm1249_vm4 = vcmask 1045504  }
   0xf   : > { %s12946_s25 = smov (!%p269_p3, %s6831_s25), 1  ;;  %8035 = vmatpush3.msk.msra.mxu0 %vm732_vm0, %v557_v1 }
  0x10   : > { %s7438_s26 = sshll.u32 %s12946_s25, 3  ;;  %8084 = vmatprep.subr.msk.mxu0 %vm732_vm0, %v556_v3 }
  0x11   : > { %s9525_s29 = scalar_lea.vmem %s12553_s0, %s7438_s26  ;;  %s278_s15 = scalar_lea.vmem %s12560_s7, %s7438_s26 }
  0x12   : > { %v279_v0 = vld [vmem:[%s9525_s29] sm:$0xff] }
  0x13   : > { %283 = vxpose.xlu0.b32.start.end [1/1] (short) %v279_v0, 128  ;;  %v9533_v2 = vcombine.high %v279_v0, %v279_v0 }
  0x15   : > { %12717 = vst [vmem:[#allocation2_spill] sm:$0xff] %v9533_v2 }
  0x50   : > { %315 = vxpose.xlu0.b32.start.end [1/1] (short) %v9533_v2, 128 }
  0x93   : > { %v299_v4 = vpop.trf.xlu0 }
  0x94   : > { %v364_v10 = vrot.slane %v299_v4, 1  ;;  %v415_v11 = vrot.slane %v299_v4, 7 }
  0x96   : > { %v9547_v18 = vsel %vm411_vm1, %v364_v10, %v415_v11 }
  0x97   : > { %v300_v5 = vpop.trf.xlu0  ;;  %v601_v29 = vrot.slane %v9547_v18, 1 }
  0x98   : > { %v416_v7 = vrot.slane %v300_v5, 7  ;;  %v493_v12 = vrot.slane %v300_v5, 5 }
  0x9a   : > { %v9541_v14 = vsel %vm411_vm1, %v415_v11, %v416_v7  ;;  %v9550_v19 = vsel %vm411_vm1, %v416_v7, %v493_v12 }
  0x9b   : > { %v301_v6 = vpop.trf.xlu0  ;;  %v602_v26 = vrot.slane %v9541_v14, 1  ;;  %v604_v30 = vrot.slane %v9550_v19, 1 }
  0x9c   : > { %v363_v8 = vrot.slane %v301_v6, 1  ;;  %v412_v9 = vrot.slane %v301_v6, 7 }
  0x9d   : > { %v9580_v35 = vsel %vm595_vm3, %v601_v29, %v602_v26  ;;  %v9594_v40 = vsel %vm595_vm3, %v602_v26, %v604_v30 }
  0x9e   : > { %v9544_v15 = vsel %vm411_vm1, %v363_v8, %v412_v9 }
  0x9f   : > { %v302_v13 = vpop.trf.xlu0  ;;  %v596_v24 = vrot.slane %v9544_v15, 1 }
  0xa0   : > { %v413_v16 = vrot.slane %v302_v13, 7  ;;  %v492_v17 = vrot.slane %v302_v13, 5 }
  0xa2   : > { %v9553_v20 = vsel %vm411_vm1, %v412_v9, %v413_v16  ;;  %v9556_v21 = vsel %vm411_vm1, %v413_v16, %v492_v17 }
  0xa3   : > { %v599_v22 = vrot.slane %v9556_v21, 1  ;;  %v303_v23 = vpop.trf.xlu0  ;;  %v597_v25 = vrot.slane %v9553_v20, 1 }
  0xa4   : > { %v365_v31 = vrot.slane %v303_v23, 1  ;;  %v418_v32 = vrot.slane %v303_v23, 7 }
  0xa5   : > { %v9563_v27 = vsel %vm595_vm3, %v596_v24, %v597_v25  ;;  %v9566_v28 = vsel %vm595_vm3, %v597_v25, %v599_v22 }
  0xa6   : > { %8036 = vmatprep.mubr.msk.f32.mxu0 %vm671_vm2, %v9563_v27  ;;  %v9588_v38 = vsel %vm411_vm1, %v365_v31, %v418_v32 }
  0xa7   : > { %8037 = vmatmul.mubr.msk.f32.vlgmr.msra.gmra.mrb[0].mxu0 %vm671_vm2, %v9566_v28  ;;  %v304_v34 = vpop.trf.xlu0  ;;  %v606_v46 = vrot.slane %v9588_v38, 1 }
  0xa8   : > { %v419_v36 = vrot.slane %v304_v34, 7  ;;  %v494_v37 = vrot.slane %v304_v34, 5  ;;  %8039 = vmatprep.mubr.msk.f32.mxu0 %vm671_vm2, %v9580_v35  ;;  %8085 = vmatpush3.msk.msra.mxu0 %vm732_vm0, %v556_v3 }
  0xa9   : > { %8134 = vmatprep.subr.msk.mxu0 %vm732_vm0, %v9575_v33 }
  0xaa   : > { %v9591_v39 = vsel %vm411_vm1, %v418_v32, %v419_v36  ;;  %v9597_v41 = vsel %vm411_vm1, %v419_v36, %v494_v37 }
  0xab   : > { %8040 = vmatmul.mubr.msk.f32.gmra.mrb[2].mxu0 %vm671_vm2, %v9594_v40  ;;  %v305_v42 = vpop.trf.xlu0  ;;  %v607_v43 = vrot.slane %v9591_v39, 1  ;;  %v609_v47 = vrot.slane %v9597_v41, 1 }
  0xac   : > { %v366_v44 = vrot.slane %v305_v42, 1  ;;  %v421_v45 = vrot.slane %v305_v42, 7  ;;  %8042 = vmatprep.mubr.msk.f32.mxu0 %vm671_vm2, %v9563_v27 }
  0xad   : > { %v9609_v49 = vsel %vm595_vm3, %v606_v46, %v607_v43  ;;  %v9623_v55 = vsel %vm595_vm3, %v607_v43, %v609_v47 }
  0xae   : > { %v9612_v50 = vsel %vm411_vm1, %v366_v44, %v421_v45 }
  0xaf   : > { %8043 = vmatmul.mubr.msk.f32.gmra.mrb[4].mxu0 %vm671_vm2, %v9566_v28  ;;  %v306_v48 = vpop.trf.xlu0  ;;  %v611_v58 = vrot.slane %v9612_v50, 1 }
  0xb0   : > { %v422_v51 = vrot.slane %v306_v48, 7  ;;  %v495_v52 = vrot.slane %v306_v48, 5  ;;  %8045 = vmatprep.mubr.msk.f32.mxu0 %vm671_vm2, %v9609_v49 }
  0xb2   : > { %v9617_v53 = vsel %vm411_vm1, %v421_v45, %v422_v51  ;;  %v9620_v54 = vsel %vm411_vm1, %v422_v51, %v495_v52 }
  0xb3   : > { %v614_v56 = vrot.slane %v9620_v54, 1  ;;  %8046 = vmatmul.mubr.msk.f32.gmra.mrb[6].mxu0 %vm671_vm2, %v9623_v55  ;;  %v307_v57 = vpop.trf.xlu0  ;;  %v612_v59 = vrot.slane %v9617_v53, 1 }
  0xb4   : > { %v367_v60 = vrot.slane %v307_v57, 1  ;;  %v424_v61 = vrot.slane %v307_v57, 7 }
  0xb5   : > { %v9631_v62 = vsel %vm595_vm3, %v611_v58, %v612_v59  ;;  %v9634_v63 = vsel %vm595_vm3, %v612_v59, %v614_v56 }
  0xb6   : > { %12718 = vst [vmem:[#allocation3_spill] sm:$0xff] %v9634_v63  ;;  %8048 = vmatprep.mubr.msk.f32.mxu0 %vm671_vm2, %v9631_v62  ;;  %v9641_v1 = vsel %vm411_vm1, %v367_v60, %v424_v61 }
  0xb7   : > { %8049 = vmatmul.mubr.msk.f32.gmra.mrb[8].mxu0 %vm671_vm2, %v9634_v63  ;;  %v308_v0 = vpop.trf.xlu0  ;;  %v616_v9 = vrot.slane %v9641_v1, 1 }
  0xb8   : > { %v425_v3 = vrot.slane %v308_v0, 7  ;;  %v496_v4 = vrot.slane %v308_v0, 5 }
  0xba   : > { %v9644_v5 = vsel %vm411_vm1, %v424_v61, %v425_v3  ;;  %v9647_v6 = vsel %vm411_vm1, %v425_v3, %v496_v4 }
  0xbb   : > { %v619_v7 = vrot.slane %v9647_v6, 1  ;;  %v309_v8 = vpop.trf.xlu0  ;;  %v617_v10 = vrot.slane %v9644_v5, 1 }
  0xbc   : > { %v368_v11 = vrot.slane %v309_v8, 1  ;;  %v427_v12 = vrot.slane %v309_v8, 7 }
  0xbd   : > { %v9653_v13 = vsel %vm595_vm3, %v616_v9, %v617_v10  ;;  %v9656_v16 = vsel %vm595_vm3, %v617_v10, %v619_v7 }
  0xbe   : > { %12719 = vst [vmem:[#allocation4_spill] sm:$0xff] %v9653_v13  ;;  %12720 = vst [vmem:[#allocation5_spill] sm:$0xff] %v9656_v16  ;;  %8051 = vmatprep.mubr.msk.f32.mxu0 %vm671_vm2, %v9653_v13  ;;  %v9663_v22 = vsel %vm411_vm1, %v368_v11, %v427_v12 }
  0xbf   : > { %8052 = vmatmul.mubr.msk.f32.gmra.mrb[10].mxu0 %vm671_vm2, %v9656_v16  ;;  %v310_v17 = vpop.trf.xlu0  ;;  %v621_v31 = vrot.slane %v9663_v22, 1 }
  0xc0   : > { %v428_v23 = vrot.slane %v310_v17, 7  ;;  %v497_v24 = vrot.slane %v310_v17, 5 }
  0xc2   : > { %v9666_v25 = vsel %vm411_vm1, %v427_v12, %v428_v23  ;;  %v9669_v26 = vsel %vm411_vm1, %v428_v23, %v497_v24 }
  0xc3   : > { %v624_v29 = vrot.slane %v9669_v26, 1  ;;  %v311_v30 = vpop.trf.xlu0  ;;  %v622_v32 = vrot.slane %v9666_v25, 1 }
  0xc4   : > { %v369_v34 = vrot.slane %v311_v30, 1  ;;  %v430_v36 = vrot.slane %v311_v30, 7 }
  0xc5   : > { %v9675_v37 = vsel %vm595_vm3, %v621_v31, %v622_v32  ;;  %v9678_v42 = vsel %vm595_vm3, %v622_v32, %v624_v29 }
  0xc6   : > { %12721 = vst [vmem:[#allocation6_spill] sm:$0xff] %v9675_v37  ;;  %12722 = vst [vmem:[#allocation7_spill] sm:$0xff] %v9678_v42  ;;  %8054 = vmatprep.mubr.msk.f32.mxu0 %vm671_vm2, %v9675_v37  ;;  %v9685_v44 = vsel %vm411_vm1, %v369_v34, %v430_v36 }
  0xc7   : > { %8055 = vmatmul.mubr.msk.f32.gmra.mrb[12].mxu0 %vm671_vm2, %v9678_v42  ;;  %v312_v43 = vpop.trf.xlu0  ;;  %v626_v56 = vrot.slane %v9685_v44, 1 }
  0xc8   : > { %v431_v45 = vrot.slane %v312_v43, 7  ;;  %v498_v46 = vrot.slane %v312_v43, 5 }
  0xca   : > { %v9688_v47 = vsel %vm411_vm1, %v430_v36, %v431_v45  ;;  %v9691_v48 = vsel %vm411_vm1, %v431_v45, %v498_v46 }
  0xcb   : > { %v629_v51 = vrot.slane %v9691_v48, 1  ;;  %v313_v52 = vpop.trf.xlu0  ;;  %v627_v57 = vrot.slane %v9688_v47, 1 }
  0xcc   : > { %v370_v58 = vrot.slane %v313_v52, 1  ;;  %v433_v59 = vrot.slane %v313_v52, 7 }
  0xcd   : > { %v9697_v60 = vsel %vm595_vm3, %v626_v56, %v627_v57  ;;  %v9700_v61 = vsel %vm595_vm3, %v627_v57, %v629_v51 }
  0xce   : > { %12723 = vst [vmem:[#allocation8_spill] sm:$0xff] %v9697_v60  ;;  %12724 = vst [vmem:[#allocation9_spill] sm:$0xff] %v9700_v61  ;;  %8057 = vmatprep.mubr.msk.f32.mxu0 %vm671_vm2, %v9697_v60  ;;  %v9707_v3 = vsel %vm411_vm1, %v370_v58, %v433_v59 }
  0xcf   : > { %8058 = vmatmul.mubr.msk.f32.gmra.mrb[14].mxu0 %vm671_vm2, %v9700_v61  ;;  %v314_v0 = vpop.trf.xlu0  ;;  %v631_v12 = vrot.slane %v9707_v3, 1 }
  0xd0   : > { %v434_v4 = vrot.slane %v314_v0, 7  ;;  %v499_v7 = vrot.slane %v314_v0, 5 }
  0xd2   : > { %v9710_v8 = vsel %vm411_vm1, %v433_v59, %v434_v4  ;;  %v9713_v9 = vsel %vm411_vm1, %v434_v4, %v499_v7 }
  0xd3   : > { %v634_v10 = vrot.slane %v9713_v9, 1  ;;  %v331_v11 = vpop.trf.xlu0  ;;  %v632_v17 = vrot.slane %v9710_v8, 1 }
  0xd4   : > { %v371_v23 = vrot.slane %v331_v11, 1  ;;  %v436_v24 = vrot.slane %v331_v11, 7 }
  0xd5   : > { %v9719_v29 = vsel %vm595_vm3, %v631_v12, %v632_v17  ;;  %v9722_v30 = vsel %vm595_vm3, %v632_v17, %v634_v10 }
  0xd6   : > { %12725 = vst [vmem:[#allocation10_spill] sm:$0xff] %v9719_v29  ;;  %12726 = vst [vmem:[#allocation11_spill] sm:$0xff] %v9722_v30  ;;  %8060 = vmatprep.mubr.msk.f32.mxu0 %vm671_vm2, %v9719_v29  ;;  %v9729_v32 = vsel %vm411_vm1, %v371_v23, %v436_v24 }
  0xd7   : > { %8061 = vmatmul.mubr.msk.f32.gmra.mrb[16].mxu0 %vm671_vm2, %v9722_v30  ;;  %v332_v31 = vpop.trf.xlu0  ;;  %v636_v52 = vrot.slane %v9729_v32, 1 }
  0xd8   : > { %v437_v34 = vrot.slane %v332_v31, 7  ;;  %v500_v36 = vrot.slane %v332_v31, 5 }
  0xda   : > { %v9732_v43 = vsel %vm411_vm1, %v436_v24, %v437_v34  ;;  %v9735_v45 = vsel %vm411_vm1, %v437_v34, %v500_v36 }
  0xdb   : > { %v639_v46 = vrot.slane %v9735_v45, 1  ;;  %v333_v51 = vpop.trf.xlu0  ;;  %v637_v56 = vrot.slane %v9732_v43, 1 }
  0xdc   : > { %v372_v57 = vrot.slane %v333_v51, 1  ;;  %v439_v58 = vrot.slane %v333_v51, 7 }
  0xdd   : > { %v9741_v59 = vsel %vm595_vm3, %v636_v52, %v637_v56  ;;  %v9744_v0 = vsel %vm595_vm3, %v637_v56, %v639_v46 }
  0xde   : > { %12727 = vst [vmem:[#allocation12_spill] sm:$0xff] %v9741_v59  ;;  %12728 = vst [vmem:[#allocation13_spill] sm:$0xff] %v9744_v0  ;;  %8063 = vmatprep.mubr.msk.f32.mxu0 %vm671_vm2, %v9741_v59  ;;  %v9751_v7 = vsel %vm411_vm1, %v372_v57, %v439_v58 }
  0xdf   : > { %8064 = vmatmul.mubr.msk.f32.gmra.mrb[18].mxu0 %vm671_vm2, %v9744_v0  ;;  %v334_v4 = vpop.trf.xlu0  ;;  %v641_v31 = vrot.slane %v9751_v7, 1 }
  0xe0   : > { %v440_v10 = vrot.slane %v334_v4, 7  ;;  %v501_v11 = vrot.slane %v334_v4, 5 }
  0xe2   : > { %v9754_v12 = vsel %vm411_vm1, %v439_v58, %v440_v10  ;;  %v9757_v17 = vsel %vm411_vm1, %v440_v10, %v501_v11 }
  0xe3   : > { %v644_v23 = vrot.slane %v9757_v17, 1  ;;  %v335_v24 = vpop.trf.xlu0  ;;  %v642_v34 = vrot.slane %v9754_v12, 1 }
  0xe4   : > { %v373_v36 = vrot.slane %v335_v24, 1  ;;  %v442_v46 = vrot.slane %v335_v24, 7 }
  0xe5   : > { %v9763_v51 = vsel %vm595_vm3, %v641_v31, %v642_v34  ;;  %v9766_v52 = vsel %vm595_vm3, %v642_v34, %v644_v23 }
  0xe6   : > { %12729 = vst [vmem:[#allocation14_spill] sm:$0xff] %v9763_v51  ;;  %12730 = vst [vmem:[#allocation15_spill] sm:$0xff] %v9766_v52  ;;  %8066 = vmatprep.mubr.msk.f32.mxu0 %vm671_vm2, %v9763_v51  ;;  %v9773_v57 = vsel %vm411_vm1, %v373_v36, %v442_v46 }
  0xe7   : > { %8067 = vmatmul.mubr.msk.f32.gmra.mrb[20].mxu0 %vm671_vm2, %v9766_v52  ;;  %v336_v56 = vpop.trf.xlu0  ;;  %v646_v31 = vrot.slane %v9773_v57, 1 }
  0xe8   : > { %v443_v58 = vrot.slane %v336_v56, 7  ;;  %v502_v4 = vrot.slane %v336_v56, 5 }
  0xea   : > { %v9776_v10 = vsel %vm411_vm1, %v442_v46, %v443_v58  ;;  %v9779_v11 = vsel %vm411_vm1, %v443_v58, %v502_v4 }
  0xeb   : > { %v649_v23 = vrot.slane %v9779_v11, 1  ;;  %v337_v24 = vpop.trf.xlu0  ;;  %v647_v34 = vrot.slane %v9776_v10, 1 }
  0xec   : > { %v374_v2 = vrot.slane %v337_v24, 1  ;;  %v445_v52 = vrot.slane %v337_v24, 7 }
  0xed   : > { %v9785_v36 = vsel %vm595_vm3, %v646_v31, %v647_v34  ;;  %v9788_v56 = vsel %vm595_vm3, %v647_v34, %v649_v23 }
  0xee   : > { %12731 = vst [vmem:[#allocation16_spill] sm:$0xff] %v9785_v36  ;;  %12732 = vst [vmem:[#allocation17_spill] sm:$0xff] %v9788_v56  ;;  %8069 = vmatprep.mubr.msk.f32.mxu0 %vm671_vm2, %v9785_v36  ;;  %v9795_v58 = vsel %vm411_vm1, %v374_v2, %v445_v52 }
  0xef   : > { %8070 = vmatmul.mubr.msk.f32.gmra.mrb[22].mxu0 %vm671_vm2, %v9788_v56  ;;  %v338_v46 = vpop.trf.xlu0  ;;  %v651_v36 = vrot.slane %v9795_v58, 1 }
  0xf0   : > { %v446_v4 = vrot.slane %v338_v46, 7  ;;  %v503_v51 = vrot.slane %v338_v46, 5 }
  0xf2   : > { %v9798_v24 = vsel %vm411_vm1, %v445_v52, %v446_v4  ;;  %v9801_v31 = vsel %vm411_vm1, %v446_v4, %v503_v51 }
  0xf3   : > { %v654_v23 = vrot.slane %v9801_v31, 1  ;;  %v339_v34 = vpop.trf.xlu0  ;;  %v652_v0 = vrot.slane %v9798_v24, 1 }
  0xf4   : > { %v375_v56 = vrot.slane %v339_v34, 1  ;;  %v448_v59 = vrot.slane %v339_v34, 7 }
  0xf5   : > { %v9807_v2 = vsel %vm595_vm3, %v651_v36, %v652_v0  ;;  %v9810_v46 = vsel %vm595_vm3, %v652_v0, %v654_v23 }
  0xf6   : > { %12733 = vst [vmem:[#allocation18_spill] sm:$0xff] %v9807_v2  ;;  %12734 = vst [vmem:[#allocation19_spill] sm:$0xff] %v9810_v46  ;;  %8072 = vmatprep.mubr.msk.f32.mxu0 %vm671_vm2, %v9807_v2  ;;  %v9817_v52 = vsel %vm411_vm1, %v375_v56, %v448_v59 }
  0xf7   : > { %8073 = vmatmul.mubr.msk.f32.gmra.mrb[24].mxu0 %vm671_vm2, %v9810_v46  ;;  %v340_v51 = vpop.trf.xlu0  ;;  %v656_v2 = vrot.slane %v9817_v52, 1 }
  0xf8   : > { %v449_v4 = vrot.slane %v340_v51, 7  ;;  %v504_v30 = vrot.slane %v340_v51, 5 }
  0xfa   : > { %v9820_v34 = vsel %vm411_vm1, %v448_v59, %v449_v4  ;;  %v9823_v36 = vsel %vm411_vm1, %v449_v4, %v504_v30 }
  0xfb   : > { %v659_v0 = vrot.slane %v9823_v36, 1  ;;  %v341_v23 = vpop.trf.xlu0  ;;  %v657_v29 = vrot.slane %v9820_v34, 1 }
  0xfc   : > { %v376_v46 = vrot.slane %v341_v23, 1  ;;  %v451_v61 = vrot.slane %v341_v23, 7 }
  0xfd   : > { %v9829_v56 = vsel %vm595_vm3, %v656_v2, %v657_v29  ;;  %v9832_v51 = vsel %vm595_vm3, %v657_v29, %v659_v0 }
  0xfe   : > { %12735 = vst [vmem:[#allocation20_spill] sm:$0xff] %v9829_v56  ;;  %12736 = vst [vmem:[#allocation21_spill] sm:$0xff] %v9832_v51  ;;  %8075 = vmatprep.mubr.msk.f32.mxu0 %vm671_vm2, %v9829_v56  ;;  %v9839_v59 = vsel %vm411_vm1, %v376_v46, %v451_v61 }
  0xff   : > { %8076 = vmatmul.mubr.msk.f32.gmra.mrb[26].mxu0 %vm671_vm2, %v9832_v51  ;;  %v342_v30 = vpop.trf.xlu0  ;;  %v661_v56 = vrot.slane %v9839_v59, 1 }
 0x100   : > { %v452_v4 = vrot.slane %v342_v30, 7  ;;  %v505_v60 = vrot.slane %v342_v30, 5 }
 0x102   : > { %v9842_v23 = vsel %vm411_vm1, %v451_v61, %v452_v4  ;;  %v9845_v2 = vsel %vm411_vm1, %v452_v4, %v505_v60 }
 0x103   : > { %v664_v29 = vrot.slane %v9845_v2, 1  ;;  %v343_v0 = vpop.trf.xlu0  ;;  %v662_v42 = vrot.slane %v9842_v23, 1 }
 0x104   : > { %v377_v51 = vrot.slane %v343_v0, 1  ;;  %v454_v37 = vrot.slane %v343_v0, 7 }
 0x105   : > { %v9851_v46 = vsel %vm595_vm3, %v661_v56, %v662_v42  ;;  %v9854_v30 = vsel %vm595_vm3, %v662_v42, %v664_v29 }
 0x106   : > { %12737 = vst [vmem:[#allocation22_spill] sm:$0xff] %v9851_v46  ;;  %12738 = vst [vmem:[#allocation23_spill] sm:$0xff] %v9854_v30  ;;  %8078 = vmatprep.mubr.msk.f32.mxu0 %vm671_vm2, %v9851_v46  ;;  %v9861_v61 = vsel %vm411_vm1, %v377_v51, %v454_v37 }
 0x107   : > { %8079 = vmatmul.mubr.msk.f32.gmra.mrb[28].mxu0 %vm671_vm2, %v9854_v30  ;;  %v344_v60 = vpop.trf.xlu0  ;;  %v666_v29 = vrot.slane %v9861_v61, 1 }
 0x108   : > { %v455_v4 = vrot.slane %v344_v60, 7  ;;  %v506_v16 = vrot.slane %v344_v60, 5 }
 0x10a   : > { %v9864_v0 = vsel %vm411_vm1, %v454_v37, %v455_v4  ;;  %v9867_v56 = vsel %vm411_vm1, %v455_v4, %v506_v16  ;;  %v559_v16 = vld [vmem:[%s12554_s1 + $0xc] sm:$0xf]  ;;  %v1250_v37 = vrot.slane %v9544_v15, 2  ;;  %v1256_v4 = vrot.slane %v9541_v14, 2 }
 0x10b   : > { %v669_v42 = vrot.slane %v9867_v56, 1  ;;  %v667_v46 = vrot.slane %v9864_v0, 1 }
 0x10d   : > { %v9873_v30 = vsel %vm595_vm3, %v666_v29, %v667_v46  ;;  %v9876_v51 = vsel %vm595_vm3, %v667_v46, %v669_v42  ;;  %v1253_v46 = vrot.slane %v9556_v21, 2  ;;  %v1255_v42 = vrot.slane %v9547_v18, 2  ;;  %v9969_v21 = vld [vmem:[%s12554_s1 + $0x10] sm:$0xf] }
 0x10e   : > { %12739 = vst [vmem:[#allocation24_spill] sm:$0xff] %v9876_v51  ;;  %8081 = vmatprep.mubr.msk.f32.mxu0 %vm671_vm2, %v9873_v30  ;;  %v1258_v29 = vrot.slane %v9550_v19, 2 }
 0x10f   : > { %8082 = vmatmul.mubr.msk.f32.gmra.mrb[30].mxu0 %vm671_vm2, %v9876_v51 }
 0x110   : > { %8086 = vmatprep.mubr.msk.f32.mxu0 %vm671_vm2, %v9544_v15  ;;  %v9982_v19 = vsel %vm1249_vm4, %v1256_v4, %v1258_v29  ;;  %v1265_v29 = vrot.slane %v9612_v50, 2 }
 0x111   : > { %12742 = vst [vmem:[#allocation27_spill] sm:$0xff] %v9982_v19 }
 0x113   : > { %8087 = vmatmul.mubr.msk.f32.vlgmr.msra.gmra.mrb[0].mxu0 %vm671_vm2, %v9553_v20 }
 0x114   : > { %8135 = vmatpush3.msk.msra.mxu0 %vm732_vm0, %v9575_v33  ;;  %8089 = vmatprep.mubr.msk.f32.mxu0 %vm671_vm2, %v9547_v18  ;;  %v1251_v33 = vrot.slane %v9553_v20, 2 }
 0x115   : > { %8184 = vmatprep.subr.msk.mxu0 %vm732_vm0, %v559_v16 }
 0x116   : > { %v9956_v60 = vsel %vm1249_vm4, %v1250_v37, %v1251_v33  ;;  %v9964_v51 = vsel %vm1249_vm4, %v1251_v33, %v1253_v46  ;;  %v9974_v37 = vsel %vm1249_vm4, %v1255_v42, %v1256_v4  ;;  %v1261_v33 = vrot.slane %v9591_v39, 2 }
 0x117   : > { %8090 = vmatmul.mubr.msk.f32.gmra.mrb[2].mxu0 %vm671_vm2, %v9541_v14  ;;  %12740 = vst [vmem:[#allocation25_spill] sm:$0xff] %v9956_v60  ;;  %12741 = vst [vmem:[#allocation26_spill] sm:$0xff] %v9964_v51  ;;  %v1260_v46 = vrot.slane %v9588_v38, 2  ;;  %v1266_v4 = vrot.slane %v9617_v53, 2 }
 0x118   : > { %8092 = vmatprep.mubr.msk.f32.mxu0 %vm671_vm2, %v9544_v15 }
 0x119   : > { %v9994_v42 = vsel %vm1249_vm4, %v1260_v46, %v1261_v33  ;;  %v1271_v46 = vrot.slane %v9644_v5, 2 }
 0x11a   : > { %12743 = vst [vmem:[#allocation28_spill] sm:$0xff] %v9994_v42 }
 0x11b   : > { %8093 = vmatmul.mubr.msk.f32.gmra.mrb[4].mxu0 %vm671_vm2, %v9553_v20 }
 0x11c   : > { %8095 = vmatprep.mubr.msk.f32.mxu0 %vm671_vm2, %v9588_v38 }
 0x11f   : > { %8096 = vmatmul.mubr.msk.f32.gmra.mrb[6].mxu0 %vm671_vm2, %v9591_v39 }
 0x120   : > { %8098 = vmatprep.mubr.msk.f32.mxu0 %vm671_vm2, %v9612_v50 }
 0x123   : > { %8099 = vmatmul.mubr.msk.f32.gmra.mrb[8].mxu0 %vm671_vm2, %v9617_v53 }
 0x124   : > { %8101 = vmatprep.mubr.msk.f32.mxu0 %vm671_vm2, %v9641_v1 }
 0x127   : > { %8102 = vmatmul.mubr.msk.f32.gmra.mrb[10].mxu0 %vm671_vm2, %v9644_v5 }
 0x128   : > { %8104 = vmatprep.mubr.msk.f32.mxu0 %vm671_vm2, %v9663_v22 }
 0x12b   : > { %8105 = vmatmul.mubr.msk.f32.gmra.mrb[12].mxu0 %vm671_vm2, %v9666_v25 }
 0x12c   : > { %8107 = vmatprep.mubr.msk.f32.mxu0 %vm671_vm2, %v9685_v44 }
 0x12f   : > { %8108 = vmatmul.mubr.msk.f32.gmra.mrb[14].mxu0 %vm671_vm2, %v9688_v47 }
 0x130   : > { %8110 = vmatprep.mubr.msk.f32.mxu0 %vm671_vm2, %v9707_v3 }
 0x133   : > { %8111 = vmatmul.mubr.msk.f32.gmra.mrb[16].mxu0 %vm671_vm2, %v9710_v8 }
 0x134   : > { %8113 = vmatprep.mubr.msk.f32.mxu0 %vm671_vm2, %v9729_v32 }
 0x137   : > { %8114 = vmatmul.mubr.msk.f32.gmra.mrb[18].mxu0 %vm671_vm2, %v9732_v43 }
 0x138   : > { %8116 = vmatprep.mubr.msk.f32.mxu0 %vm671_vm2, %v9751_v7 }
 0x13b   : > { %8117 = vmatmul.mubr.msk.f32.gmra.mrb[20].mxu0 %vm671_vm2, %v9754_v12 }
 0x13c   : > { %8119 = vmatprep.mubr.msk.f32.mxu0 %vm671_vm2, %v9773_v57 }
 0x13f   : > { %8120 = vmatmul.mubr.msk.f32.gmra.mrb[22].mxu0 %vm671_vm2, %v9776_v10 }
 0x140   : > { %8122 = vmatprep.mubr.msk.f32.mxu0 %vm671_vm2, %v9795_v58 }
 0x143   : > { %8123 = vmatmul.mubr.msk.f32.gmra.mrb[24].mxu0 %vm671_vm2, %v9798_v24 }
 0x144   : > { %8125 = vmatprep.mubr.msk.f32.mxu0 %vm671_vm2, %v9817_v52 }
 0x147   : > { %8126 = vmatmul.mubr.msk.f32.gmra.mrb[26].mxu0 %vm671_vm2, %v9820_v34 }
 0x148   : > { %8128 = vmatprep.mubr.msk.f32.mxu0 %vm671_vm2, %v9839_v59 }
 0x14b   : > { %8129 = vmatmul.mubr.msk.f32.gmra.mrb[28].mxu0 %vm671_vm2, %v9842_v23 }
 0x14c   : > { %8131 = vmatprep.mubr.msk.f32.mxu0 %vm671_vm2, %v9861_v61 }
 0x14f   : > { %8132 = vmatmul.mubr.msk.f32.gmra.mrb[30].mxu0 %vm671_vm2, %v9864_v0 }
 0x150   : > { %8136 = vmatprep.mubr.msk.f32.mxu0 %vm671_vm2, %v9956_v60 }
 0x153   : > { %8137 = vmatmul.mubr.msk.f32.vlgmr.msra.gmra.mrb[0].mxu0 %vm671_vm2, %v9964_v51 }
 0x154   : > { %8185 = vmatpush3.msk.msra.mxu0 %vm732_vm0, %v559_v16  ;;  %8139 = vmatprep.mubr.msk.f32.mxu0 %vm671_vm2, %v9974_v37  ;;  %v1263_v16 = vrot.slane %v9597_v41, 2  ;;  %v10007_v41 = vsel %vm1249_vm4, %v1265_v29, %v1266_v4  ;;  %v1275_v29 = vrot.slane %v9663_v22, 2 }
 0x155   : > { %8234 = vmatprep.subr.msk.mxu0 %vm732_vm0, %v9969_v21  ;;  %12744 = vst [vmem:[#allocation29_spill] sm:$0xff] %v10007_v41 }
 0x157   : > { %8140 = vmatmul.mubr.msk.f32.gmra.mrb[2].mxu0 %vm671_vm2, %v9982_v19  ;;  %v1268_v19 = vrot.slane %v9620_v54, 2 }
 0x158   : > { %8142 = vmatprep.mubr.msk.f32.mxu0 %vm671_vm2, %v9956_v60  ;;  %v10002_v60 = vsel %vm1249_vm4, %v1261_v33, %v1263_v16  ;;  %v1276_v16 = vrot.slane %v9666_v25, 2 }
 0x159   : > { %v10015_v54 = vsel %vm1249_vm4, %v1266_v4, %v1268_v19  ;;  %v1280_v4 = vrot.slane %v9685_v44, 2 }
 0x15a   : > { %v10033_v19 = vsel %vm1249_vm4, %v1275_v29, %v1276_v16  ;;  %v1285_v29 = vrot.slane %v9707_v3, 2 }
 0x15b   : > { %8143 = vmatmul.mubr.msk.f32.gmra.mrb[4].mxu0 %vm671_vm2, %v9964_v51  ;;  %v1273_v51 = vrot.slane %v9647_v6, 2  ;;  %12746 = vst [vmem:[#allocation31_spill] sm:$0xff] %v10033_v19 }
 0x15c   : > { %8145 = vmatprep.mubr.msk.f32.mxu0 %vm671_vm2, %v9994_v42  ;;  %v1270_v42 = vrot.slane %v9641_v1, 2 }
 0x15d   : > { %v10028_v6 = vsel %vm1249_vm4, %v1271_v46, %v1273_v51 }
 0x15e   : > { %v10020_v33 = vsel %vm1249_vm4, %v1270_v42, %v1271_v46  ;;  %v1281_v42 = vrot.slane %v9688_v47, 2  ;;  %v1286_v46 = vrot.slane %v9710_v8, 2 }
 0x15f   : > { %8146 = vmatmul.mubr.msk.f32.gmra.mrb[6].mxu0 %vm671_vm2, %v10002_v60  ;;  %12745 = vst [vmem:[#allocation30_spill] sm:$0xff] %v10020_v33 }
 0x160   : > { %8148 = vmatprep.mubr.msk.f32.mxu0 %vm671_vm2, %v10007_v41  ;;  %v1278_v41 = vrot.slane %v9669_v26, 2  ;;  %v10046_v51 = vsel %vm1249_vm4, %v1280_v4, %v1281_v42  ;;  %v1290_v4 = vrot.slane %v9729_v32, 2 }
 0x161   : > { %12747 = vst [vmem:[#allocation32_spill] sm:$0xff] %v10046_v51 }
 0x162   : > { %v10041_v26 = vsel %vm1249_vm4, %v1276_v16, %v1278_v41  ;;  %v10059_v41 = vsel %vm1249_vm4, %v1285_v29, %v1286_v46  ;;  %v1291_v16 = vrot.slane %v9732_v43, 2  ;;  %v1295_v29 = vrot.slane %v9751_v7, 2 }
 0x163   : > { %8149 = vmatmul.mubr.msk.f32.gmra.mrb[8].mxu0 %vm671_vm2, %v10015_v54  ;;  %12748 = vst [vmem:[#allocation33_spill] sm:$0xff] %v10059_v41 }
 0x164   : > { %8151 = vmatprep.mubr.msk.f32.mxu0 %vm671_vm2, %v10020_v33  ;;  %v1283_v33 = vrot.slane %v9691_v48, 2 }
 0x166   : > { %v10054_v48 = vsel %vm1249_vm4, %v1281_v42, %v1283_v33  ;;  %v10072_v33 = vsel %vm1249_vm4, %v1290_v4, %v1291_v16  ;;  %v1296_v42 = vrot.slane %v9754_v12, 2  ;;  %v1300_v4 = vrot.slane %v9773_v57, 2 }
 0x167   : > { %8152 = vmatmul.mubr.msk.f32.gmra.mrb[10].mxu0 %vm671_vm2, %v10028_v6  ;;  %12749 = vst [vmem:[#allocation34_spill] sm:$0xff] %v10072_v33 }
 0x168   : > { %8154 = vmatprep.mubr.msk.f32.mxu0 %vm671_vm2, %v10033_v19  ;;  %v1288_v19 = vrot.slane %v9713_v9, 2 }
 0x16a   : > { %v10067_v9 = vsel %vm1249_vm4, %v1286_v46, %v1288_v19  ;;  %v10085_v19 = vsel %vm1249_vm4, %v1295_v29, %v1296_v42  ;;  %v1301_v46 = vrot.slane %v9776_v10, 2  ;;  %v1305_v29 = vrot.slane %v9795_v58, 2 }
 0x16b   : > { %8155 = vmatmul.mubr.msk.f32.gmra.mrb[12].mxu0 %vm671_vm2, %v10041_v26  ;;  %12750 = vst [vmem:[#allocation35_spill] sm:$0xff] %v10085_v19 }
 0x16c   : > { %8157 = vmatprep.mubr.msk.f32.mxu0 %vm671_vm2, %v10046_v51  ;;  %v1293_v51 = vrot.slane %v9735_v45, 2 }
 0x16e   : > { %v10080_v45 = vsel %vm1249_vm4, %v1291_v16, %v1293_v51  ;;  %v10098_v51 = vsel %vm1249_vm4, %v1300_v4, %v1301_v46  ;;  %v1306_v16 = vrot.slane %v9798_v24, 2  ;;  %v1310_v4 = vrot.slane %v9817_v52, 2 }
 0x16f   : > { %8158 = vmatmul.mubr.msk.f32.gmra.mrb[14].mxu0 %vm671_vm2, %v10054_v48  ;;  %12752 = vst [vmem:[#allocation37_spill] sm:$0xff] %v10098_v51 }
 0x170   : > { %8160 = vmatprep.mubr.msk.f32.mxu0 %vm671_vm2, %v10059_v41  ;;  %v1298_v41 = vrot.slane %v9757_v17, 2 }
 0x172   : > { %v10093_v17 = vsel %vm1249_vm4, %v1296_v42, %v1298_v41  ;;  %v10111_v41 = vsel %vm1249_vm4, %v1305_v29, %v1306_v16  ;;  %v1311_v42 = vrot.slane %v9820_v34, 2  ;;  %v1315_v29 = vrot.slane %v9839_v59, 2 }
 0x173   : > { %8161 = vmatmul.mubr.msk.f32.gmra.mrb[16].mxu0 %vm671_vm2, %v10067_v9  ;;  %12751 = vst [vmem:[#allocation36_spill] sm:$0xff] %v10093_v17  ;;  %12753 = vst [vmem:[#allocation38_spill] sm:$0xff] %v10111_v41 }
 0x174   : > { %8163 = vmatprep.mubr.msk.f32.mxu0 %vm671_vm2, %v10072_v33  ;;  %v1303_v33 = vrot.slane %v9779_v11, 2 }
 0x176   : > { %v10106_v11 = vsel %vm1249_vm4, %v1301_v46, %v1303_v33  ;;  %v10124_v33 = vsel %vm1249_vm4, %v1310_v4, %v1311_v42  ;;  %v1316_v46 = vrot.slane %v9842_v23, 2  ;;  %v1320_v4 = vrot.slane %v9861_v61, 2 }
 0x177   : > { %8164 = vmatmul.mubr.msk.f32.gmra.mrb[18].mxu0 %vm671_vm2, %v10080_v45  ;;  %12755 = vst [vmem:[#allocation40_spill] sm:$0xff] %v10124_v33 }
 0x178   : > { %8166 = vmatprep.mubr.msk.f32.mxu0 %vm671_vm2, %v10085_v19  ;;  %v1308_v19 = vrot.slane %v9801_v31, 2 }
 0x17a   : > { %v10119_v31 = vsel %vm1249_vm4, %v1306_v16, %v1308_v19  ;;  %v10137_v19 = vsel %vm1249_vm4, %v1315_v29, %v1316_v46  ;;  %v1321_v16 = vrot.slane %v9864_v0, 2 }
 0x17b   : > { %8167 = vmatmul.mubr.msk.f32.gmra.mrb[20].mxu0 %vm671_vm2, %v10093_v17  ;;  %12754 = vst [vmem:[#allocation39_spill] sm:$0xff] %v10119_v31  ;;  %12756 = vst [vmem:[#allocation41_spill] sm:$0xff] %v10137_v19 }
 0x17c   : > { %8169 = vmatprep.mubr.msk.f32.mxu0 %vm671_vm2, %v10098_v51  ;;  %v1313_v51 = vrot.slane %v9823_v36, 2 }
 0x17e   : > { %v10132_v36 = vsel %vm1249_vm4, %v1311_v42, %v1313_v51  ;;  %v10150_v51 = vsel %vm1249_vm4, %v1320_v4, %v1321_v16  ;;  %v12759_v4 = vld [vmem:[#allocation7_spill] sm:$0xff] }
 0x17f   : > { %8170 = vmatmul.mubr.msk.f32.gmra.mrb[22].mxu0 %vm671_vm2, %v10106_v11 }
 0x180   : > { %8172 = vmatprep.mubr.msk.f32.mxu0 %vm671_vm2, %v10111_v41  ;;  %v1318_v41 = vrot.slane %v9845_v2, 2 }
 0x182   : > { %v10145_v2 = vsel %vm1249_vm4, %v1316_v46, %v1318_v41 }
 0x183   : > { %8173 = vmatmul.mubr.msk.f32.gmra.mrb[24].mxu0 %vm671_vm2, %v10119_v31 }
 0x184   : > { %8175 = vmatprep.mubr.msk.f32.mxu0 %vm671_vm2, %v10124_v33  ;;  %v1323_v33 = vrot.slane %v9867_v56, 2  ;;  %v561_v56 = vld [vmem:[%s12554_s1 + $0x14] sm:$0xf] }
 0x186   : > { %v10155_v42 = vsel %vm1249_vm4, %v1321_v16, %v1323_v33  ;;  %v562_v16 = vld [vmem:[%s12554_s1 + $0x18] sm:$0xf] }
 0x187   : > { %8176 = vmatmul.mubr.msk.f32.gmra.mrb[26].mxu0 %vm671_vm2, %v10132_v36 }
 0x188   : > { %8178 = vmatprep.mubr.msk.f32.mxu0 %vm671_vm2, %v10137_v19 }
 0x18b   : > { %8179 = vmatmul.mubr.msk.f32.gmra.mrb[28].mxu0 %vm671_vm2, %v10145_v2 }
 0x18c   : > { %8181 = vmatprep.mubr.msk.f32.mxu0 %vm671_vm2, %v10150_v51 }
 0x18f   : > { %8182 = vmatmul.mubr.msk.f32.gmra.mrb[30].mxu0 %vm671_vm2, %v10155_v42 }
 0x190   : > { %8186 = vmatprep.mubr.msk.f32.mxu0 %vm671_vm2, %v9547_v18 }
 0x193   : > { %8187 = vmatmul.mubr.msk.f32.vlgmr.msra.gmra.mrb[0].mxu0 %vm671_vm2, %v9541_v14  ;;  %v345_v14 = vpop.trf.xlu0 }
 0x194   : > { %8235 = vmatpush3.msk.msra.mxu0 %vm732_vm0, %v9969_v21  ;;  %8189 = vmatprep.mubr.msk.f32.mxu0 %vm671_vm2, %v9544_v15  ;;  %v378_v18 = vrot.slane %v345_v14, 1  ;;  %v457_v21 = vrot.slane %v345_v14, 7  ;;  %v12761_v14 = vld [vmem:[#allocation9_spill] sm:$0xff] }
 0x195   : > { %8284 = vmatprep.subr.msk.mxu0 %vm732_vm0, %v561_v56 }
 0x196   : > { %v10224_v33 = vsel %vm411_vm1, %v378_v18, %v457_v21  ;;  %v12762_v18 = vld [vmem:[#allocation10_spill] sm:$0xff] }
 0x197   : > { %8190 = vmatmul.mubr.msk.f32.gmra.mrb[2].mxu0 %vm671_vm2, %v9553_v20  ;;  %v346_v41 = vpop.trf.xlu0 }
 0x198   : > { %8192 = vmatprep.mubr.msk.f32.mxu0 %vm671_vm2, %v9588_v38  ;;  %v458_v46 = vrot.slane %v346_v41, 7 }
 0x19a   : > { %v10231_v29 = vsel %vm411_vm1, %v457_v21, %v458_v46  ;;  %v12763_v21 = vld [vmem:[#allocation11_spill] sm:$0xff] }
 0x19b   : > { %8193 = vmatmul.mubr.msk.f32.gmra.mrb[4].mxu0 %vm671_vm2, %v9591_v39 }
 0x19c   : > { %8195 = vmatprep.mubr.msk.f32.mxu0 %vm671_vm2, %v9612_v50 }
 0x19f   : > { %8196 = vmatmul.mubr.msk.f32.gmra.mrb[6].mxu0 %vm671_vm2, %v9617_v53 }
 0x1a0   : > { %8198 = vmatprep.mubr.msk.f32.mxu0 %vm671_vm2, %v9641_v1 }
 0x1a3   : > { %8199 = vmatmul.mubr.msk.f32.gmra.mrb[8].mxu0 %vm671_vm2, %v9644_v5 }
 0x1a4   : > { %8201 = vmatprep.mubr.msk.f32.mxu0 %vm671_vm2, %v9663_v22 }
 0x1a7   : > { %8202 = vmatmul.mubr.msk.f32.gmra.mrb[10].mxu0 %vm671_vm2, %v9666_v25 }
 0x1a8   : > { %8204 = vmatprep.mubr.msk.f32.mxu0 %vm671_vm2, %v9685_v44 }
 0x1ab   : > { %8205 = vmatmul.mubr.msk.f32.gmra.mrb[12].mxu0 %vm671_vm2, %v9688_v47 }
 0x1ac   : > { %8207 = vmatprep.mubr.msk.f32.mxu0 %vm671_vm2, %v9707_v3 }
 0x1af   : > { %8208 = vmatmul.mubr.msk.f32.gmra.mrb[14].mxu0 %vm671_vm2, %v9710_v8 }
 0x1b0   : > { %8210 = vmatprep.mubr.msk.f32.mxu0 %vm671_vm2, %v9729_v32 }
 0x1b3   : > { %8211 = vmatmul.mubr.msk.f32.gmra.mrb[16].mxu0 %vm671_vm2, %v9732_v43 }
 0x1b4   : > { %8213 = vmatprep.mubr.msk.f32.mxu0 %vm671_vm2, %v9751_v7 }
 0x1b7   : > { %8214 = vmatmul.mubr.msk.f32.gmra.mrb[18].mxu0 %vm671_vm2, %v9754_v12 }
 0x1b8   : > { %8216 = vmatprep.mubr.msk.f32.mxu0 %vm671_vm2, %v9773_v57 }
 0x1bb   : > { %8217 = vmatmul.mubr.msk.f32.gmra.mrb[20].mxu0 %vm671_vm2, %v9776_v10 }
 0x1bc   : > { %8219 = vmatprep.mubr.msk.f32.mxu0 %vm671_vm2, %v9795_v58 }
 0x1bf   : > { %8220 = vmatmul.mubr.msk.f32.gmra.mrb[22].mxu0 %vm671_vm2, %v9798_v24 }
 0x1c0   : > { %8222 = vmatprep.mubr.msk.f32.mxu0 %vm671_vm2, %v9817_v52 }
 0x1c3   : > { %8223 = vmatmul.mubr.msk.f32.gmra.mrb[24].mxu0 %vm671_vm2, %v9820_v34 }
 0x1c4   : > { %8225 = vmatprep.mubr.msk.f32.mxu0 %vm671_vm2, %v9839_v59 }
 0x1c7   : > { %8226 = vmatmul.mubr.msk.f32.gmra.mrb[26].mxu0 %vm671_vm2, %v9842_v23 }
 0x1c8   : > { %8228 = vmatprep.mubr.msk.f32.mxu0 %vm671_vm2, %v9861_v61 }
 0x1cb   : > { %8229 = vmatmul.mubr.msk.f32.gmra.mrb[28].mxu0 %vm671_vm2, %v9864_v0 }
 0x1cc   : > { %8231 = vmatprep.mubr.msk.f32.mxu0 %vm671_vm2, %v10224_v33 }
 0x1cf   : > { %8232 = vmatmul.mubr.msk.f32.gmra.mrb[30].mxu0 %vm671_vm2, %v10231_v29 }
 0x1d0   : > { %8236 = vmatprep.mubr.msk.f32.mxu0 %vm671_vm2, %v9580_v35  ;;  %v12757_v35 = vld [vmem:[#allocation5_spill] sm:$0xff] }
 0x1d3   : > { %8237 = vmatmul.mubr.msk.f32.vlgmr.msra.gmra.mrb[0].mxu0 %vm671_vm2, %v9594_v40  ;;  %v12758_v40 = vld [vmem:[#allocation6_spill] sm:$0xff] }
 0x1d4   : > { %8285 = vmatpush3.msk.msra.mxu0 %vm732_vm0, %v561_v56  ;;  %8239 = vmatprep.mubr.msk.f32.mxu0 %vm671_vm2, %v9563_v27  ;;  %v12760_v56 = vld [vmem:[#allocation8_spill] sm:$0xff] }
 0x1d5   : > { %8334 = vmatprep.subr.msk.mxu0 %vm732_vm0, %v562_v16 }
 0x1d7   : > { %8240 = vmatmul.mubr.msk.f32.gmra.mrb[2].mxu0 %vm671_vm2, %v9566_v28 }
 0x1d8   : > { %8242 = vmatprep.mubr.msk.f32.mxu0 %vm671_vm2, %v9609_v49 }
 0x1db   : > { %8243 = vmatmul.mubr.msk.f32.gmra.mrb[4].mxu0 %vm671_vm2, %v9623_v55 }
 0x1dc   : > { %8245 = vmatprep.mubr.msk.f32.mxu0 %vm671_vm2, %v9631_v62 }
 0x1df   : > { %8246 = vmatmul.mubr.msk.f32.gmra.mrb[6].mxu0 %vm671_vm2, %v9634_v63  ;;  %v1912_v63 = vrot.slane %v10231_v29, 1 }
 0x1e0   : > { %8248 = vmatprep.mubr.msk.f32.mxu0 %vm671_vm2, %v9653_v13  ;;  %v12764_v13 = vld [vmem:[#allocation12_spill] sm:$0xff] }
 0x1e3   : > { %8249 = vmatmul.mubr.msk.f32.gmra.mrb[8].mxu0 %vm671_vm2, %v12757_v35  ;;  %v12765_v35 = vld [vmem:[#allocation13_spill] sm:$0xff] }
 0x1e4   : > { %8251 = vmatprep.mubr.msk.f32.mxu0 %vm671_vm2, %v12758_v40  ;;  %v12766_v40 = vld [vmem:[#allocation14_spill] sm:$0xff] }
 0x1e7   : > { %8252 = vmatmul.mubr.msk.f32.gmra.mrb[10].mxu0 %vm671_vm2, %v12759_v4  ;;  %v12767_v4 = vld [vmem:[#allocation15_spill] sm:$0xff] }
 0x1e8   : > { %8254 = vmatprep.mubr.msk.f32.mxu0 %vm671_vm2, %v12760_v56  ;;  %v12768_v56 = vld [vmem:[#allocation16_spill] sm:$0xff] }
 0x1eb   : > { %8255 = vmatmul.mubr.msk.f32.gmra.mrb[12].mxu0 %vm671_vm2, %v12761_v14  ;;  %v12769_v14 = vld [vmem:[#allocation17_spill] sm:$0xff] }
 0x1ec   : > { %8257 = vmatprep.mubr.msk.f32.mxu0 %vm671_vm2, %v12762_v18  ;;  %v12770_v18 = vld [vmem:[#allocation18_spill] sm:$0xff] }
 0x1ef   : > { %8258 = vmatmul.mubr.msk.f32.gmra.mrb[14].mxu0 %vm671_vm2, %v12763_v21  ;;  %v12771_v21 = vld [vmem:[#allocation19_spill] sm:$0xff] }
 0x1f0   : > { %8260 = vmatprep.mubr.msk.f32.mxu0 %vm671_vm2, %v12764_v13  ;;  %v12772_v13 = vld [vmem:[#allocation20_spill] sm:$0xff] }
 0x1f3   : > { %8261 = vmatmul.mubr.msk.f32.gmra.mrb[16].mxu0 %vm671_vm2, %v12765_v35  ;;  %v507_v35 = vrot.slane %v346_v41, 5  ;;  %v12776_v41 = vld [vmem:[#allocation24_spill] sm:$0xff] }
 0x1f4   : > { %8263 = vmatprep.mubr.msk.f32.mxu0 %vm671_vm2, %v12766_v40  ;;  %v12773_v40 = vld [vmem:[#allocation21_spill] sm:$0xff] }
 0x1f7   : > { %8264 = vmatmul.mubr.msk.f32.gmra.mrb[18].mxu0 %vm671_vm2, %v12767_v4  ;;  %v12774_v4 = vld [vmem:[#allocation22_spill] sm:$0xff] }
 0x1f8   : > { %8266 = vmatprep.mubr.msk.f32.mxu0 %vm671_vm2, %v12768_v56  ;;  %v555_v56 = vsel %vm411_vm1, %v458_v46, %v507_v35  ;;  %v563_v35 = vld [vmem:[%s12554_s1 + $0x1c] sm:$0xf] }
 0x1fb   : > { %8267 = vmatmul.mubr.msk.f32.gmra.mrb[20].mxu0 %vm671_vm2, %v12769_v14  ;;  %v1911_v14 = vrot.slane %v10224_v33, 1 }
 0x1fc   : > { %8269 = vmatprep.mubr.msk.f32.mxu0 %vm671_vm2, %v12770_v18  ;;  %v12775_v18 = vld [vmem:[#allocation23_spill] sm:$0xff] }
 0x1ff   : > { %8270 = vmatmul.mubr.msk.f32.gmra.mrb[22].mxu0 %vm671_vm2, %v12771_v21 }
 0x200   : > { %8272 = vmatprep.mubr.msk.f32.mxu0 %vm671_vm2, %v12772_v13  ;;  %v1914_v13 = vrot.slane %v555_v56, 1 }
 0x202   : > { %v10309_v46 = vsel %vm595_vm3, %v1912_v63, %v1914_v13  ;;  %v12780_v13 = vld [vmem:[#allocation28_spill] sm:$0xff] }
 0x203   : > { %8273 = vmatmul.mubr.msk.f32.gmra.mrb[24].mxu0 %vm671_vm2, %v12773_v40  ;;  %v10304_v40 = vsel %vm595_vm3, %v1911_v14, %v1912_v63  ;;  %v12778_v14 = vld [vmem:[#allocation25_spill] sm:$0xff]  ;;  %v12779_v63 = vld [vmem:[#allocation26_spill] sm:$0xff] }
 0x204   : > { %8275 = vmatprep.mubr.msk.f32.mxu0 %vm671_vm2, %v12774_v4 }
 0x207   : > { %8276 = vmatmul.mubr.msk.f32.gmra.mrb[26].mxu0 %vm671_vm2, %v12775_v18 }
 0x208   : > { %8278 = vmatprep.mubr.msk.f32.mxu0 %vm671_vm2, %v9873_v30 }
 0x20b   : > { %8279 = vmatmul.mubr.msk.f32.gmra.mrb[28].mxu0 %vm671_vm2, %v12776_v41  ;;  %v12777_v41 = vld [vmem:[#allocation27_spill] sm:$0xff] }
 0x20c   : > { %8281 = vmatprep.mubr.msk.f32.mxu0 %vm671_vm2, %v10304_v40 }
 0x20f   : > { %8282 = vmatmul.mubr.msk.f32.gmra.mrb[30].mxu0 %vm671_vm2, %v10309_v46 }
 0x210   : > { %8286 = vmatprep.mubr.msk.f32.mxu0 %vm671_vm2, %v9974_v37  ;;  %v12781_v37 = vld [vmem:[#allocation29_spill] sm:$0xff] }
 0x213   : > { %8287 = vmatmul.mubr.msk.f32.vlgmr.msra.gmra.mrb[0].mxu0 %vm671_vm2, %v12777_v41  ;;  %v12783_v41 = vld [vmem:[#allocation31_spill] sm:$0xff] }
 0x214   : > { %8335 = vmatpush3.msk.msra.mxu0 %vm732_vm0, %v562_v16  ;;  %8289 = vmatprep.mubr.msk.f32.mxu0 %vm671_vm2, %v12778_v14  ;;  %v12782_v16 = vld [vmem:[#allocation30_spill] sm:$0xff] }
 0x215   : > { %8384 = vmatprep.subr.msk.mxu0 %vm732_vm0, %v563_v35 }
 0x217   : > { %8290 = vmatmul.mubr.msk.f32.gmra.mrb[2].mxu0 %vm671_vm2, %v12779_v63 }
 0x218   : > { %8292 = vmatprep.mubr.msk.f32.mxu0 %vm671_vm2, %v12780_v13  ;;  %v12784_v13 = vld [vmem:[#allocation32_spill] sm:$0xff] }
 0x21b   : > { %8293 = vmatmul.mubr.msk.f32.gmra.mrb[4].mxu0 %vm671_vm2, %v10002_v60 }
 0x21c   : > { %8295 = vmatprep.mubr.msk.f32.mxu0 %vm671_vm2, %v12781_v37  ;;  %v12785_v37 = vld [vmem:[#allocation33_spill] sm:$0xff] }
 0x21f   : > { %8296 = vmatmul.mubr.msk.f32.gmra.mrb[6].mxu0 %vm671_vm2, %v10015_v54 }
 0x220   : > { %8298 = vmatprep.mubr.msk.f32.mxu0 %vm671_vm2, %v12782_v16  ;;  %v12786_v16 = vld [vmem:[#allocation34_spill] sm:$0xff] }
 0x223   : > { %8299 = vmatmul.mubr.msk.f32.gmra.mrb[8].mxu0 %vm671_vm2, %v10028_v6 }
 0x224   : > { %8301 = vmatprep.mubr.msk.f32.mxu0 %vm671_vm2, %v12783_v41  ;;  %v12787_v41 = vld [vmem:[#allocation35_spill] sm:$0xff] }
 0x227   : > { %8302 = vmatmul.mubr.msk.f32.gmra.mrb[10].mxu0 %vm671_vm2, %v10041_v26 }
 0x228   : > { %8304 = vmatprep.mubr.msk.f32.mxu0 %vm671_vm2, %v12784_v13  ;;  %v12788_v13 = vld [vmem:[#allocation37_spill] sm:$0xff] }
 0x22b   : > { %8305 = vmatmul.mubr.msk.f32.gmra.mrb[12].mxu0 %vm671_vm2, %v10054_v48 }
 0x22c   : > { %8307 = vmatprep.mubr.msk.f32.mxu0 %vm671_vm2, %v12785_v37  ;;  %v12789_v37 = vld [vmem:[#allocation38_spill] sm:$0xff] }
 0x22f   : > { %8308 = vmatmul.mubr.msk.f32.gmra.mrb[14].mxu0 %vm671_vm2, %v10067_v9 }
 0x230   : > { %8310 = vmatprep.mubr.msk.f32.mxu0 %vm671_vm2, %v12786_v16  ;;  %v12790_v16 = vld [vmem:[#allocation40_spill] sm:$0xff] }
 0x233   : > { %8311 = vmatmul.mubr.msk.f32.gmra.mrb[16].mxu0 %vm671_vm2, %v10080_v45 }
 0x234   : > { %8313 = vmatprep.mubr.msk.f32.mxu0 %vm671_vm2, %v12787_v41 }
 0x237   : > { %8314 = vmatmul.mubr.msk.f32.gmra.mrb[18].mxu0 %vm671_vm2, %v10093_v17  ;;  %v2181_v17 = vrot.slane %v10231_v29, 2 }
 0x238   : > { %8316 = vmatprep.mubr.msk.f32.mxu0 %vm671_vm2, %v12788_v13  ;;  %v2180_v13 = vrot.slane %v10224_v33, 2 }
 0x23b   : > { %8317 = vmatmul.mubr.msk.f32.gmra.mrb[20].mxu0 %vm671_vm2, %v10106_v11 }
 0x23c   : > { %8319 = vmatprep.mubr.msk.f32.mxu0 %vm671_vm2, %v12789_v37 }
 0x23f   : > { %8320 = vmatmul.mubr.msk.f32.gmra.mrb[22].mxu0 %vm671_vm2, %v10119_v31  ;;  %v2183_v31 = vrot.slane %v555_v56, 2  ;;  %v564_v56 = vld [vmem:[%s12554_s1 + $0x20] sm:$0xf] }
 0x240   : > { %8322 = vmatprep.mubr.msk.f32.mxu0 %vm671_vm2, %v12790_v16  ;;  %v10381_v16 = vsel %vm1249_vm4, %v2180_v13, %v2181_v17 }
 0x243   : > { %8323 = vmatmul.mubr.msk.f32.gmra.mrb[24].mxu0 %vm671_vm2, %v10132_v36 }
 0x244   : > { %8325 = vmatprep.mubr.msk.f32.mxu0 %vm671_vm2, %v10137_v19  ;;  %v10386_v19 = vsel %vm1249_vm4, %v2181_v17, %v2183_v31 }
 0x247   : > { %8326 = vmatmul.mubr.msk.f32.gmra.mrb[26].mxu0 %vm671_vm2, %v10145_v2 }
 0x248   : > { %8328 = vmatprep.mubr.msk.f32.mxu0 %vm671_vm2, %v10150_v51 }
 0x24b   : > { %8329 = vmatmul.mubr.msk.f32.gmra.mrb[28].mxu0 %vm671_vm2, %v10155_v42 }
 0x24c   : > { %8331 = vmatprep.mubr.msk.f32.mxu0 %vm671_vm2, %v10381_v16 }
 0x24f   : > { %8332 = vmatmul.mubr.msk.f32.gmra.mrb[30].mxu0 %vm671_vm2, %v10386_v19 }
 0x250   : > { %8336 = vmatprep.mubr.msk.f32.mxu0 %vm671_vm2, %v9544_v15  ;;  %v12791_v15 = vld [vmem:[#allocation3_spill] sm:$0xff] }
 0x253   : > { %8337 = vmatmul.mubr.msk.f32.vlgmr.msra.gmra.mrb[0].mxu0 %vm671_vm2, %v9553_v20  ;;  %v12792_v20 = vld [vmem:[#allocation4_spill] sm:$0xff] }
 0x254   : > { %8385 = vmatpush3.msk.msra.mxu0 %vm732_vm0, %v563_v35  ;;  %8339 = vmatprep.mubr.msk.f32.mxu0 %vm671_vm2, %v9588_v38  ;;  %v12795_v38 = vld [vmem:[#allocation7_spill] sm:$0xff] }
 0x255   : > { %8434 = vmatprep.subr.msk.mxu0 %vm732_vm0, %v564_v56 }
 0x257   : > { %8340 = vmatmul.mubr.msk.f32.gmra.mrb[2].mxu0 %vm671_vm2, %v9591_v39  ;;  %v12796_v39 = vld [vmem:[#allocation8_spill] sm:$0xff] }
 0x258   : > { %8342 = vmatprep.mubr.msk.f32.mxu0 %vm671_vm2, %v9612_v50  ;;  %v12798_v50 = vld [vmem:[#allocation10_spill] sm:$0xff] }
 0x25b   : > { %8343 = vmatmul.mubr.msk.f32.gmra.mrb[4].mxu0 %vm671_vm2, %v9617_v53  ;;  %v12799_v53 = vld [vmem:[#allocation11_spill] sm:$0xff] }
 0x25c   : > { %8345 = vmatprep.mubr.msk.f32.mxu0 %vm671_vm2, %v9641_v1  ;;  %v12802_v1 = vld [vmem:[#allocation14_spill] sm:$0xff] }
 0x25f   : > { %8346 = vmatmul.mubr.msk.f32.gmra.mrb[6].mxu0 %vm671_vm2, %v9644_v5  ;;  %v12803_v5 = vld [vmem:[#allocation15_spill] sm:$0xff] }
 0x260   : > { %8348 = vmatprep.mubr.msk.f32.mxu0 %vm671_vm2, %v9663_v22  ;;  %v12804_v22 = vld [vmem:[#allocation16_spill] sm:$0xff] }
 0x263   : > { %8349 = vmatmul.mubr.msk.f32.gmra.mrb[8].mxu0 %vm671_vm2, %v9666_v25  ;;  %v12805_v25 = vld [vmem:[#allocation17_spill] sm:$0xff] }
 0x264   : > { %8351 = vmatprep.mubr.msk.f32.mxu0 %vm671_vm2, %v9685_v44  ;;  %v12806_v44 = vld [vmem:[#allocation18_spill] sm:$0xff] }
 0x267   : > { %8352 = vmatmul.mubr.msk.f32.gmra.mrb[10].mxu0 %vm671_vm2, %v9688_v47  ;;  %v12807_v47 = vld [vmem:[#allocation20_spill] sm:$0xff] }
 0x268   : > { %8354 = vmatprep.mubr.msk.f32.mxu0 %vm671_vm2, %v9707_v3  ;;  %v12808_v3 = vld [vmem:[#allocation21_spill] sm:$0xff] }
 0x26b   : > { %8355 = vmatmul.mubr.msk.f32.gmra.mrb[12].mxu0 %vm671_vm2, %v9710_v8  ;;  %v12809_v8 = vld [vmem:[#allocation24_spill] sm:$0xff] }
 0x26c   : > { %8357 = vmatprep.mubr.msk.f32.mxu0 %vm671_vm2, %v9729_v32  ;;  %v12810_v32 = vld [vmem:[#allocation28_spill] sm:$0xff] }
 0x26f   : > { %8358 = vmatmul.mubr.msk.f32.gmra.mrb[14].mxu0 %vm671_vm2, %v9732_v43  ;;  %v12811_v43 = vld [vmem:[#allocation29_spill] sm:$0xff] }
 0x270   : > { %8360 = vmatprep.mubr.msk.f32.mxu0 %vm671_vm2, %v9751_v7  ;;  %v12812_v7 = vld [vmem:[#allocation30_spill] sm:$0xff] }
 0x273   : > { %8361 = vmatmul.mubr.msk.f32.gmra.mrb[16].mxu0 %vm671_vm2, %v9754_v12  ;;  %v12813_v12 = vld [vmem:[#allocation31_spill] sm:$0xff] }
 0x274   : > { %8363 = vmatprep.mubr.msk.f32.mxu0 %vm671_vm2, %v9773_v57  ;;  %v12814_v57 = vld [vmem:[#allocation32_spill] sm:$0xff] }
 0x277   : > { %8364 = vmatmul.mubr.msk.f32.gmra.mrb[18].mxu0 %vm671_vm2, %v9776_v10  ;;  %v12815_v10 = vld [vmem:[#allocation33_spill] sm:$0xff] }
 0x278   : > { %8366 = vmatprep.mubr.msk.f32.mxu0 %vm671_vm2, %v9795_v58  ;;  %v12816_v58 = vld [vmem:[#allocation34_spill] sm:$0xff] }
 0x27b   : > { %8367 = vmatmul.mubr.msk.f32.gmra.mrb[20].mxu0 %vm671_vm2, %v9798_v24  ;;  %v12817_v24 = vld [vmem:[#allocation36_spill] sm:$0xff] }
 0x27c   : > { %8369 = vmatprep.mubr.msk.f32.mxu0 %vm671_vm2, %v9817_v52  ;;  %v12818_v52 = vld [vmem:[#allocation37_spill] sm:$0xff] }
 0x27f   : > { %8370 = vmatmul.mubr.msk.f32.gmra.mrb[22].mxu0 %vm671_vm2, %v9820_v34  ;;  %v12819_v34 = vld [vmem:[#allocation39_spill] sm:$0xff] }
 0x280   : > { %8372 = vmatprep.mubr.msk.f32.mxu0 %vm671_vm2, %v9839_v59  ;;  %v12820_v59 = vld [vmem:[#allocation40_spill] sm:$0xff] }
 0x283   : > { %8373 = vmatmul.mubr.msk.f32.gmra.mrb[24].mxu0 %vm671_vm2, %v9842_v23  ;;  %v12821_v23 = vld [vmem:[#allocation41_spill] sm:$0xff] }
 0x284   : > { %8375 = vmatprep.mubr.msk.f32.mxu0 %vm671_vm2, %v9861_v61 }
 0x287   : > { %8376 = vmatmul.mubr.msk.f32.gmra.mrb[26].mxu0 %vm671_vm2, %v9864_v0 }
 0x288   : > { %8378 = vmatprep.mubr.msk.f32.mxu0 %vm671_vm2, %v10224_v33 }
 0x28b   : > { %8379 = vmatmul.mubr.msk.f32.gmra.mrb[28].mxu0 %vm671_vm2, %v10231_v29 }
 0x28c   : > { %8381 = vmatprep.mubr.msk.f32.mxu0 %vm671_vm2, %v9861_v61 }
 0x28f   : > { %8382 = vmatmul.mubr.msk.f32.gmra.mrb[30].mxu0 %vm671_vm2, %v9864_v0 }
 0x290   : > { %8386 = vmatprep.mubr.msk.f32.mxu0 %vm671_vm2, %v9563_v27  ;;  %v12793_v27 = vld [vmem:[#allocation5_spill] sm:$0xff] }
 0x293   : > { %8387 = vmatmul.mubr.msk.f32.vlgmr.msra.gmra.mrb[0].mxu0 %vm671_vm2, %v9566_v28  ;;  %v12794_v28 = vld [vmem:[#allocation6_spill] sm:$0xff] }
 0x294   : > { %8435 = vmatpush3.msk.msra.mxu0 %vm732_vm0, %v564_v56  ;;  %8389 = vmatprep.mubr.msk.f32.mxu0 %vm671_vm2, %v9609_v49  ;;  %v12797_v49 = vld [vmem:[#allocation9_spill] sm:$0xff] }
 0x297   : > { %8390 = vmatmul.mubr.msk.f32.gmra.mrb[2].mxu0 %vm671_vm2, %v9623_v55  ;;  %v12800_v55 = vld [vmem:[#allocation12_spill] sm:$0xff] }
 0x298   : > { %8392 = vmatprep.mubr.msk.f32.mxu0 %vm671_vm2, %v9631_v62  ;;  %v12801_v62 = vld [vmem:[#allocation13_spill] sm:$0xff] }
 0x29b   : > { %8393 = vmatmul.mubr.msk.f32.gmra.mrb[4].mxu0 %vm671_vm2, %v12791_v15 }
 0x29c   : > { %8395 = vmatprep.mubr.msk.f32.mxu0 %vm671_vm2, %v12792_v20 }
 0x29f   : > { %8396 = vmatmul.mubr.msk.f32.gmra.mrb[6].mxu0 %vm671_vm2, %v12793_v27 }
 0x2a0   : > { %8398 = vmatprep.mubr.msk.f32.mxu0 %vm671_vm2, %v12794_v28 }
 0x2a3   : > { %8399 = vmatmul.mubr.msk.f32.gmra.mrb[8].mxu0 %vm671_vm2, %v12795_v38 }
 0x2a4   : > { %8401 = vmatprep.mubr.msk.f32.mxu0 %vm671_vm2, %v12796_v39 }
 0x2a7   : > { %8402 = vmatmul.mubr.msk.f32.gmra.mrb[10].mxu0 %vm671_vm2, %v12797_v49 }
 0x2a8   : > { %8404 = vmatprep.mubr.msk.f32.mxu0 %vm671_vm2, %v12798_v50 }
 0x2ab   : > { %8405 = vmatmul.mubr.msk.f32.gmra.mrb[12].mxu0 %vm671_vm2, %v12799_v53 }
 0x2ac   : > { %8407 = vmatprep.mubr.msk.f32.mxu0 %vm671_vm2, %v12800_v55 }
 0x2af   : > { %8408 = vmatmul.mubr.msk.f32.gmra.mrb[14].mxu0 %vm671_vm2, %v12801_v62 }
 0x2b0   : > { %8410 = vmatprep.mubr.msk.f32.mxu0 %vm671_vm2, %v12802_v1 }
 0x2b3   : > { %8411 = vmatmul.mubr.msk.f32.gmra.mrb[16].mxu0 %vm671_vm2, %v12803_v5 }
 0x2b4   : > { %8413 = vmatprep.mubr.msk.f32.mxu0 %vm671_vm2, %v12804_v22 }
 0x2b7   : > { %8414 = vmatmul.mubr.msk.f32.gmra.mrb[18].mxu0 %vm671_vm2, %v12805_v25 }
 0x2b8   : > { %8416 = vmatprep.mubr.msk.f32.mxu0 %vm671_vm2, %v12806_v44 }
 0x2bb   : > { %8417 = vmatmul.mubr.msk.f32.gmra.mrb[20].mxu0 %vm671_vm2, %v12771_v21 }
 0x2bc   : > { %8419 = vmatprep.mubr.msk.f32.mxu0 %vm671_vm2, %v12807_v47 }
 0x2bf   : > { %8420 = vmatmul.mubr.msk.f32.gmra.mrb[22].mxu0 %vm671_vm2, %v12808_v3 }
 0x2c0   : > { %8422 = vmatprep.mubr.msk.f32.mxu0 %vm671_vm2, %v12774_v4 }
 0x2c3   : > { %8423 = vmatmul.mubr.msk.f32.gmra.mrb[24].mxu0 %vm671_vm2, %v12775_v18 }
 0x2c4   : > { %8425 = vmatprep.mubr.msk.f32.mxu0 %vm671_vm2, %v9873_v30 }
 0x2c7   : > { %8426 = vmatmul.mubr.msk.f32.gmra.mrb[26].mxu0 %vm671_vm2, %v12809_v8 }
 0x2c8   : > { %8428 = vmatprep.mubr.msk.f32.mxu0 %vm671_vm2, %v10304_v40 }
 0x2cb   : > { %8429 = vmatmul.mubr.msk.f32.gmra.mrb[28].mxu0 %vm671_vm2, %v10309_v46 }
 0x2cc   : > { %8431 = vmatprep.mubr.msk.f32.mxu0 %vm671_vm2, %v9873_v30 }
 0x2cf   : > { %8432 = vmatmul.mubr.msk.f32.gmra.mrb[30].mxu0 %vm671_vm2, %v12809_v8 }
 0x2d0   : > { %8436 = vmatprep.mubr.msk.f32.mxu0 %vm671_vm2, %v12778_v14 }
 0x2d3   : > { %8437 = vmatmul.mubr.msk.f32.vlgmr.msra.gmra.mrb[0].mxu0 %vm671_vm2, %v12779_v63 }
 0x2d4   : > { %8439 = vmatprep.mubr.msk.f32.mxu0 %vm671_vm2, %v12810_v32 }
 0x2d7   : > { %8440 = vmatmul.mubr.msk.f32.gmra.mrb[2].mxu0 %vm671_vm2, %v10002_v60 }
 0x2d8   : > { %8442 = vmatprep.mubr.msk.f32.mxu0 %vm671_vm2, %v12811_v43 }
 0x2db   : > { %8443 = vmatmul.mubr.msk.f32.gmra.mrb[4].mxu0 %vm671_vm2, %v10015_v54 }
 0x2dc   : > { %8445 = vmatprep.mubr.msk.f32.mxu0 %vm671_vm2, %v12812_v7 }
 0x2df   : > { %8446 = vmatmul.mubr.msk.f32.gmra.mrb[6].mxu0 %vm671_vm2, %v10028_v6 }
 0x2e0   : > { %8448 = vmatprep.mubr.msk.f32.mxu0 %vm671_vm2, %v12813_v12 }
 0x2e3   : > { %8449 = vmatmul.mubr.msk.f32.gmra.mrb[8].mxu0 %vm671_vm2, %v10041_v26 }
 0x2e4   : > { %8451 = vmatprep.mubr.msk.f32.mxu0 %vm671_vm2, %v12814_v57 }
 0x2e7   : > { %8452 = vmatmul.mubr.msk.f32.gmra.mrb[10].mxu0 %vm671_vm2, %v10054_v48 }
 0x2e8   : > { %8454 = vmatprep.mubr.msk.f32.mxu0 %vm671_vm2, %v12815_v10 }
 0x2eb   : > { %8455 = vmatmul.mubr.msk.f32.gmra.mrb[12].mxu0 %vm671_vm2, %v10067_v9 }
 0x2ec   : > { %8457 = vmatprep.mubr.msk.f32.mxu0 %vm671_vm2, %v12816_v58 }
 0x2ef   : > { %8458 = vmatmul.mubr.msk.f32.gmra.mrb[14].mxu0 %vm671_vm2, %v10080_v45 }
 0x2f0   : > { %8460 = vmatprep.mubr.msk.f32.mxu0 %vm671_vm2, %v12787_v41 }
 0x2f3   : > { %8461 = vmatmul.mubr.msk.f32.gmra.mrb[16].mxu0 %vm671_vm2, %v12817_v24 }
 0x2f4   : > { %8463 = vmatprep.mubr.msk.f32.mxu0 %vm671_vm2, %v12818_v52 }
 0x2f7   : > { %8464 = vmatmul.mubr.msk.f32.gmra.mrb[18].mxu0 %vm671_vm2, %v10106_v11 }
 0x2f8   : > { %8466 = vmatprep.mubr.msk.f32.mxu0 %vm671_vm2, %v12789_v37 }
 0x2fb   : > { %8467 = vmatmul.mubr.msk.f32.gmra.mrb[20].mxu0 %vm671_vm2, %v12819_v34 }
 0x2fc   : > { %8469 = vmatprep.mubr.msk.f32.mxu0 %vm671_vm2, %v12820_v59 }
 0x2ff   : > { %8470 = vmatmul.mubr.msk.f32.gmra.mrb[22].mxu0 %vm671_vm2, %v10132_v36 }
 0x300   : > { %8472 = vmatprep.mubr.msk.f32.mxu0 %vm671_vm2, %v12821_v23 }
 0x303   : > { %8473 = vmatmul.mubr.msk.f32.gmra.mrb[24].mxu0 %vm671_vm2, %v10145_v2 }
 0x304   : > { %8475 = vmatprep.mubr.msk.f32.mxu0 %vm671_vm2, %v10150_v51 }
 0x307   : > { %8476 = vmatmul.mubr.msk.f32.gmra.mrb[26].mxu0 %vm671_vm2, %v10155_v42 }
 0x308   : > { %8478 = vmatprep.mubr.msk.f32.mxu0 %vm671_vm2, %v10381_v16 }
 0x30b   : > { %8479 = vmatmul.mubr.msk.f32.gmra.mrb[28].mxu0 %vm671_vm2, %v10386_v19 }
 0x30c   : > { %8481 = vmatprep.mubr.msk.f32.mxu0 %vm671_vm2, %v10150_v51 }
 0x30f   : > { %8482 = vmatmul.mubr.msk.f32.gmra.mrb[30].mxu0 %vm671_vm2, %v10155_v42 }
 0x3a6   : > { %v10588_v30 = vpop.f32.mrb[0].mxu0 }
 0x3a7   : > { %v3230_v61 = vsel %vm671_vm2, %v10588_v30, 0.0  ;;  %v10592_v0 = vpop.f32.mrb[1].mxu0 }
 0x3a8   : > { %v3229_v60 = vsel %vm671_vm2, %v10592_v0, 0.0 }
 0x3a9   : > { %v3231_v54 = vadd.f32 %v3230_v61, %v3229_v60 }
 0x3aa   : > { %v10596_v6 = vpop.f32.mrb[2].mxu0 }
 0x3ab   : > { %v10598_v26 = vpop.f32.mrb[3].mxu0  ;;  %v3234_v45 = vsel %vm671_vm2, %v10596_v6, 0.0 }
 0x3ac   : > { %v3232_v48 = vsel %vm671_vm2, %v10598_v26, 0.0 }
 0x3ad   : > { %v3233_v9 = vadd.f32 %v3232_v48, %v3231_v54 }
 0x3ae   : > { %v10604_v17 = vpop.f32.mrb[4].mxu0 }
 0x3af   : > { %v10606_v11 = vpop.f32.mrb[5].mxu0  ;;  %v3235_v31 = vadd.f32 %v3234_v45, %v3233_v9  ;;  %v3238_v2 = vsel %vm671_vm2, %v10604_v17, 0.0 }
 0x3b0   : > { %v3236_v36 = vsel %vm671_vm2, %v10606_v11, 0.0 }
 0x3b1   : > { %v3237_v19 = vadd.f32 %v3236_v36, %v3235_v31 }
 0x3b2   : > { %v10612_v51 = vpop.f32.mrb[6].mxu0 }
 0x3b3   : > { %v10614_v42 = vpop.f32.mrb[7].mxu0  ;;  %v3239_v33 = vadd.f32 %v3238_v2, %v3237_v19  ;;  %v3242_v4 = vsel %vm671_vm2, %v10612_v51, 0.0 }
 0x3b4   : > { %v3240_v29 = vsel %vm671_vm2, %v10614_v42, 0.0 }
 0x3b5   : > { %v3241_v40 = vadd.f32 %v3240_v29, %v3239_v33 }
 0x3b6   : > { %v10620_v18 = vpop.f32.mrb[8].mxu0 }
 0x3b7   : > { %v10622_v21 = vpop.f32.mrb[9].mxu0  ;;  %v3243_v46 = vadd.f32 %v3242_v4, %v3241_v40  ;;  %v3246_v63 = vsel %vm671_vm2, %v10620_v18, 0.0 }
 0x3b8   : > { %v3244_v35 = vsel %vm671_vm2, %v10622_v21, 0.0 }
 0x3b9   : > { %v3245_v14 = vadd.f32 %v3244_v35, %v3243_v46 }
 0x3ba   : > { %v10628_v13 = vpop.f32.mrb[10].mxu0 }
 0x3bb   : > { %v10630_v37 = vpop.f32.mrb[11].mxu0  ;;  %v3247_v16 = vadd.f32 %v3246_v63, %v3245_v14  ;;  %v3250_v15 = vsel %vm671_vm2, %v10628_v13, 0.0 }
 0x3bc   : > { %v3248_v41 = vsel %vm671_vm2, %v10630_v37, 0.0 }
 0x3bd   : > { %v3249_v56 = vadd.f32 %v3248_v41, %v3247_v16 }
 0x3be   : > { %v10636_v20 = vpop.f32.mrb[12].mxu0 }
 0x3bf   : > { %v10638_v27 = vpop.f32.mrb[13].mxu0  ;;  %v3251_v28 = vadd.f32 %v3250_v15, %v3249_v56  ;;  %v3254_v49 = vsel %vm671_vm2, %v10636_v20, 0.0 }
 0x3c0   : > { %v3252_v38 = vsel %vm671_vm2, %v10638_v27, 0.0 }
 0x3c1   : > { %v3253_v39 = vadd.f32 %v3252_v38, %v3251_v28 }
 0x3c2   : > { %v10644_v50 = vpop.f32.mrb[14].mxu0 }
 0x3c3   : > { %v10646_v53 = vpop.f32.mrb[15].mxu0  ;;  %v3255_v55 = vadd.f32 %v3254_v49, %v3253_v39  ;;  %v3258_v5 = vsel %vm671_vm2, %v10644_v50, 0.0 }
 0x3c4   : > { %v3256_v62 = vsel %vm671_vm2, %v10646_v53, 0.0 }
 0x3c5   : > { %v3257_v1 = vadd.f32 %v3256_v62, %v3255_v55 }
 0x3c6   : > { %v10652_v22 = vpop.f32.mrb[16].mxu0 }
 0x3c7   : > { %v10654_v25 = vpop.f32.mrb[17].mxu0  ;;  %v3259_v44 = vadd.f32 %v3258_v5, %v3257_v1  ;;  %v3262_v8 = vsel %vm671_vm2, %v10652_v22, 0.0 }
 0x3c8   : > { %v3260_v47 = vsel %vm671_vm2, %v10654_v25, 0.0 }
 0x3c9   : > { %v3261_v3 = vadd.f32 %v3260_v47, %v3259_v44 }
 0x3ca   : > { %v10660_v32 = vpop.f32.mrb[18].mxu0 }
 0x3cb   : > { %v10662_v43 = vpop.f32.mrb[19].mxu0  ;;  %v3263_v7 = vadd.f32 %v3262_v8, %v3261_v3  ;;  %v3266_v10 = vsel %vm671_vm2, %v10660_v32, 0.0 }
 0x3cc   : > { %v3264_v12 = vsel %vm671_vm2, %v10662_v43, 0.0 }
 0x3cd   : > { %v3265_v57 = vadd.f32 %v3264_v12, %v3263_v7 }
 0x3ce   : > { %v10668_v58 = vpop.f32.mrb[20].mxu0 }
 0x3cf   : > { %v10670_v24 = vpop.f32.mrb[21].mxu0  ;;  %v3267_v52 = vadd.f32 %v3266_v10, %v3265_v57  ;;  %v3270_v23 = vsel %vm671_vm2, %v10668_v58, 0.0 }
 0x3d0   : > { %v3268_v34 = vsel %vm671_vm2, %v10670_v24, 0.0 }
 0x3d1   : > { %v3269_v59 = vadd.f32 %v3268_v34, %v3267_v52 }
 0x3d2   : > { %v8471_v61 = vpop.f32.mrb[22].mxu0 }
 0x3d3   : > { %v3148_v60 = vpop.f32.mrb[23].mxu0  ;;  %v3271_v54 = vadd.f32 %v3270_v23, %v3269_v59  ;;  %v3274_v45 = vsel %vm671_vm2, %v8471_v61, 0.0 }
 0x3d4   : > { %v3272_v48 = vsel %vm671_vm2, %v3148_v60, 0.0 }
 0x3d5   : > { %v3273_v9 = vadd.f32 %v3272_v48, %v3271_v54 }
 0x3d6   : > { %v8474_v31 = vpop.f32.mrb[24].mxu0 }
 0x3d7   : > { %v3158_v36 = vpop.f32.mrb[25].mxu0  ;;  %v3275_v19 = vadd.f32 %v3274_v45, %v3273_v9  ;;  %v3278_v29 = vsel %vm671_vm2, %v8474_v31, 0.0 }
 0x3d8   : > { %v3276_v2 = vsel %vm671_vm2, %v3158_v36, 0.0 }
 0x3d9   : > { %v3277_v33 = vadd.f32 %v3276_v2, %v3275_v19 }
 0x3da   : > { %v8477_v40 = vpop.f32.mrb[26].mxu0 }
 0x3db   : > { %v3168_v4 = vpop.f32.mrb[27].mxu0  ;;  %v3279_v46 = vadd.f32 %v3278_v29, %v3277_v33  ;;  %v3282_v63 = vsel %vm671_vm2, %v8477_v40, 0.0 }
 0x3dc   : > { %v3280_v35 = vsel %vm671_vm2, %v3168_v4, 0.0 }
 0x3dd   : > { %v3281_v14 = vadd.f32 %v3280_v35, %v3279_v46 }
 0x3de   : > { %v8480_v16 = vpop.f32.mrb[28].mxu0 }
 0x3df   : > { %v3178_v41 = vpop.f32.mrb[29].mxu0  ;;  %v3283_v56 = vadd.f32 %v3282_v63, %v3281_v14  ;;  %v3286_v38 = vsel %vm671_vm2, %v8480_v16, 0.0 }
 0x3e0   : > { %v3284_v15 = vsel %vm671_vm2, %v3178_v41, 0.0 }
 0x3e1   : > { %v3285_v28 = vadd.f32 %v3284_v15, %v3283_v56 }
 0x3e2   : > { %v8483_v39 = vpop.f32.mrb[30].mxu0 }
 0x3e3   : > { %v3188_v49 = vpop.f32.mrb[31].mxu0  ;;  %v3287_v55 = vadd.f32 %v3286_v38, %v3285_v28  ;;  %v3290_v5 = vsel %vm671_vm2, %v8483_v39, 0.0 }
 0x3e4   : > { %v3288_v62 = vsel %vm671_vm2, %v3188_v49, 0.0 }
 0x3e5   : > { %v3289_v1 = vadd.f32 %v3288_v62, %v3287_v55 }
 0x3e7   : > { %v3291_v44 = vadd.f32 %v3290_v5, %v3289_v1 }
 0x3e9   : > { %v3292_v47 = vrot.slane %v3291_v44, 4 }
 0x3eb   : > { %v3293_v3 = vadd.f32 %v3292_v47, %v3291_v44  ;;  %v3754_v44 = vld [vmem:[%s12557_s4 + $0x4] sm:$0xf] }
 0x3ec   : > { %8484 = vmatprep.subr.msk.mxu1 %vm732_vm0, %v3754_v44 }
 0x3ed   : > { %v3294_v8 = vrot.slane %v3293_v3, 2  ;;  %8485 = vmatpush3.msk.msra.mxu1 %vm732_vm0, %v3754_v44 }
 0x3ef   : > { %v3295_v7 = vadd.f32 %v3294_v8, %v3293_v3 }
 0x3f1   : > { %v3296_v12 = vrot.slane %v3295_v7, 1 }
 0x3f3   : > { %v3297_v57 = vadd.f32 %v3296_v12, %v3295_v7 }
 0x3f5   : > { %v3299_v10 = vmul.f32 0.00390625, %v3297_v57 }
 0x3f7   : > { %v10687_v52 = vsub.f32 %v10592_v0, %v3299_v10  ;;  %v10690_v34 = vsub.f32 %v10588_v30, %v3299_v10  ;;  %v10693_v59 = vsub.f32 %v10598_v26, %v3299_v10  ;;  %v10696_v23 = vsub.f32 %v10596_v6, %v3299_v10 }
 0x3f8   : > { %v10699_v54 = vsub.f32 %v10606_v11, %v3299_v10  ;;  %v10702_v48 = vsub.f32 %v10604_v17, %v3299_v10  ;;  %v10705_v9 = vsub.f32 %v10614_v42, %v3299_v10  ;;  %v10708_v0 = vsub.f32 %v10612_v51, %v3299_v10 }
 0x3f9   : > { %v10711_v30 = vsub.f32 %v10622_v21, %v3299_v10  ;;  %v10714_v26 = vsub.f32 %v10620_v18, %v3299_v10  ;;  %v10717_v6 = vsub.f32 %v10630_v37, %v3299_v10  ;;  %v10720_v11 = vsub.f32 %v10628_v13, %v3299_v10 }
 0x3fa   : > { %v10723_v17 = vsub.f32 %v10638_v27, %v3299_v10  ;;  %v10726_v42 = vsub.f32 %v10636_v20, %v3299_v10  ;;  %v10729_v51 = vsub.f32 %v10646_v53, %v3299_v10  ;;  %v10732_v21 = vsub.f32 %v10644_v50, %v3299_v10 }
 0x3fb   : > { %v10735_v18 = vsub.f32 %v10654_v25, %v3299_v10  ;;  %v10738_v37 = vsub.f32 %v10652_v22, %v3299_v10  ;;  %v10741_v13 = vsub.f32 %v10662_v43, %v3299_v10  ;;  %v10744_v27 = vsub.f32 %v10660_v32, %v3299_v10 }
 0x3fc   : > { %v10747_v20 = vsub.f32 %v10670_v24, %v3299_v10  ;;  %v10750_v53 = vsub.f32 %v10668_v58, %v3299_v10  ;;  %v10752_v50 = vsub.f32 %v3148_v60, %v3299_v10  ;;  %v10754_v45 = vsub.f32 %v8471_v61, %v3299_v10 }
 0x3fd   : > { %v10756_v25 = vsub.f32 %v3158_v36, %v3299_v10  ;;  %v10758_v22 = vsub.f32 %v8474_v31, %v3299_v10  ;;  %v10760_v19 = vsub.f32 %v3168_v4, %v3299_v10  ;;  %v10762_v43 = vsub.f32 %v8477_v40, %v3299_v10 }
 0x3fe   : > { %v10764_v32 = vsub.f32 %v3178_v41, %v3299_v10  ;;  %v10766_v2 = vsub.f32 %v8480_v16, %v3299_v10  ;;  %v10768_v24 = vsub.f32 %v3188_v49, %v3299_v10  ;;  %v10770_v58 = vsub.f32 %v8483_v39, %v3299_v10  ;;  %v10814_v10 = vld [vmem:[%s12557_s4] sm:$0xf] }
 0x3ff   : > { %v3332_v61 = vmul.f32 %v10687_v52, %v10687_v52  ;;  %v3333_v60 = vmul.f32 %v10690_v34, %v10690_v34  ;;  %v3334_v31 = vmul.f32 %v10693_v59, %v10693_v59  ;;  %v3335_v36 = vmul.f32 %v10696_v23, %v10696_v23  ;;  %8534 = vmatprep.subr.msk.mxu1 %vm732_vm0, %v10814_v10 }
 0x400   : > { %v3336_v4 = vmul.f32 %v10699_v54, %v10699_v54  ;;  %v3337_v14 = vmul.f32 %v10702_v48, %v10702_v48  ;;  %v3338_v41 = vmul.f32 %v10705_v9, %v10705_v9  ;;  %v3339_v28 = vmul.f32 %v10708_v0, %v10708_v0 }
 0x401   : > { %v3364_v33 = vsel %vm671_vm2, %v3332_v61, 0.0  ;;  %v3365_v29 = vsel %vm671_vm2, %v3333_v60, 0.0  ;;  %v3367_v46 = vsel %vm671_vm2, %v3334_v31, 0.0  ;;  %v3369_v63 = vsel %vm671_vm2, %v3335_v36, 0.0 }
 0x402   : > { %v3366_v40 = vadd.f32 %v3365_v29, %v3364_v33  ;;  %v3371_v56 = vsel %vm671_vm2, %v3336_v4, 0.0  ;;  %v3373_v38 = vsel %vm671_vm2, %v3337_v14, 0.0  ;;  %v3340_v49 = vmul.f32 %v10711_v30, %v10711_v30 }
 0x403   : > { %v3375_v55 = vsel %vm671_vm2, %v3338_v41, 0.0  ;;  %v3341_v1 = vmul.f32 %v10714_v26, %v10714_v26  ;;  %v3377_v5 = vsel %vm671_vm2, %v3339_v28, 0.0  ;;  %v3342_v3 = vmul.f32 %v10717_v6, %v10717_v6 }
 0x404   : > { %v3368_v35 = vadd.f32 %v3367_v46, %v3366_v40  ;;  %v3379_v8 = vsel %vm671_vm2, %v3340_v49, 0.0  ;;  %v3343_v12 = vmul.f32 %v10720_v11, %v10720_v11  ;;  %v3344_v60 = vmul.f32 %v10723_v17, %v10723_v17 }
 0x405   : > { %v3381_v57 = vsel %vm671_vm2, %v3341_v1, 0.0  ;;  %v3383_v31 = vsel %vm671_vm2, %v3342_v3, 0.0  ;;  %v3345_v33 = vmul.f32 %v10726_v42, %v10726_v42  ;;  %v3346_v4 = vmul.f32 %v10729_v51, %v10729_v51 }
 0x406   : > { %v3370_v16 = vadd.f32 %v3369_v63, %v3368_v35  ;;  %v3385_v29 = vsel %vm671_vm2, %v3343_v12, 0.0  ;;  %v3387_v46 = vsel %vm671_vm2, %v3344_v60, 0.0  ;;  %v3347_v14 = vmul.f32 %v10732_v21, %v10732_v21 }
 0x407   : > { %v3389_v63 = vsel %vm671_vm2, %v3345_v33, 0.0  ;;  %v3348_v41 = vmul.f32 %v10735_v18, %v10735_v18  ;;  %v3349_v28 = vmul.f32 %v10738_v37, %v10738_v37  ;;  %v3350_v49 = vmul.f32 %v10741_v13, %v10741_v13 }
 0x408   : > { %v3372_v15 = vadd.f32 %v3371_v56, %v3370_v16  ;;  %v3391_v56 = vsel %vm671_vm2, %v3346_v4, 0.0  ;;  %v3351_v1 = vmul.f32 %v10744_v27, %v10744_v27 }
 0x409   : > { %v3399_v3 = vsel %vm671_vm2, %v3350_v49, 0.0 }
 0x40a   : > { %v3374_v39 = vadd.f32 %v3373_v38, %v3372_v15  ;;  %v3393_v38 = vsel %vm671_vm2, %v3347_v14, 0.0  ;;  %v3401_v12 = vsel %vm671_vm2, %v3351_v1, 0.0 }
 0x40c   : > { %v3376_v62 = vadd.f32 %v3375_v55, %v3374_v39  ;;  %v3395_v55 = vsel %vm671_vm2, %v3348_v41, 0.0 }
 0x40e   : > { %v3378_v47 = vadd.f32 %v3377_v5, %v3376_v62  ;;  %v3397_v5 = vsel %vm671_vm2, %v3349_v28, 0.0 }
 0x410   : > { %v3380_v7 = vadd.f32 %v3379_v8, %v3378_v47  ;;  %v3352_v47 = vmul.f32 %v10747_v20, %v10747_v20 }
 0x412   : > { %v3382_v61 = vadd.f32 %v3381_v57, %v3380_v7  ;;  %v3353_v7 = vmul.f32 %v10750_v53, %v10750_v53  ;;  %v3403_v60 = vsel %vm671_vm2, %v3352_v47, 0.0 }
 0x414   : > { %v3384_v36 = vadd.f32 %v3383_v31, %v3382_v61  ;;  %v3354_v61 = vmul.f32 %v10752_v50, %v10752_v50  ;;  %v3405_v33 = vsel %vm671_vm2, %v3353_v7, 0.0 }
 0x416   : > { %v3386_v40 = vadd.f32 %v3385_v29, %v3384_v36  ;;  %v3355_v36 = vmul.f32 %v10754_v45, %v10754_v45  ;;  %v3407_v4 = vsel %vm671_vm2, %v3354_v61, 0.0 }
 0x418   : > { %v3388_v35 = vadd.f32 %v3387_v46, %v3386_v40  ;;  %v3356_v40 = vmul.f32 %v10756_v25, %v10756_v25  ;;  %v3409_v14 = vsel %vm671_vm2, %v3355_v36, 0.0 }
 0x41a   : > { %v3390_v16 = vadd.f32 %v3389_v63, %v3388_v35  ;;  %v3357_v35 = vmul.f32 %v10758_v22, %v10758_v22  ;;  %v3411_v41 = vsel %vm671_vm2, %v3356_v40, 0.0 }
 0x41c   : > { %v3392_v15 = vadd.f32 %v3391_v56, %v3390_v16  ;;  %v3358_v16 = vmul.f32 %v10760_v19, %v10760_v19  ;;  %v3413_v28 = vsel %vm671_vm2, %v3357_v35, 0.0 }
 0x41e   : > { %v3394_v39 = vadd.f32 %v3393_v38, %v3392_v15  ;;  %v3359_v15 = vmul.f32 %v10762_v43, %v10762_v43  ;;  %v3415_v49 = vsel %vm671_vm2, %v3358_v16, 0.0 }
 0x420   : > { %v3396_v62 = vadd.f32 %v3395_v55, %v3394_v39  ;;  %v3360_v39 = vmul.f32 %v10764_v32, %v10764_v32  ;;  %v3417_v1 = vsel %vm671_vm2, %v3359_v15, 0.0 }
 0x422   : > { %v3398_v44 = vadd.f32 %v3397_v5, %v3396_v62  ;;  %v3361_v62 = vmul.f32 %v10766_v2, %v10766_v2  ;;  %v3419_v47 = vsel %vm671_vm2, %v3360_v39, 0.0  ;;  %v10893_v39 = vld [vmem:[%s12556_s3] ss:$0 sm:$0xff] }
 0x424   : > { %v3400_v8 = vadd.f32 %v3399_v3, %v3398_v44  ;;  %v3362_v44 = vmul.f32 %v10768_v24, %v10768_v24  ;;  %v3421_v7 = vsel %vm671_vm2, %v3361_v62, 0.0 }
 0x426   : > { %v3402_v57 = vadd.f32 %v3401_v12, %v3400_v8  ;;  %v3363_v8 = vmul.f32 %v10770_v58, %v10770_v58 }
 0x428   : > { %v3404_v31 = vadd.f32 %v3403_v60, %v3402_v57  ;;  %v3423_v57 = vsel %vm671_vm2, %v3362_v44, 0.0  ;;  %v3425_v60 = vsel %vm671_vm2, %v3363_v8, 0.0 }
 0x42a   : > { %v3406_v29 = vadd.f32 %v3405_v33, %v3404_v31 }
 0x42c   : > { %v3408_v46 = vadd.f32 %v3407_v4, %v3406_v29 }
 0x42e   : > { %v3410_v63 = vadd.f32 %v3409_v14, %v3408_v46 }
 0x430   : > { %v3412_v56 = vadd.f32 %v3411_v41, %v3410_v63  ;;  %v3438_v63 = vlaneseq  ;;  %v3436_v41 = vld [vmem:[%s12555_s2] sm:$0x1] }
 0x432   : > { %v3414_v38 = vadd.f32 %v3413_v28, %v3412_v56  ;;  %v10880_v16 = vshrl.u32 %v3438_v63, 7 }
 0x434   : > { %v3416_v55 = vadd.f32 %v3415_v49, %v3414_v38  ;;  %12822 = vst [vmem:[#allocation19_spill] sm:$0xff] %v10880_v16  ;;  %v12634_v56 = vsub.s32 0, %v10880_v16 }
 0x436   : > { %v3418_v5 = vadd.f32 %v3417_v1, %v3416_v55 }
 0x438   : > { %v3420_v3 = vadd.f32 %v3419_v47, %v3418_v5 }
 0x43a   : > { %v3422_v12 = vadd.f32 %v3421_v7, %v3420_v3 }
 0x43c   : > { %v3424_v61 = vadd.f32 %v3423_v57, %v3422_v12 }
 0x43e   : > { %v3426_v31 = vadd.f32 %v3425_v60, %v3424_v61 }
 0x440   : > { %v3427_v36 = vrot.slane %v3426_v31, 4 }
 0x442   : > { %v3428_v33 = vadd.f32 %v3427_v36, %v3426_v31 }
 0x444   : > { %v3429_v29 = vrot.slane %v3428_v33, 2 }
 0x446   : > { %v3430_v40 = vadd.f32 %v3429_v29, %v3428_v33 }
 0x448   : > { %v3431_v4 = vrot.slane %v3430_v40, 1 }
 0x44a   : > { %v3432_v46 = vadd.f32 %v3431_v4, %v3430_v40 }
 0x44c   : > { %v3433_v35 = vmul.f32 0.00390625, %v3432_v46 }
 0x44e   : > { %v3434_v14 = vadd.f32 1e-05, %v3433_v35 }
 0x450   : > { %9456 = vrsqrt.f32 %v3434_v14 }
 0x45a   : > { %v9457_v15 = vpop.eup %9456 }
 0x45b   : > { %v3437_v28 = vmul.f32 %v9457_v15, %v3436_v41 }
 0x45d   : > { %v10888_v38 = vrot.slane %v3437_v28, %v12634_v56 }
 0x45f   : > { %v3472_v49 = vmul.f32 %v10888_v38, %v10768_v24  ;;  %v3473_v62 = vmul.f32 %v10888_v38, %v10770_v58  ;;  %v3444_v5 = vmul.f32 %v10888_v38, %v10693_v59  ;;  %v3445_v44 = vmul.f32 %v10888_v38, %v10696_v23 }
 0x460   : > { %v3442_v47 = vmul.f32 %v10888_v38, %v10687_v52  ;;  %v3443_v24 = vmul.f32 %v10888_v38, %v10690_v34  ;;  %v3446_v58 = vmul.f32 %v10888_v38, %v10699_v54  ;;  %v3447_v7 = vmul.f32 %v10888_v38, %v10702_v48 }
 0x461   : > { %v10898_v55 = vadd.f32 %v10893_v39, %v3472_v49  ;;  %v10903_v1 = vadd.f32 %v10893_v39, %v3473_v62  ;;  %v3483_v3 = vadd.f32 %v10893_v39, %v3444_v5  ;;  %v3484_v8 = vadd.f32 %v10893_v39, %v3445_v44 }
 0x462   : > { %v3448_v59 = vmul.f32 %v10888_v38, %v10705_v9  ;;  %v3449_v23 = vmul.f32 %v10888_v38, %v10708_v0  ;;  %v3450_v52 = vmul.f32 %v10888_v38, %v10711_v30  ;;  %v3451_v34 = vmul.f32 %v10888_v38, %v10714_v26 }
 0x463   : > { %12823 = vst [vmem:[#allocation22_spill] sm:$0xff] %v10903_v1  ;;  %v3481_v12 = vadd.f32 %v10893_v39, %v3442_v47  ;;  %v3452_v54 = vmul.f32 %v10888_v38, %v10717_v6  ;;  %v3453_v48 = vmul.f32 %v10888_v38, %v10720_v11  ;;  %v3482_v57 = vadd.f32 %v10893_v39, %v3443_v24 }
 0x464   : > { %v3515_v9 = vmax.f32 %v3483_v3, 0.0  ;;  %v12635_v61 = vmax.f32 %v10898_v55, 0.0  ;;  %v10936_v0 = vmul.f32 %v10888_v38, %v10723_v17  ;;  %v10940_v30 = vmul.f32 %v10888_v38, %v10726_v42 }
 0x465   : > { %v3516_v26 = vmax.f32 %v3484_v8, 0.0  ;;  %v10944_v6 = vmul.f32 %v10888_v38, %v10729_v51  ;;  %v10948_v11 = vmul.f32 %v10888_v38, %v10732_v21  ;;  %v10952_v60 = vmul.f32 %v10888_v38, %v10735_v18 }
 0x466   : > { %v10956_v17 = vmul.f32 %v10888_v38, %v10738_v37  ;;  %v10960_v42 = vmul.f32 %v10888_v38, %v10741_v13  ;;  %v10964_v51 = vmul.f32 %v10888_v38, %v10744_v27  ;;  %v3485_v31 = vadd.f32 %v10893_v39, %v3446_v58 }
 0x467   : > { %v3513_v21 = vmax.f32 %v3481_v12, 0.0  ;;  %v10969_v36 = vmul.f32 %v10888_v38, %v10747_v20  ;;  %v3514_v18 = vmax.f32 %v3482_v57, 0.0  ;;  %v3561_v33 = vrot.slane %v3515_v9, 1 }
 0x468   : > { %v3609_v29 = vrot.slane %v3515_v9, 7  ;;  %v10973_v37 = vrot.slane %v12635_v61, 7  ;;  %v10977_v13 = vmul.f32 %v10888_v38, %v10750_v53  ;;  %v3486_v27 = vadd.f32 %v10893_v39, %v3447_v7 }
 0x469   : > { %v3610_v40 = vrot.slane %v3516_v26, 7  ;;  %v10982_v4 = vmul.f32 %v10888_v38, %v10752_v50  ;;  %v10986_v20 = vmul.f32 %v10888_v38, %v10754_v45  ;;  %v10990_v46 = vmul.f32 %v10888_v38, %v10756_v25 }
 0x46a   : > { %v3487_v35 = vadd.f32 %v10893_v39, %v3448_v59  ;;  %v10995_v53 = vmul.f32 %v10888_v38, %v10758_v22  ;;  %v3488_v14 = vadd.f32 %v10893_v39, %v3449_v23  ;;  %v3517_v63 = vmax.f32 %v3485_v31, 0.0 }
 0x46b   : > { %v3562_v41 = vrot.slane %v3513_v21, 1  ;;  %v3612_v50 = vrot.slane %v3513_v21, 7  ;;  %v3613_v15 = vrot.slane %v3514_v18, 7  ;;  %v3689_v28 = vrot.slane %v3516_v26, 5 }
 0x46c   : > { %v10999_v45 = vsel %vm411_vm1, %v3561_v33, %v3609_v29  ;;  %v11003_v25 = vmul.f32 %v10888_v38, %v10760_v19  ;;  %v11007_v49 = vmul.f32 %v10888_v38, %v10762_v43  ;;  %v3518_v22 = vmax.f32 %v3486_v27, 0.0 }
 0x46d   : > { %v11010_v62 = vsel %vm411_vm1, %v3609_v29, %v3610_v40  ;;  %v3489_v5 = vadd.f32 %v10893_v39, %v3450_v52  ;;  %v3490_v44 = vadd.f32 %v10893_v39, %v3451_v34  ;;  %v3519_v47 = vmax.f32 %v3487_v35, 0.0 }
 0x46e   : > { %v3690_v24 = vrot.slane %v3514_v18, 5  ;;  %v3520_v3 = vmax.f32 %v3488_v14, 0.0  ;;  %v3563_v8 = vrot.slane %v3517_v63, 1  ;;  %v3615_v58 = vrot.slane %v3517_v63, 7 }
 0x46f   : > { %v3792_v19 = vrot.slane %v10999_v45, 1  ;;  %v3793_v7 = vrot.slane %v11010_v62, 1  ;;  %v11017_v43 = vsel %vm411_vm1, %v3610_v40, %v3689_v28  ;;  %v11020_v59 = vsel %vm411_vm1, %v3612_v50, %v3613_v15 }
 0x470   : > { %v11023_v23 = vsel %vm411_vm1, %v3562_v41, %v3612_v50  ;;  %v3616_v52 = vrot.slane %v3518_v22, 7  ;;  %v3795_v34 = vrot.slane %v11017_v43, 1  ;;  %v3798_v57 = vrot.slane %v11020_v59, 1 }
 0x471   : > { %v3797_v12 = vrot.slane %v11023_v23, 1  ;;  %v11030_v9 = vmul.f32 %v10888_v38, %v10764_v32  ;;  %v3491_v26 = vadd.f32 %v10893_v39, %v3452_v54  ;;  %v11034_v31 = vsel %vm595_vm3, %v3792_v19, %v3793_v7  ;;  %v11049_v54 = vld [vmem:[%s12557_s4 + $0x8] sm:$0xf] }
 0x472   : > { %12824 = vst [vmem:[#allocation23_spill] sm:$0xff] %v11034_v31  ;;  %v11037_v21 = vsel %vm411_vm1, %v3613_v15, %v3690_v24  ;;  %v3492_v18 = vadd.f32 %v10893_v39, %v3453_v48  ;;  %v3521_v33 = vmax.f32 %v3489_v5, 0.0  ;;  %8486 = vmatprep.mubr.msk.f32.mxu1 %vm671_vm2, %v11034_v31  ;;  %v11043_v29 = vsel %vm595_vm3, %v3793_v7, %v3795_v34 }
 0x473   : > { %12825 = vst [vmem:[#allocation27_spill] sm:$0xff] %v11043_v29  ;;  %v3800_v32 = vrot.slane %v11037_v21, 1  ;;  %v3522_v27 = vmax.f32 %v3490_v44, 0.0  ;;  %v3564_v40 = vrot.slane %v3519_v47, 1  ;;  %v3691_v35 = vrot.slane %v3518_v22, 5  ;;  %8487 = vmatmul.mubr.msk.f32.vlgmr.msra.gmra.mrb[0].mxu1 %vm671_vm2, %v11043_v29 }
 0x474   : > { %v11054_v48 = vsel %vm595_vm3, %v3797_v12, %v3798_v57  ;;  %v11057_v14 = vsel %vm411_vm1, %v3615_v58, %v3616_v52  ;;  %v3618_v63 = vrot.slane %v3519_v47, 7  ;;  %v3619_v41 = vrot.slane %v3520_v3, 7  ;;  %8535 = vmatpush3.msk.msra.mxu1 %vm732_vm0, %v10814_v10 }
 0x475   : > { %12826 = vst [vmem:[#allocation25_spill] sm:$0xff] %v11054_v48  ;;  %v11060_v50 = vsel %vm411_vm1, %v3563_v8, %v3615_v58  ;;  %8489 = vmatprep.mubr.msk.f32.mxu1 %vm671_vm2, %v11054_v48  ;;  %v11068_v15 = vmul.f32 %v10888_v38, %v10766_v2  ;;  %v3493_v28 = vadd.f32 %v10893_v39, %v10936_v0  ;;  %v3523_v10 = vmax.f32 %v3491_v26, 0.0 }
 0x476   : > { %v3494_v22 = vadd.f32 %v10893_v39, %v10940_v30  ;;  %v11076_v5 = vadd.f32 %v10893_v39, %v10944_v6  ;;  %8584 = vmatprep.subr.msk.mxu1 %vm732_vm0, %v11049_v54  ;;  %v3524_v44 = vmax.f32 %v3492_v18, 0.0  ;;  %v3565_v47 = vrot.slane %v3521_v33, 1 }
 0x477   : > { %v11081_v24 = vsel %vm595_vm3, %v3798_v57, %v3800_v32  ;;  %v3692_v2 = vrot.slane %v3520_v3, 5  ;;  %v3802_v38 = vrot.slane %v11060_v50, 1  ;;  %v3803_v0 = vrot.slane %v11057_v14, 1 }
 0x478   : > { %12827 = vst [vmem:[#allocation26_spill] sm:$0xff] %v11081_v24  ;;  %8490 = vmatmul.mubr.msk.f32.gmra.mrb[2].mxu1 %vm671_vm2, %v11081_v24  ;;  %v11088_v30 = vsel %vm411_vm1, %v3616_v52, %v3691_v35  ;;  %v11091_v6 = vsel %vm411_vm1, %v3618_v63, %v3619_v41  ;;  %v3621_v8 = vrot.slane %v3521_v33, 7  ;;  %v3622_v58 = vrot.slane %v3522_v27, 7 }
 0x479   : > { %v11094_v19 = vsel %vm411_vm1, %v3564_v40, %v3618_v63  ;;  %8492 = vmatprep.mubr.msk.f32.mxu1 %vm671_vm2, %v11034_v31  ;;  %v3496_v3 = vadd.f32 %v10893_v39, %v10948_v11  ;;  %v11102_v7 = vadd.f32 %v10893_v39, %v10952_v60  ;;  %v11106_v52 = vadd.f32 %v10893_v39, %v10956_v17 }
 0x47a   : > { %v3525_v34 = vmax.f32 %v3493_v28, 0.0  ;;  %v3526_v12 = vmax.f32 %v3494_v22, 0.0  ;;  %v3566_v57 = vrot.slane %v3523_v10, 1  ;;  %v3693_v26 = vrot.slane %v3522_v27, 5 }
 0x47b   : > { %v3805_v18 = vrot.slane %v11088_v30, 1  ;;  %v11112_v33 = vsel %vm595_vm3, %v3802_v38, %v3803_v0  ;;  %v3807_v11 = vrot.slane %v11094_v19, 1  ;;  %v3808_v60 = vrot.slane %v11091_v6, 1 }
 0x47c   : > { %8493 = vmatmul.mubr.msk.f32.gmra.mrb[4].mxu1 %vm671_vm2, %v11043_v29  ;;  %12828 = vst [vmem:[#allocation35_spill] sm:$0xff] %v11112_v33  ;;  %v11117_v32 = vsel %vm411_vm1, %v3619_v41, %v3692_v2  ;;  %v11120_v17 = vsel %vm411_vm1, %v3621_v8, %v3622_v58  ;;  %v3624_v40 = vrot.slane %v3523_v10, 7  ;;  %v3625_v27 = vrot.slane %v3524_v44, 7 }
 0x47d   : > { %v11123_v35 = vsel %vm411_vm1, %v3565_v47, %v3621_v8  ;;  %8495 = vmatprep.mubr.msk.f32.mxu1 %vm671_vm2, %v11112_v33  ;;  %v11129_v63 = vadd.f32 %v10893_v39, %v10960_v42  ;;  %v11133_v28 = vadd.f32 %v10893_v39, %v10964_v51  ;;  %v3527_v41 = vmax.f32 %v11076_v5, 0.0 }
 0x47e   : > { %v3528_v22 = vmax.f32 %v3496_v3, 0.0  ;;  %v3567_v2 = vrot.slane %v3525_v34, 1  ;;  %v3694_v10 = vrot.slane %v3524_v44, 5  ;;  %v11137_v38 = vsel %vm595_vm3, %v3803_v0, %v3805_v18 }
 0x47f   : > { %12829 = vst [vmem:[#allocation38_spill] sm:$0xff] %v11137_v38  ;;  %v3810_v47 = vrot.slane %v11117_v32, 1  ;;  %v11143_v42 = vsel %vm595_vm3, %v3807_v11, %v3808_v60  ;;  %v3812_v8 = vrot.slane %v11123_v35, 1  ;;  %v3813_v51 = vrot.slane %v11120_v17, 1 }
 0x480   : > { %8496 = vmatmul.mubr.msk.f32.gmra.mrb[6].mxu1 %vm671_vm2, %v11137_v38  ;;  %12830 = vst [vmem:[#allocation3_spill] sm:$0xff] %v11143_v42  ;;  %v11148_v5 = vsel %vm411_vm1, %v3622_v58, %v3693_v26  ;;  %v11151_v44 = vsel %vm411_vm1, %v3624_v40, %v3625_v27  ;;  %v3627_v0 = vrot.slane %v3525_v34, 7  ;;  %v3628_v3 = vrot.slane %v3526_v12, 7 }
 0x481   : > { %v11154_v18 = vsel %vm411_vm1, %v3566_v57, %v3624_v40  ;;  %8498 = vmatprep.mubr.msk.f32.mxu1 %vm671_vm2, %v11143_v42  ;;  %v11160_v11 = vadd.f32 %v10893_v39, %v10969_v36  ;;  %v11164_v56 = vadd.f32 %v10893_v39, %v10977_v13  ;;  %v3529_v58 = vmax.f32 %v11102_v7, 0.0 }
 0x482   : > { %v3530_v26 = vmax.f32 %v11106_v52, 0.0  ;;  %v3568_v34 = vrot.slane %v3527_v41, 1  ;;  %v3695_v61 = vrot.slane %v3526_v12, 5  ;;  %v11169_v57 = vsel %vm595_vm3, %v3808_v60, %v3810_v47 }
 0x483   : > { %12831 = vst [vmem:[#allocation4_spill] sm:$0xff] %v11169_v57  ;;  %v3815_v40 = vrot.slane %v11148_v5, 1  ;;  %v11175_v36 = vsel %vm595_vm3, %v3812_v8, %v3813_v51  ;;  %v3817_v13 = vrot.slane %v11154_v18, 1  ;;  %v3818_v16 = vrot.slane %v11151_v44, 1 }
 0x484   : > { %8499 = vmatmul.mubr.msk.f32.gmra.mrb[8].mxu1 %vm671_vm2, %v11169_v57  ;;  %12832 = vst [vmem:[#allocation5_spill] sm:$0xff] %v11175_v36  ;;  %v11180_v7 = vsel %vm411_vm1, %v3625_v27, %v3694_v10  ;;  %v11183_v52 = vsel %vm411_vm1, %v3627_v0, %v3628_v3  ;;  %v3630_v12 = vrot.slane %v3527_v41, 7  ;;  %v3631_v60 = vrot.slane %v3528_v22, 7 }
 0x485   : > { %v11186_v47 = vsel %vm411_vm1, %v3567_v2, %v3627_v0  ;;  %8501 = vmatprep.mubr.msk.f32.mxu1 %vm671_vm2, %v11175_v36  ;;  %v11192_v8 = vadd.f32 %v10893_v39, %v10982_v4  ;;  %v11196_v57 = vadd.f32 %v10893_v39, %v10986_v20  ;;  %v3531_v27 = vmax.f32 %v11129_v63, 0.0 }
 0x486   : > { %v3532_v10 = vmax.f32 %v11133_v28, 0.0  ;;  %v3569_v41 = vrot.slane %v3529_v58, 1  ;;  %v3696_v42 = vrot.slane %v3528_v22, 5  ;;  %v11201_v2 = vsel %vm595_vm3, %v3813_v51, %v3815_v40 }
 0x487   : > { %12833 = vst [vmem:[#allocation6_spill] sm:$0xff] %v11201_v2  ;;  %v3820_v0 = vrot.slane %v11180_v7, 1  ;;  %v11207_v4 = vsel %vm595_vm3, %v3817_v13, %v3818_v16  ;;  %v3822_v20 = vrot.slane %v11186_v47, 1  ;;  %v3823_v36 = vrot.slane %v11183_v52, 1 }
 0x488   : > { %8502 = vmatmul.mubr.msk.f32.gmra.mrb[10].mxu1 %vm671_vm2, %v11201_v2  ;;  %12834 = vst [vmem:[#allocation7_spill] sm:$0xff] %v11207_v4  ;;  %v11212_v63 = vsel %vm411_vm1, %v3628_v3, %v3695_v61  ;;  %v11215_v28 = vsel %vm411_vm1, %v3630_v12, %v3631_v60  ;;  %v3633_v22 = vrot.slane %v3529_v58, 7  ;;  %v3634_v51 = vrot.slane %v3530_v26, 7 }
 0x489   : > { %v11218_v40 = vsel %vm411_vm1, %v3568_v34, %v3630_v12  ;;  %8504 = vmatprep.mubr.msk.f32.mxu1 %vm671_vm2, %v11207_v4  ;;  %v3505_v13 = vadd.f32 %v10893_v39, %v10990_v46  ;;  %v11226_v2 = vadd.f32 %v10893_v39, %v10995_v53  ;;  %v3533_v61 = vmax.f32 %v11160_v11, 0.0 }
 0x48a   : > { %v3534_v3 = vmax.f32 %v11164_v56, 0.0  ;;  %v3570_v38 = vrot.slane %v3531_v27, 1  ;;  %v3697_v58 = vrot.slane %v3530_v26, 5  ;;  %v11231_v33 = vsel %vm595_vm3, %v3818_v16, %v3820_v0 }
 0x48b   : > { %12835 = vst [vmem:[#allocation8_spill] sm:$0xff] %v11231_v33  ;;  %v3825_v34 = vrot.slane %v11212_v63, 1  ;;  %v11237_v46 = vsel %vm595_vm3, %v3822_v20, %v3823_v36  ;;  %v3827_v53 = vrot.slane %v11218_v40, 1  ;;  %v3828_v12 = vrot.slane %v11215_v28, 1 }
 0x48c   : > { %8505 = vmatmul.mubr.msk.f32.gmra.mrb[12].mxu1 %vm671_vm2, %v11231_v33  ;;  %12836 = vst [vmem:[#allocation9_spill] sm:$0xff] %v11237_v46  ;;  %v11242_v11 = vsel %vm411_vm1, %v3631_v60, %v3696_v42  ;;  %v11245_v56 = vsel %vm411_vm1, %v3633_v22, %v3634_v51  ;;  %v3636_v16 = vrot.slane %v3531_v27, 7  ;;  %v3637_v26 = vrot.slane %v3532_v10, 7 }
 0x48d   : > { %v11248_v0 = vsel %vm411_vm1, %v3569_v41, %v3633_v22  ;;  %8507 = vmatprep.mubr.msk.f32.mxu1 %vm671_vm2, %v11237_v46  ;;  %v11254_v20 = vadd.f32 %v10893_v39, %v11003_v25  ;;  %v11258_v33 = vadd.f32 %v10893_v39, %v11007_v49  ;;  %v3535_v42 = vmax.f32 %v11192_v8, 0.0 }
 0x48e   : > { %v3536_v60 = vmax.f32 %v11196_v57, 0.0  ;;  %v3571_v27 = vrot.slane %v3533_v61, 1  ;;  %v3698_v4 = vrot.slane %v3532_v10, 5  ;;  %v11263_v41 = vsel %vm595_vm3, %v3823_v36, %v3825_v34 }
 0x48f   : > { %12837 = vst [vmem:[#allocation10_spill] sm:$0xff] %v11263_v41  ;;  %v3830_v22 = vrot.slane %v11242_v11, 1  ;;  %v11269_v25 = vsel %vm595_vm3, %v3827_v53, %v3828_v12  ;;  %v3832_v49 = vrot.slane %v11248_v0, 1  ;;  %v3833_v46 = vrot.slane %v11245_v56, 1 }
 0x490   : > { %8508 = vmatmul.mubr.msk.f32.gmra.mrb[14].mxu1 %vm671_vm2, %v11263_v41  ;;  %12838 = vst [vmem:[#allocation11_spill] sm:$0xff] %v11269_v25  ;;  %v11274_v8 = vsel %vm411_vm1, %v3634_v51, %v3697_v58  ;;  %v11277_v57 = vsel %vm411_vm1, %v3636_v16, %v3637_v26  ;;  %v3639_v36 = vrot.slane %v3533_v61, 7  ;;  %v3640_v10 = vrot.slane %v3534_v3, 7 }
 0x491   : > { %v11280_v34 = vsel %vm411_vm1, %v3570_v38, %v3636_v16  ;;  %8510 = vmatprep.mubr.msk.f32.mxu1 %vm671_vm2, %v11269_v25  ;;  %v11286_v53 = vadd.f32 %v10893_v39, %v11030_v9  ;;  %v3537_v41 = vmax.f32 %v3505_v13, 0.0  ;;  %v3538_v29 = vmax.f32 %v11226_v2, 0.0 }
 0x492   : > { %v3572_v58 = vrot.slane %v3535_v42, 1  ;;  %v3699_v31 = vrot.slane %v3534_v3, 5  ;;  %v11291_v61 = vsel %vm595_vm3, %v3828_v12, %v3830_v22  ;;  %v3835_v38 = vrot.slane %v11274_v8, 1 }
 0x493   : > { %12839 = vst [vmem:[#allocation12_spill] sm:$0xff] %v11291_v61  ;;  %v11297_v16 = vsel %vm595_vm3, %v3832_v49, %v3833_v46  ;;  %v3837_v9 = vrot.slane %v11280_v34, 1  ;;  %v3838_v13 = vrot.slane %v11277_v57, 1  ;;  %v11302_v2 = vsel %vm411_vm1, %v3637_v26, %v3698_v4 }
 0x494   : > { %8511 = vmatmul.mubr.msk.f32.gmra.mrb[16].mxu1 %vm671_vm2, %v11291_v61  ;;  %12840 = vst [vmem:[#allocation13_spill] sm:$0xff] %v11297_v16  ;;  %v11305_v3 = vsel %vm411_vm1, %v3639_v36, %v3640_v10  ;;  %v3642_v12 = vrot.slane %v3535_v42, 7  ;;  %v3643_v22 = vrot.slane %v3536_v60, 7  ;;  %v11308_v51 = vsel %vm411_vm1, %v3571_v27, %v3639_v36 }
 0x495   : > { %8513 = vmatprep.mubr.msk.f32.mxu1 %vm671_vm2, %v11297_v16  ;;  %v3510_v49 = vadd.f32 %v10893_v39, %v11068_v15  ;;  %v3539_v61 = vmax.f32 %v11254_v20, 0.0  ;;  %v3540_v25 = vmax.f32 %v11258_v33, 0.0  ;;  %v3573_v4 = vrot.slane %v3537_v41, 1 }
 0x496   : > { %v3645_v26 = vrot.slane %v3537_v41, 7  ;;  %v3700_v24 = vrot.slane %v3536_v60, 5  ;;  %v11317_v48 = vsel %vm595_vm3, %v3833_v46, %v3835_v38  ;;  %v3840_v42 = vrot.slane %v11302_v2, 1 }
 0x497   : > { %12841 = vst [vmem:[#allocation14_spill] sm:$0xff] %v11317_v48  ;;  %v11323_v27 = vsel %vm595_vm3, %v3837_v9, %v3838_v13  ;;  %v3842_v39 = vrot.slane %v11308_v51, 1  ;;  %v3843_v15 = vrot.slane %v11305_v3, 1  ;;  %v11328_v33 = vsel %vm411_vm1, %v3640_v10, %v3699_v31 }
 0x498   : > { %8514 = vmatmul.mubr.msk.f32.gmra.mrb[18].mxu1 %vm671_vm2, %v11317_v48  ;;  %12842 = vst [vmem:[#allocation15_spill] sm:$0xff] %v11323_v27  ;;  %v11331_v20 = vsel %vm411_vm1, %v3642_v12, %v3643_v22  ;;  %v3646_v46 = vrot.slane %v3538_v29, 7  ;;  %v11334_v60 = vsel %vm411_vm1, %v3572_v58, %v3642_v12  ;;  %v12843_v41 = vmax.f32 %v10903_v1, 0.0 }
 0x499   : > { %8516 = vmatprep.mubr.msk.f32.mxu1 %vm671_vm2, %v11323_v27  ;;  %v3541_v38 = vmax.f32 %v11286_v53, 0.0  ;;  %v3542_v9 = vmax.f32 %v3510_v49, 0.0  ;;  %v3574_v48 = vrot.slane %v3539_v61, 1  ;;  %v3701_v31 = vrot.slane %v3538_v29, 5 }
 0x49a   : > { %v11340_v36 = vrot.slane %v12843_v41, 7  ;;  %v11344_v10 = vsel %vm595_vm3, %v3838_v13, %v3840_v42  ;;  %v3845_v16 = vrot.slane %v11328_v33, 1  ;;  %v11355_v12 = vsel %vm595_vm3, %v3842_v39, %v3843_v15 }
 0x49b   : > { %12845 = vst [vmem:[#allocation17_spill] sm:$0xff] %v11344_v10  ;;  %12846 = vst [vmem:[#allocation18_spill] sm:$0xff] %v11355_v12  ;;  %v3847_v53 = vrot.slane %v11334_v60, 1  ;;  %v3848_v29 = vrot.slane %v11331_v20, 1  ;;  %v11360_v13 = vsel %vm411_vm1, %v3643_v22, %v3700_v24  ;;  %v11363_v49 = vsel %vm411_vm1, %v3645_v26, %v3646_v46 }
 0x49c   : > { %12844 = vst [vmem:[#allocation16_spill] sm:$0xff] %v11340_v36  ;;  %v11350_v58 = vsel %vm411_vm1, %v10973_v37, %v11340_v36  ;;  %8517 = vmatmul.mubr.msk.f32.gmra.mrb[20].mxu1 %vm671_vm2, %v11344_v10  ;;  %v3648_v42 = vrot.slane %v3539_v61, 7  ;;  %v3649_v41 = vrot.slane %v3540_v25, 7  ;;  %v11366_v36 = vsel %vm411_vm1, %v3573_v4, %v3645_v26 }
 0x49d   : > { %8519 = vmatprep.mubr.msk.f32.mxu1 %vm671_vm2, %v11355_v12  ;;  %v3575_v39 = vrot.slane %v3541_v38, 1  ;;  %v3702_v1 = vrot.slane %v3540_v25, 5  ;;  %v11371_v10 = vsel %vm595_vm3, %v3843_v15, %v3845_v16  ;;  %v3850_v27 = vrot.slane %v11360_v13, 1 }
 0x49e   : > { %12847 = vst [vmem:[#allocation20_spill] sm:$0xff] %v11371_v10  ;;  %v11377_v24 = vsel %vm595_vm3, %v3847_v53, %v3848_v29  ;;  %v3852_v61 = vrot.slane %v11366_v36, 1  ;;  %v3853_v22 = vrot.slane %v11363_v49, 1  ;;  %v11382_v4 = vsel %vm411_vm1, %v3646_v46, %v3701_v31 }
 0x49f   : > { %12848 = vst [vmem:[#allocation21_spill] sm:$0xff] %v11377_v24  ;;  %v11385_v25 = vsel %vm411_vm1, %v3648_v42, %v3649_v41  ;;  %v3651_v16 = vrot.slane %v3541_v38, 7  ;;  %v3652_v26 = vrot.slane %v3542_v9, 7  ;;  %v11388_v15 = vsel %vm411_vm1, %v3574_v48, %v3648_v42 }
 0x4a0   : > { %8520 = vmatmul.mubr.msk.f32.gmra.mrb[22].mxu1 %vm671_vm2, %v11371_v10  ;;  %v3703_v53 = vrot.slane %v3542_v9, 5  ;;  %v11393_v10 = vsel %vm595_vm3, %v3848_v29, %v3850_v27  ;;  %v3855_v12 = vrot.slane %v11382_v4, 1  ;;  %v11399_v46 = vsel %vm595_vm3, %v3852_v61, %v3853_v22 }
 0x4a1   : > { %8522 = vmatprep.mubr.msk.f32.mxu1 %vm671_vm2, %v11377_v24  ;;  %12849 = vst [vmem:[#allocation24_spill] sm:$0xff] %v11393_v10  ;;  %v3857_v38 = vrot.slane %v11388_v15, 1  ;;  %v3858_v48 = vrot.slane %v11385_v25, 1  ;;  %v11404_v31 = vsel %vm411_vm1, %v3649_v41, %v3702_v1  ;;  %v11407_v9 = vsel %vm411_vm1, %v3651_v16, %v3652_v26 }
 0x4a2   : > { %v11410_v27 = vsel %vm411_vm1, %v3575_v39, %v3651_v16  ;;  %v11415_v29 = vsel %vm595_vm3, %v3853_v22, %v3855_v12  ;;  %v3860_v42 = vrot.slane %v11404_v31, 1  ;;  %v3863_v61 = vrot.slane %v11407_v9, 1 }
 0x4a3   : > { %12850 = vst [vmem:[#allocation28_spill] sm:$0xff] %v11415_v29  ;;  %v11421_v1 = vsel %vm595_vm3, %v3857_v38, %v3858_v48  ;;  %v3862_v41 = vrot.slane %v11410_v27, 1  ;;  %v11426_v39 = vsel %vm411_vm1, %v3652_v26, %v3703_v53  ;;  %v3756_v53 = vld [vmem:[%s12557_s4 + $0xc] sm:$0xf]  ;;  %v4444_v38 = vrot.slane %v11010_v62, 2 }
 0x4a4   : > { %8523 = vmatmul.mubr.msk.f32.gmra.mrb[24].mxu1 %vm671_vm2, %v11393_v10  ;;  %12851 = vst [vmem:[#allocation29_spill] sm:$0xff] %v11421_v1  ;;  %v11431_v12 = vsel %vm595_vm3, %v3858_v48, %v3860_v42  ;;  %v3865_v22 = vrot.slane %v11426_v39, 1  ;;  %v4446_v48 = vrot.slane %v11017_v43, 2  ;;  %v11533_v43 = vld [vmem:[%s12557_s4 + $0x10] sm:$0xf] }
 0x4a5   : > { %8525 = vmatprep.mubr.msk.f32.mxu1 %vm671_vm2, %v11399_v46  ;;  %v11437_v16 = vsel %vm595_vm3, %v3862_v41, %v3863_v61  ;;  %v4448_v41 = vrot.slane %v11023_v23, 2 }
 0x4a6   : > { %v11442_v26 = vsel %vm595_vm3, %v3863_v61, %v3865_v22  ;;  %v4449_v61 = vrot.slane %v11020_v59, 2  ;;  %v11527_v22 = vsel %vm1249_vm4, %v4444_v38, %v4446_v48  ;;  %v4454_v48 = vrot.slane %v11057_v14, 2 }
 0x4a7   : > { %12852 = vst [vmem:[#allocation30_spill] sm:$0xff] %v11442_v26  ;;  %12854 = vst [vmem:[#allocation32_spill] sm:$0xff] %v11527_v22 }
 0x4a8   : > { %8526 = vmatmul.mubr.msk.f32.gmra.mrb[26].mxu1 %vm671_vm2, %v11415_v29 }
 0x4a9   : > { %8528 = vmatprep.mubr.msk.f32.mxu1 %vm671_vm2, %v11421_v1 }
 0x4ac   : > { %8529 = vmatmul.mubr.msk.f32.gmra.mrb[28].mxu1 %vm671_vm2, %v11431_v12 }
 0x4ad   : > { %8531 = vmatprep.mubr.msk.f32.mxu1 %vm671_vm2, %v11437_v16 }
 0x4b0   : > { %8532 = vmatmul.mubr.msk.f32.gmra.mrb[30].mxu1 %vm671_vm2, %v11442_v26  ;;  %v4451_v26 = vrot.slane %v11037_v21, 2 }
 0x4b1   : > { %8536 = vmatprep.mubr.msk.f32.mxu1 %vm671_vm2, %v10999_v45 }
 0x4b2   : > { %v11546_v21 = vsel %vm1249_vm4, %v4449_v61, %v4451_v26  ;;  %v4458_v26 = vrot.slane %v11094_v19, 2 }
 0x4b3   : > { %12855 = vst [vmem:[#allocation33_spill] sm:$0xff] %v11546_v21 }
 0x4b4   : > { %8537 = vmatmul.mubr.msk.f32.vlgmr.msra.gmra.mrb[0].mxu1 %vm671_vm2, %v11010_v62 }
 0x4b5   : > { %8585 = vmatpush3.msk.msra.mxu1 %vm732_vm0, %v11049_v54  ;;  %8539 = vmatprep.mubr.msk.f32.mxu1 %vm671_vm2, %v11023_v23  ;;  %v4443_v54 = vrot.slane %v10999_v45, 2 }
 0x4b6   : > { %8634 = vmatprep.subr.msk.mxu1 %vm732_vm0, %v3756_v53 }
 0x4b7   : > { %v11520_v42 = vsel %vm1249_vm4, %v4443_v54, %v4444_v38  ;;  %v11538_v54 = vsel %vm1249_vm4, %v4448_v41, %v4449_v61  ;;  %v4453_v38 = vrot.slane %v11060_v50, 2  ;;  %v4459_v61 = vrot.slane %v11091_v6, 2 }
 0x4b8   : > { %8540 = vmatmul.mubr.msk.f32.gmra.mrb[2].mxu1 %vm671_vm2, %v11020_v59  ;;  %12853 = vst [vmem:[#allocation31_spill] sm:$0xff] %v11520_v42 }
 0x4b9   : > { %8542 = vmatprep.mubr.msk.f32.mxu1 %vm671_vm2, %v10999_v45  ;;  %v11558_v41 = vsel %vm1249_vm4, %v4453_v38, %v4454_v48  ;;  %v4463_v38 = vrot.slane %v11123_v35, 2 }
 0x4ba   : > { %12856 = vst [vmem:[#allocation34_spill] sm:$0xff] %v11558_v41 }
 0x4bc   : > { %8543 = vmatmul.mubr.msk.f32.gmra.mrb[4].mxu1 %vm671_vm2, %v11010_v62 }
 0x4bd   : > { %8545 = vmatprep.mubr.msk.f32.mxu1 %vm671_vm2, %v11060_v50 }
 0x4c0   : > { %8546 = vmatmul.mubr.msk.f32.gmra.mrb[6].mxu1 %vm671_vm2, %v11057_v14 }
 0x4c1   : > { %8548 = vmatprep.mubr.msk.f32.mxu1 %vm671_vm2, %v11094_v19 }
 0x4c4   : > { %8549 = vmatmul.mubr.msk.f32.gmra.mrb[8].mxu1 %vm671_vm2, %v11091_v6 }
 0x4c5   : > { %8551 = vmatprep.mubr.msk.f32.mxu1 %vm671_vm2, %v11123_v35 }
 0x4c8   : > { %8552 = vmatmul.mubr.msk.f32.gmra.mrb[10].mxu1 %vm671_vm2, %v11120_v17 }
 0x4c9   : > { %8554 = vmatprep.mubr.msk.f32.mxu1 %vm671_vm2, %v11154_v18 }
 0x4cc   : > { %8555 = vmatmul.mubr.msk.f32.gmra.mrb[12].mxu1 %vm671_vm2, %v11151_v44 }
 0x4cd   : > { %8557 = vmatprep.mubr.msk.f32.mxu1 %vm671_vm2, %v11186_v47 }
 0x4d0   : > { %8558 = vmatmul.mubr.msk.f32.gmra.mrb[14].mxu1 %vm671_vm2, %v11183_v52 }
 0x4d1   : > { %8560 = vmatprep.mubr.msk.f32.mxu1 %vm671_vm2, %v11218_v40 }
 0x4d4   : > { %8561 = vmatmul.mubr.msk.f32.gmra.mrb[16].mxu1 %vm671_vm2, %v11215_v28 }
 0x4d5   : > { %8563 = vmatprep.mubr.msk.f32.mxu1 %vm671_vm2, %v11248_v0 }
 0x4d8   : > { %8564 = vmatmul.mubr.msk.f32.gmra.mrb[18].mxu1 %vm671_vm2, %v11245_v56 }
 0x4d9   : > { %8566 = vmatprep.mubr.msk.f32.mxu1 %vm671_vm2, %v11280_v34 }
 0x4dc   : > { %8567 = vmatmul.mubr.msk.f32.gmra.mrb[20].mxu1 %vm671_vm2, %v11277_v57 }
 0x4dd   : > { %8569 = vmatprep.mubr.msk.f32.mxu1 %vm671_vm2, %v11308_v51 }
 0x4e0   : > { %8570 = vmatmul.mubr.msk.f32.gmra.mrb[22].mxu1 %vm671_vm2, %v11305_v3 }
 0x4e1   : > { %8572 = vmatprep.mubr.msk.f32.mxu1 %vm671_vm2, %v11334_v60 }
 0x4e4   : > { %8573 = vmatmul.mubr.msk.f32.gmra.mrb[24].mxu1 %vm671_vm2, %v11331_v20 }
 0x4e5   : > { %8575 = vmatprep.mubr.msk.f32.mxu1 %vm671_vm2, %v11366_v36 }
 0x4e8   : > { %8576 = vmatmul.mubr.msk.f32.gmra.mrb[26].mxu1 %vm671_vm2, %v11363_v49 }
 0x4e9   : > { %8578 = vmatprep.mubr.msk.f32.mxu1 %vm671_vm2, %v11388_v15 }
 0x4ec   : > { %8579 = vmatmul.mubr.msk.f32.gmra.mrb[28].mxu1 %vm671_vm2, %v11385_v25 }
 0x4ed   : > { %8581 = vmatprep.mubr.msk.f32.mxu1 %vm671_vm2, %v11410_v27 }
 0x4f0   : > { %8582 = vmatmul.mubr.msk.f32.gmra.mrb[30].mxu1 %vm671_vm2, %v11407_v9 }
 0x4f1   : > { %8586 = vmatprep.mubr.msk.f32.mxu1 %vm671_vm2, %v11520_v42 }
 0x4f4   : > { %8587 = vmatmul.mubr.msk.f32.vlgmr.msra.gmra.mrb[0].mxu1 %vm671_vm2, %v11527_v22 }
 0x4f5   : > { %8635 = vmatpush3.msk.msra.mxu1 %vm732_vm0, %v3756_v53  ;;  %8589 = vmatprep.mubr.msk.f32.mxu1 %vm671_vm2, %v11538_v54  ;;  %v4456_v53 = vrot.slane %v11088_v30, 2  ;;  %v11571_v30 = vsel %vm1249_vm4, %v4458_v26, %v4459_v61  ;;  %v4469_v26 = vrot.slane %v11151_v44, 2 }
 0x4f6   : > { %8684 = vmatprep.subr.msk.mxu1 %vm732_vm0, %v11533_v43  ;;  %12857 = vst [vmem:[#allocation36_spill] sm:$0xff] %v11571_v30 }
 0x4f8   : > { %8590 = vmatmul.mubr.msk.f32.gmra.mrb[2].mxu1 %vm671_vm2, %v11546_v21  ;;  %v11565_v21 = vsel %vm1249_vm4, %v4454_v48, %v4456_v53  ;;  %v4466_v48 = vrot.slane %v11148_v5, 2  ;;  %v4468_v53 = vrot.slane %v11154_v18, 2 }
 0x4f9   : > { %8592 = vmatprep.mubr.msk.f32.mxu1 %vm671_vm2, %v11520_v42  ;;  %v4461_v42 = vrot.slane %v11117_v32, 2 }
 0x4fa   : > { %v11597_v5 = vsel %vm1249_vm4, %v4468_v53, %v4469_v26  ;;  %v4479_v53 = vrot.slane %v11215_v28, 2 }
 0x4fb   : > { %12859 = vst [vmem:[#allocation39_spill] sm:$0xff] %v11597_v5 }
 0x4fc   : > { %8593 = vmatmul.mubr.msk.f32.gmra.mrb[4].mxu1 %vm671_vm2, %v11527_v22  ;;  %v4464_v22 = vrot.slane %v11120_v17, 2 }
 0x4fd   : > { %8595 = vmatprep.mubr.msk.f32.mxu1 %vm671_vm2, %v11558_v41  ;;  %v11578_v41 = vsel %vm1249_vm4, %v4459_v61, %v4461_v42  ;;  %v4471_v42 = vrot.slane %v11180_v7, 2  ;;  %v4473_v61 = vrot.slane %v11186_v47, 2 }
 0x4fe   : > { %v11584_v32 = vsel %vm1249_vm4, %v4463_v38, %v4464_v22  ;;  %v4474_v38 = vrot.slane %v11183_v52, 2 }
 0x4ff   : > { %12858 = vst [vmem:[#allocation37_spill] sm:$0xff] %v11584_v32 }
 0x500   : > { %8596 = vmatmul.mubr.msk.f32.gmra.mrb[6].mxu1 %vm671_vm2, %v11565_v21  ;;  %v11610_v7 = vsel %vm1249_vm4, %v4473_v61, %v4474_v38  ;;  %v4484_v61 = vrot.slane %v11245_v56, 2 }
 0x501   : > { %8598 = vmatprep.mubr.msk.f32.mxu1 %vm671_vm2, %v11571_v30  ;;  %v11591_v30 = vsel %vm1249_vm4, %v4464_v22, %v4466_v48  ;;  %v4476_v22 = vrot.slane %v11212_v63, 2  ;;  %12860 = vst [vmem:[#allocation40_spill] sm:$0xff] %v11610_v7  ;;  %v4478_v48 = vrot.slane %v11218_v40, 2 }
 0x503   : > { %v11623_v63 = vsel %vm1249_vm4, %v4478_v48, %v4479_v53  ;;  %v4489_v48 = vrot.slane %v11277_v57, 2 }
 0x504   : > { %8599 = vmatmul.mubr.msk.f32.gmra.mrb[8].mxu1 %vm671_vm2, %v11578_v41  ;;  %12861 = vst [vmem:[#allocation41_spill] sm:$0xff] %v11623_v63 }
 0x505   : > { %8601 = vmatprep.mubr.msk.f32.mxu1 %vm671_vm2, %v11584_v32  ;;  %v11604_v32 = vsel %vm1249_vm4, %v4469_v26, %v4471_v42  ;;  %v4481_v26 = vrot.slane %v11242_v11, 2  ;;  %v4483_v42 = vrot.slane %v11248_v0, 2 }
 0x507   : > { %v11636_v11 = vsel %vm1249_vm4, %v4483_v42, %v4484_v61  ;;  %v4494_v42 = vrot.slane %v11305_v3, 2 }
 0x508   : > { %8602 = vmatmul.mubr.msk.f32.gmra.mrb[10].mxu1 %vm671_vm2, %v11591_v30  ;;  %12862 = vst [vmem:[#allocation42_spill] sm:$0xff] %v11636_v11 }
 0x509   : > { %8604 = vmatprep.mubr.msk.f32.mxu1 %vm671_vm2, %v11597_v5  ;;  %v11617_v5 = vsel %vm1249_vm4, %v4474_v38, %v4476_v22  ;;  %v4486_v38 = vrot.slane %v11274_v8, 2  ;;  %v4488_v22 = vrot.slane %v11280_v34, 2 }
 0x50b   : > { %v11649_v8 = vsel %vm1249_vm4, %v4488_v22, %v4489_v48  ;;  %v4499_v22 = vrot.slane %v11331_v20, 2 }
 0x50c   : > { %8605 = vmatmul.mubr.msk.f32.gmra.mrb[12].mxu1 %vm671_vm2, %v11604_v32  ;;  %12863 = vst [vmem:[#allocation43_spill] sm:$0xff] %v11649_v8 }
 0x50d   : > { %8607 = vmatprep.mubr.msk.f32.mxu1 %vm671_vm2, %v11610_v7  ;;  %v11630_v7 = vsel %vm1249_vm4, %v4479_v53, %v4481_v26  ;;  %v4491_v53 = vrot.slane %v11302_v2, 2  ;;  %v4493_v26 = vrot.slane %v11308_v51, 2 }
 0x50f   : > { %v11662_v2 = vsel %vm1249_vm4, %v4493_v26, %v4494_v42  ;;  %v4504_v26 = vrot.slane %v11363_v49, 2 }
 0x510   : > { %8608 = vmatmul.mubr.msk.f32.gmra.mrb[14].mxu1 %vm671_vm2, %v11617_v5  ;;  %12865 = vst [vmem:[#allocation45_spill] sm:$0xff] %v11662_v2 }
 0x511   : > { %8610 = vmatprep.mubr.msk.f32.mxu1 %vm671_vm2, %v11623_v63  ;;  %v11643_v63 = vsel %vm1249_vm4, %v4484_v61, %v4486_v38  ;;  %v4496_v61 = vrot.slane %v11328_v33, 2  ;;  %v4498_v38 = vrot.slane %v11334_v60, 2 }
 0x513   : > { %v11675_v33 = vsel %vm1249_vm4, %v4498_v38, %v4499_v22  ;;  %v4509_v38 = vrot.slane %v11385_v25, 2 }
 0x514   : > { %8611 = vmatmul.mubr.msk.f32.gmra.mrb[16].mxu1 %vm671_vm2, %v11630_v7  ;;  %12866 = vst [vmem:[#allocation46_spill] sm:$0xff] %v11675_v33 }
 0x515   : > { %8613 = vmatprep.mubr.msk.f32.mxu1 %vm671_vm2, %v11636_v11  ;;  %v11656_v11 = vsel %vm1249_vm4, %v4489_v48, %v4491_v53  ;;  %v4501_v48 = vrot.slane %v11360_v13, 2  ;;  %v4503_v53 = vrot.slane %v11366_v36, 2 }
 0x516   : > { %12864 = vst [vmem:[#allocation44_spill] sm:$0xff] %v11656_v11 }
 0x517   : > { %v11688_v13 = vsel %vm1249_vm4, %v4503_v53, %v4504_v26  ;;  %v4514_v53 = vrot.slane %v11407_v9, 2 }
 0x518   : > { %8614 = vmatmul.mubr.msk.f32.gmra.mrb[18].mxu1 %vm671_vm2, %v11643_v63  ;;  %12868 = vst [vmem:[#allocation48_spill] sm:$0xff] %v11688_v13 }
 0x519   : > { %8616 = vmatprep.mubr.msk.f32.mxu1 %vm671_vm2, %v11649_v8  ;;  %v11669_v8 = vsel %vm1249_vm4, %v4494_v42, %v4496_v61  ;;  %v4506_v42 = vrot.slane %v11382_v4, 2  ;;  %v4508_v61 = vrot.slane %v11388_v15, 2 }
 0x51b   : > { %v11701_v4 = vsel %vm1249_vm4, %v4508_v61, %v4509_v38  ;;  %v3759_v61 = vld [vmem:[%s12557_s4 + $0x18] sm:$0xf] }
 0x51c   : > { %8617 = vmatmul.mubr.msk.f32.gmra.mrb[20].mxu1 %vm671_vm2, %v11656_v11  ;;  %12869 = vst [vmem:[#allocation49_spill] sm:$0xff] %v11701_v4 }
 0x51d   : > { %8619 = vmatprep.mubr.msk.f32.mxu1 %vm671_vm2, %v11662_v2  ;;  %v11682_v2 = vsel %vm1249_vm4, %v4499_v22, %v4501_v48  ;;  %v4511_v22 = vrot.slane %v11404_v31, 2  ;;  %v4513_v48 = vrot.slane %v11410_v27, 2 }
 0x51e   : > { %12867 = vst [vmem:[#allocation47_spill] sm:$0xff] %v11682_v2 }
 0x51f   : > { %v11714_v31 = vsel %vm1249_vm4, %v4513_v48, %v4514_v53  ;;  %v12875_v48 = vld [vmem:[#allocation35_spill] sm:$0xff] }
 0x520   : > { %8620 = vmatmul.mubr.msk.f32.gmra.mrb[22].mxu1 %vm671_vm2, %v11669_v8 }
 0x521   : > { %8622 = vmatprep.mubr.msk.f32.mxu1 %vm671_vm2, %v11675_v33  ;;  %v11695_v33 = vsel %vm1249_vm4, %v4504_v26, %v4506_v42  ;;  %v4516_v26 = vrot.slane %v11426_v39, 2  ;;  %v3758_v39 = vld [vmem:[%s12557_s4 + $0x14] sm:$0xf] }
 0x523   : > { %v11719_v42 = vsel %vm1249_vm4, %v4514_v53, %v4516_v26  ;;  %v12876_v53 = vld [vmem:[#allocation38_spill] sm:$0xff]  ;;  %v12877_v26 = vld [vmem:[#allocation3_spill] sm:$0xff] }
 0x524   : > { %8623 = vmatmul.mubr.msk.f32.gmra.mrb[24].mxu1 %vm671_vm2, %v11682_v2 }
 0x525   : > { %8625 = vmatprep.mubr.msk.f32.mxu1 %vm671_vm2, %v11688_v13  ;;  %v11708_v13 = vsel %vm1249_vm4, %v4509_v38, %v4511_v22  ;;  %v12872_v38 = vld [vmem:[#allocation26_spill] sm:$0xff]  ;;  %v12874_v22 = vld [vmem:[#allocation27_spill] sm:$0xff] }
 0x528   : > { %8626 = vmatmul.mubr.msk.f32.gmra.mrb[26].mxu1 %vm671_vm2, %v11695_v33 }
 0x529   : > { %8628 = vmatprep.mubr.msk.f32.mxu1 %vm671_vm2, %v11701_v4 }
 0x52c   : > { %8629 = vmatmul.mubr.msk.f32.gmra.mrb[28].mxu1 %vm671_vm2, %v11708_v13 }
 0x52d   : > { %8631 = vmatprep.mubr.msk.f32.mxu1 %vm671_vm2, %v11714_v31 }
 0x530   : > { %8632 = vmatmul.mubr.msk.f32.gmra.mrb[30].mxu1 %vm671_vm2, %v11719_v42 }
 0x531   : > { %8636 = vmatprep.mubr.msk.f32.mxu1 %vm671_vm2, %v11023_v23 }
 0x534   : > { %8637 = vmatmul.mubr.msk.f32.vlgmr.msra.gmra.mrb[0].mxu1 %vm671_vm2, %v11020_v59  ;;  %v12870_v59 = vmax.f32 %v10898_v55, 0.0  ;;  %v12871_v55 = vld [vmem:[#allocation25_spill] sm:$0xff] }
 0x535   : > { %8685 = vmatpush3.msk.msra.mxu1 %vm732_vm0, %v11533_v43  ;;  %8639 = vmatprep.mubr.msk.f32.mxu1 %vm671_vm2, %v10999_v45 }
 0x536   : > { %8734 = vmatprep.subr.msk.mxu1 %vm732_vm0, %v3758_v39  ;;  %v3576_v23 = vrot.slane %v12870_v59, 1  ;;  %v12878_v59 = vld [vmem:[#allocation4_spill] sm:$0xff] }
 0x538   : > { %8640 = vmatmul.mubr.msk.f32.gmra.mrb[2].mxu1 %vm671_vm2, %v11010_v62  ;;  %v11793_v43 = vsel %vm411_vm1, %v3576_v23, %v10973_v37  ;;  %v12873_v37 = vld [vmem:[#allocation23_spill] sm:$0xff]  ;;  %v12880_v23 = vld [vmem:[#allocation6_spill] sm:$0xff] }
 0x539   : > { %8642 = vmatprep.mubr.msk.f32.mxu1 %vm671_vm2, %v11060_v50 }
 0x53c   : > { %8643 = vmatmul.mubr.msk.f32.gmra.mrb[4].mxu1 %vm671_vm2, %v11057_v14 }
 0x53d   : > { %8645 = vmatprep.mubr.msk.f32.mxu1 %vm671_vm2, %v11094_v19 }
 0x540   : > { %8646 = vmatmul.mubr.msk.f32.gmra.mrb[6].mxu1 %vm671_vm2, %v11091_v6 }
 0x541   : > { %8648 = vmatprep.mubr.msk.f32.mxu1 %vm671_vm2, %v11123_v35 }
 0x544   : > { %8649 = vmatmul.mubr.msk.f32.gmra.mrb[8].mxu1 %vm671_vm2, %v11120_v17 }
 0x545   : > { %8651 = vmatprep.mubr.msk.f32.mxu1 %vm671_vm2, %v11154_v18 }
 0x548   : > { %8652 = vmatmul.mubr.msk.f32.gmra.mrb[10].mxu1 %vm671_vm2, %v11151_v44 }
 0x549   : > { %8654 = vmatprep.mubr.msk.f32.mxu1 %vm671_vm2, %v11186_v47 }
 0x54c   : > { %8655 = vmatmul.mubr.msk.f32.gmra.mrb[12].mxu1 %vm671_vm2, %v11183_v52 }
 0x54d   : > { %8657 = vmatprep.mubr.msk.f32.mxu1 %vm671_vm2, %v11218_v40 }
 0x550   : > { %8658 = vmatmul.mubr.msk.f32.gmra.mrb[14].mxu1 %vm671_vm2, %v11215_v28 }
 0x551   : > { %8660 = vmatprep.mubr.msk.f32.mxu1 %vm671_vm2, %v11248_v0 }
 0x554   : > { %8661 = vmatmul.mubr.msk.f32.gmra.mrb[16].mxu1 %vm671_vm2, %v11245_v56 }
 0x555   : > { %8663 = vmatprep.mubr.msk.f32.mxu1 %vm671_vm2, %v11280_v34 }
 0x558   : > { %8664 = vmatmul.mubr.msk.f32.gmra.mrb[18].mxu1 %vm671_vm2, %v11277_v57 }
 0x559   : > { %8666 = vmatprep.mubr.msk.f32.mxu1 %vm671_vm2, %v11308_v51 }
 0x55c   : > { %8667 = vmatmul.mubr.msk.f32.gmra.mrb[20].mxu1 %vm671_vm2, %v11305_v3 }
 0x55d   : > { %8669 = vmatprep.mubr.msk.f32.mxu1 %vm671_vm2, %v11334_v60 }
 0x560   : > { %8670 = vmatmul.mubr.msk.f32.gmra.mrb[22].mxu1 %vm671_vm2, %v11331_v20 }
 0x561   : > { %8672 = vmatprep.mubr.msk.f32.mxu1 %vm671_vm2, %v11366_v36 }
 0x564   : > { %8673 = vmatmul.mubr.msk.f32.gmra.mrb[24].mxu1 %vm671_vm2, %v11363_v49 }
 0x565   : > { %8675 = vmatprep.mubr.msk.f32.mxu1 %vm671_vm2, %v11388_v15 }
 0x568   : > { %8676 = vmatmul.mubr.msk.f32.gmra.mrb[26].mxu1 %vm671_vm2, %v11385_v25 }
 0x569   : > { %8678 = vmatprep.mubr.msk.f32.mxu1 %vm671_vm2, %v11410_v27 }
 0x56c   : > { %8679 = vmatmul.mubr.msk.f32.gmra.mrb[28].mxu1 %vm671_vm2, %v11407_v9 }
 0x56d   : > { %8681 = vmatprep.mubr.msk.f32.mxu1 %vm671_vm2, %v11793_v43 }
 0x570   : > { %8682 = vmatmul.mubr.msk.f32.gmra.mrb[30].mxu1 %vm671_vm2, %v11350_v58 }
 0x571   : > { %8686 = vmatprep.mubr.msk.f32.mxu1 %vm671_vm2, %v12871_v55  ;;  %v12881_v55 = vld [vmem:[#allocation7_spill] sm:$0xff] }
 0x574   : > { %8687 = vmatmul.mubr.msk.f32.vlgmr.msra.gmra.mrb[0].mxu1 %vm671_vm2, %v12872_v38  ;;  %v12882_v38 = vld [vmem:[#allocation8_spill] sm:$0xff] }
 0x575   : > { %8735 = vmatpush3.msk.msra.mxu1 %vm732_vm0, %v3758_v39  ;;  %8689 = vmatprep.mubr.msk.f32.mxu1 %vm671_vm2, %v12873_v37  ;;  %v12879_v39 = vld [vmem:[#allocation5_spill] sm:$0xff] }
 0x576   : > { %8784 = vmatprep.subr.msk.mxu1 %vm732_vm0, %v3759_v61 }
 0x578   : > { %8690 = vmatmul.mubr.msk.f32.gmra.mrb[2].mxu1 %vm671_vm2, %v12874_v22 }
 0x579   : > { %8692 = vmatprep.mubr.msk.f32.mxu1 %vm671_vm2, %v12875_v48  ;;  %v12883_v48 = vld [vmem:[#allocation9_spill] sm:$0xff] }
 0x57c   : > { %8693 = vmatmul.mubr.msk.f32.gmra.mrb[4].mxu1 %vm671_vm2, %v12876_v53  ;;  %v12884_v53 = vld [vmem:[#allocation10_spill] sm:$0xff] }
 0x57d   : > { %8695 = vmatprep.mubr.msk.f32.mxu1 %vm671_vm2, %v12877_v26  ;;  %v12885_v26 = vld [vmem:[#allocation11_spill] sm:$0xff] }
 0x580   : > { %8696 = vmatmul.mubr.msk.f32.gmra.mrb[6].mxu1 %vm671_vm2, %v12878_v59  ;;  %v12886_v59 = vld [vmem:[#allocation12_spill] sm:$0xff] }
 0x581   : > { %8698 = vmatprep.mubr.msk.f32.mxu1 %vm671_vm2, %v12879_v39  ;;  %v12887_v39 = vld [vmem:[#allocation13_spill] sm:$0xff] }
 0x584   : > { %8699 = vmatmul.mubr.msk.f32.gmra.mrb[8].mxu1 %vm671_vm2, %v12880_v23  ;;  %v12888_v23 = vld [vmem:[#allocation14_spill] sm:$0xff] }
 0x585   : > { %8701 = vmatprep.mubr.msk.f32.mxu1 %vm671_vm2, %v12881_v55  ;;  %v12889_v55 = vld [vmem:[#allocation15_spill] sm:$0xff] }
 0x588   : > { %8702 = vmatmul.mubr.msk.f32.gmra.mrb[10].mxu1 %vm671_vm2, %v12882_v38  ;;  %v12890_v38 = vld [vmem:[#allocation17_spill] sm:$0xff] }
 0x589   : > { %8704 = vmatprep.mubr.msk.f32.mxu1 %vm671_vm2, %v12883_v48  ;;  %v12891_v48 = vld [vmem:[#allocation18_spill] sm:$0xff] }
 0x58c   : > { %8705 = vmatmul.mubr.msk.f32.gmra.mrb[12].mxu1 %vm671_vm2, %v12884_v53  ;;  %v12892_v53 = vld [vmem:[#allocation20_spill] sm:$0xff] }
 0x58d   : > { %8707 = vmatprep.mubr.msk.f32.mxu1 %vm671_vm2, %v12885_v26 }
 0x590   : > { %8708 = vmatmul.mubr.msk.f32.gmra.mrb[14].mxu1 %vm671_vm2, %v12886_v59 }
 0x591   : > { %8710 = vmatprep.mubr.msk.f32.mxu1 %vm671_vm2, %v12887_v39 }
 0x594   : > { %8711 = vmatmul.mubr.msk.f32.gmra.mrb[16].mxu1 %vm671_vm2, %v12888_v23  ;;  %v12893_v23 = vld [vmem:[#allocation22_spill] sm:$0xff] }
 0x595   : > { %8713 = vmatprep.mubr.msk.f32.mxu1 %vm671_vm2, %v12889_v55  ;;  %v12894_v55 = vmax.f32 %v12893_v23, 0.0 }
 0x597   : > { %v3704_v39 = vrot.slane %v12894_v55, 5  ;;  %v12896_v55 = vld [vmem:[#allocation30_spill] sm:$0xff] }
 0x598   : > { %8714 = vmatmul.mubr.msk.f32.gmra.mrb[18].mxu1 %vm671_vm2, %v12890_v38 }
 0x599   : > { %8716 = vmatprep.mubr.msk.f32.mxu1 %vm671_vm2, %v12891_v48  ;;  %v5105_v48 = vrot.slane %v11350_v58, 1 }
 0x59c   : > { %8717 = vmatmul.mubr.msk.f32.gmra.mrb[20].mxu1 %vm671_vm2, %v12892_v53  ;;  %v5104_v53 = vrot.slane %v11793_v43, 1 }
 0x59d   : > { %8719 = vmatprep.mubr.msk.f32.mxu1 %vm671_vm2, %v11377_v24 }
 0x5a0   : > { %8720 = vmatmul.mubr.msk.f32.gmra.mrb[22].mxu1 %vm671_vm2, %v11393_v10  ;;  %v12895_v10 = vld [vmem:[#allocation16_spill] sm:$0xff] }
 0x5a1   : > { %8722 = vmatprep.mubr.msk.f32.mxu1 %vm671_vm2, %v11399_v46  ;;  %v3752_v24 = vsel %vm411_vm1, %v12895_v10, %v3704_v39  ;;  %v3760_v10 = vld [vmem:[%s12557_s4 + $0x1c] sm:$0xf] }
 0x5a2   : > { %v5107_v23 = vrot.slane %v3752_v24, 1  ;;  %v12897_v39 = vld [vmem:[#allocation33_spill] sm:$0xff] }
 0x5a4   : > { %8723 = vmatmul.mubr.msk.f32.gmra.mrb[24].mxu1 %vm671_vm2, %v11415_v29  ;;  %v11871_v29 = vsel %vm595_vm3, %v5104_v53, %v5105_v48  ;;  %v12898_v53 = vld [vmem:[#allocation31_spill] sm:$0xff] }
 0x5a5   : > { %8725 = vmatprep.mubr.msk.f32.mxu1 %vm671_vm2, %v11421_v1  ;;  %v11876_v1 = vsel %vm595_vm3, %v5105_v48, %v5107_v23  ;;  %v12899_v48 = vld [vmem:[#allocation32_spill] sm:$0xff]  ;;  %v12900_v23 = vld [vmem:[#allocation34_spill] sm:$0xff] }
 0x5a8   : > { %8726 = vmatmul.mubr.msk.f32.gmra.mrb[26].mxu1 %vm671_vm2, %v11431_v12 }
 0x5a9   : > { %8728 = vmatprep.mubr.msk.f32.mxu1 %vm671_vm2, %v11437_v16 }
 0x5ac   : > { %8729 = vmatmul.mubr.msk.f32.gmra.mrb[28].mxu1 %vm671_vm2, %v12896_v55 }
 0x5ad   : > { %8731 = vmatprep.mubr.msk.f32.mxu1 %vm671_vm2, %v11871_v29 }
 0x5b0   : > { %8732 = vmatmul.mubr.msk.f32.gmra.mrb[30].mxu1 %vm671_vm2, %v11876_v1 }
 0x5b1   : > { %8736 = vmatprep.mubr.msk.f32.mxu1 %vm671_vm2, %v11538_v54  ;;  %v12901_v54 = vld [vmem:[#allocation36_spill] sm:$0xff] }
 0x5b4   : > { %8737 = vmatmul.mubr.msk.f32.vlgmr.msra.gmra.mrb[0].mxu1 %vm671_vm2, %v12897_v39  ;;  %v12903_v39 = vld [vmem:[#allocation39_spill] sm:$0xff] }
 0x5b5   : > { %8785 = vmatpush3.msk.msra.mxu1 %vm732_vm0, %v3759_v61  ;;  %8739 = vmatprep.mubr.msk.f32.mxu1 %vm671_vm2, %v12898_v53  ;;  %v12902_v61 = vld [vmem:[#allocation37_spill] sm:$0xff] }
 0x5b6   : > { %8834 = vmatprep.subr.msk.mxu1 %vm732_vm0, %v3760_v10 }
 0x5b8   : > { %8740 = vmatmul.mubr.msk.f32.gmra.mrb[2].mxu1 %vm671_vm2, %v12899_v48 }
 0x5b9   : > { %8742 = vmatprep.mubr.msk.f32.mxu1 %vm671_vm2, %v12900_v23  ;;  %v12904_v23 = vld [vmem:[#allocation40_spill] sm:$0xff] }
 0x5bc   : > { %8743 = vmatmul.mubr.msk.f32.gmra.mrb[4].mxu1 %vm671_vm2, %v11565_v21 }
 0x5bd   : > { %8745 = vmatprep.mubr.msk.f32.mxu1 %vm671_vm2, %v12901_v54  ;;  %v12905_v54 = vld [vmem:[#allocation41_spill] sm:$0xff] }
 0x5c0   : > { %8746 = vmatmul.mubr.msk.f32.gmra.mrb[6].mxu1 %vm671_vm2, %v11578_v41 }
 0x5c1   : > { %8748 = vmatprep.mubr.msk.f32.mxu1 %vm671_vm2, %v12902_v61  ;;  %v12906_v61 = vld [vmem:[#allocation42_spill] sm:$0xff] }
 0x5c4   : > { %8749 = vmatmul.mubr.msk.f32.gmra.mrb[8].mxu1 %vm671_vm2, %v11591_v30 }
 0x5c5   : > { %8751 = vmatprep.mubr.msk.f32.mxu1 %vm671_vm2, %v12903_v39  ;;  %v12907_v39 = vld [vmem:[#allocation43_spill] sm:$0xff] }
 0x5c8   : > { %8752 = vmatmul.mubr.msk.f32.gmra.mrb[10].mxu1 %vm671_vm2, %v11604_v32 }
 0x5c9   : > { %8754 = vmatprep.mubr.msk.f32.mxu1 %vm671_vm2, %v12904_v23  ;;  %v12908_v23 = vld [vmem:[#allocation45_spill] sm:$0xff] }
 0x5cc   : > { %8755 = vmatmul.mubr.msk.f32.gmra.mrb[12].mxu1 %vm671_vm2, %v11617_v5 }
 0x5cd   : > { %8757 = vmatprep.mubr.msk.f32.mxu1 %vm671_vm2, %v12905_v54  ;;  %v12909_v54 = vld [vmem:[#allocation46_spill] sm:$0xff] }
 0x5d0   : > { %8758 = vmatmul.mubr.msk.f32.gmra.mrb[14].mxu1 %vm671_vm2, %v11630_v7 }
 0x5d1   : > { %8760 = vmatprep.mubr.msk.f32.mxu1 %vm671_vm2, %v12906_v61  ;;  %v12910_v61 = vld [vmem:[#allocation48_spill] sm:$0xff] }
 0x5d4   : > { %8761 = vmatmul.mubr.msk.f32.gmra.mrb[16].mxu1 %vm671_vm2, %v11643_v63 }
 0x5d5   : > { %8763 = vmatprep.mubr.msk.f32.mxu1 %vm671_vm2, %v12907_v39 }
 0x5d8   : > { %8764 = vmatmul.mubr.msk.f32.gmra.mrb[18].mxu1 %vm671_vm2, %v11656_v11  ;;  %v5374_v11 = vrot.slane %v11350_v58, 2 }
 0x5d9   : > { %8766 = vmatprep.mubr.msk.f32.mxu1 %vm671_vm2, %v12908_v23  ;;  %v5373_v23 = vrot.slane %v11793_v43, 2 }
 0x5dc   : > { %8767 = vmatmul.mubr.msk.f32.gmra.mrb[20].mxu1 %vm671_vm2, %v11669_v8 }
 0x5dd   : > { %8769 = vmatprep.mubr.msk.f32.mxu1 %vm671_vm2, %v12909_v54 }
 0x5e0   : > { %8770 = vmatmul.mubr.msk.f32.gmra.mrb[22].mxu1 %vm671_vm2, %v11682_v2  ;;  %v5376_v2 = vrot.slane %v3752_v24, 2  ;;  %v3761_v24 = vld [vmem:[%s12557_s4 + $0x20] sm:$0xf] }
 0x5e1   : > { %8772 = vmatprep.mubr.msk.f32.mxu1 %vm671_vm2, %v12910_v61  ;;  %v11948_v61 = vsel %vm1249_vm4, %v5373_v23, %v5374_v11 }
 0x5e4   : > { %8773 = vmatmul.mubr.msk.f32.gmra.mrb[24].mxu1 %vm671_vm2, %v11695_v33 }
 0x5e5   : > { %8775 = vmatprep.mubr.msk.f32.mxu1 %vm671_vm2, %v11701_v4  ;;  %v11953_v4 = vsel %vm1249_vm4, %v5374_v11, %v5376_v2 }
 0x5e8   : > { %8776 = vmatmul.mubr.msk.f32.gmra.mrb[26].mxu1 %vm671_vm2, %v11708_v13 }
 0x5e9   : > { %8778 = vmatprep.mubr.msk.f32.mxu1 %vm671_vm2, %v11714_v31 }
 0x5ec   : > { %8779 = vmatmul.mubr.msk.f32.gmra.mrb[28].mxu1 %vm671_vm2, %v11719_v42 }
 0x5ed   : > { %8781 = vmatprep.mubr.msk.f32.mxu1 %vm671_vm2, %v11948_v61 }
 0x5f0   : > { %8782 = vmatmul.mubr.msk.f32.gmra.mrb[30].mxu1 %vm671_vm2, %v11953_v4 }
 0x5f1   : > { %8786 = vmatprep.mubr.msk.f32.mxu1 %vm671_vm2, %v10999_v45  ;;  %v12911_v45 = vld [vmem:[#allocation35_spill] sm:$0xff] }
 0x5f4   : > { %8787 = vmatmul.mubr.msk.f32.vlgmr.msra.gmra.mrb[0].mxu1 %vm671_vm2, %v11010_v62  ;;  %v12912_v62 = vld [vmem:[#allocation38_spill] sm:$0xff] }
 0x5f5   : > { %8835 = vmatpush3.msk.msra.mxu1 %vm732_vm0, %v3760_v10  ;;  %8789 = vmatprep.mubr.msk.f32.mxu1 %vm671_vm2, %v11060_v50  ;;  %v12914_v50 = vld [vmem:[#allocation4_spill] sm:$0xff] }
 0x5f6   : > { %8884 = vmatprep.subr.msk.mxu1 %vm732_vm0, %v3761_v24 }
 0x5f8   : > { %8790 = vmatmul.mubr.msk.f32.gmra.mrb[2].mxu1 %vm671_vm2, %v11057_v14  ;;  %v12913_v14 = vld [vmem:[#allocation3_spill] sm:$0xff] }
 0x5f9   : > { %8792 = vmatprep.mubr.msk.f32.mxu1 %vm671_vm2, %v11094_v19  ;;  %v12916_v19 = vld [vmem:[#allocation6_spill] sm:$0xff] }
 0x5fc   : > { %8793 = vmatmul.mubr.msk.f32.gmra.mrb[4].mxu1 %vm671_vm2, %v11091_v6  ;;  %v12915_v6 = vld [vmem:[#allocation5_spill] sm:$0xff] }
 0x5fd   : > { %8795 = vmatprep.mubr.msk.f32.mxu1 %vm671_vm2, %v11123_v35  ;;  %v12918_v35 = vld [vmem:[#allocation8_spill] sm:$0xff] }
 0x600   : > { %8796 = vmatmul.mubr.msk.f32.gmra.mrb[6].mxu1 %vm671_vm2, %v11120_v17  ;;  %v12917_v17 = vld [vmem:[#allocation7_spill] sm:$0xff] }
 0x601   : > { %8798 = vmatprep.mubr.msk.f32.mxu1 %vm671_vm2, %v11154_v18  ;;  %v12920_v18 = vld [vmem:[#allocation10_spill] sm:$0xff] }
 0x604   : > { %8799 = vmatmul.mubr.msk.f32.gmra.mrb[8].mxu1 %vm671_vm2, %v11151_v44  ;;  %v12919_v44 = vld [vmem:[#allocation9_spill] sm:$0xff] }
 0x605   : > { %8801 = vmatprep.mubr.msk.f32.mxu1 %vm671_vm2, %v11186_v47  ;;  %v12922_v47 = vld [vmem:[#allocation14_spill] sm:$0xff] }
 0x608   : > { %8802 = vmatmul.mubr.msk.f32.gmra.mrb[10].mxu1 %vm671_vm2, %v11183_v52  ;;  %v12921_v52 = vld [vmem:[#allocation13_spill] sm:$0xff] }
 0x609   : > { %8804 = vmatprep.mubr.msk.f32.mxu1 %vm671_vm2, %v11218_v40  ;;  %v12924_v40 = vld [vmem:[#allocation18_spill] sm:$0xff] }
 0x60c   : > { %8805 = vmatmul.mubr.msk.f32.gmra.mrb[12].mxu1 %vm671_vm2, %v11215_v28  ;;  %v12923_v28 = vld [vmem:[#allocation15_spill] sm:$0xff] }
 0x60d   : > { %8807 = vmatprep.mubr.msk.f32.mxu1 %vm671_vm2, %v11248_v0  ;;  %v12926_v0 = vld [vmem:[#allocation21_spill] sm:$0xff] }
 0x610   : > { %8808 = vmatmul.mubr.msk.f32.gmra.mrb[14].mxu1 %vm671_vm2, %v11245_v56  ;;  %v12925_v56 = vld [vmem:[#allocation20_spill] sm:$0xff] }
 0x611   : > { %8810 = vmatprep.mubr.msk.f32.mxu1 %vm671_vm2, %v11280_v34  ;;  %v12928_v34 = vld [vmem:[#allocation28_spill] sm:$0xff] }
 0x614   : > { %8811 = vmatmul.mubr.msk.f32.gmra.mrb[16].mxu1 %vm671_vm2, %v11277_v57  ;;  %v12927_v57 = vld [vmem:[#allocation24_spill] sm:$0xff] }
 0x615   : > { %8813 = vmatprep.mubr.msk.f32.mxu1 %vm671_vm2, %v11308_v51  ;;  %v12929_v51 = vld [vmem:[#allocation29_spill] sm:$0xff] }
 0x618   : > { %8814 = vmatmul.mubr.msk.f32.gmra.mrb[18].mxu1 %vm671_vm2, %v11305_v3  ;;  %v12930_v3 = vld [vmem:[#allocation34_spill] sm:$0xff] }
 0x619   : > { %8816 = vmatprep.mubr.msk.f32.mxu1 %vm671_vm2, %v11334_v60  ;;  %v12932_v60 = vld [vmem:[#allocation37_spill] sm:$0xff] }
 0x61c   : > { %8817 = vmatmul.mubr.msk.f32.gmra.mrb[20].mxu1 %vm671_vm2, %v11331_v20  ;;  %v12931_v20 = vld [vmem:[#allocation36_spill] sm:$0xff] }
 0x61d   : > { %8819 = vmatprep.mubr.msk.f32.mxu1 %vm671_vm2, %v11366_v36  ;;  %v12933_v36 = vld [vmem:[#allocation39_spill] sm:$0xff] }
 0x620   : > { %8820 = vmatmul.mubr.msk.f32.gmra.mrb[22].mxu1 %vm671_vm2, %v11363_v49  ;;  %v12935_v49 = vld [vmem:[#allocation41_spill] sm:$0xff] }
 0x621   : > { %8822 = vmatprep.mubr.msk.f32.mxu1 %vm671_vm2, %v11388_v15  ;;  %v12937_v15 = vld [vmem:[#allocation44_spill] sm:$0xff] }
 0x624   : > { %8823 = vmatmul.mubr.msk.f32.gmra.mrb[24].mxu1 %vm671_vm2, %v11385_v25  ;;  %v12936_v25 = vld [vmem:[#allocation42_spill] sm:$0xff] }
 0x625   : > { %8825 = vmatprep.mubr.msk.f32.mxu1 %vm671_vm2, %v11410_v27 }
 0x628   : > { %8826 = vmatmul.mubr.msk.f32.gmra.mrb[26].mxu1 %vm671_vm2, %v11407_v9 }
 0x629   : > { %8828 = vmatprep.mubr.msk.f32.mxu1 %vm671_vm2, %v11793_v43 }
 0x62c   : > { %8829 = vmatmul.mubr.msk.f32.gmra.mrb[28].mxu1 %vm671_vm2, %v11350_v58  ;;  %v12934_v58 = vld [vmem:[#allocation40_spill] sm:$0xff] }
 0x62d   : > { %8831 = vmatprep.mubr.msk.f32.mxu1 %vm671_vm2, %v11410_v27  ;;  %v12940_v27 = vld [vmem:[#allocation48_spill] sm:$0xff] }
 0x630   : > { %8832 = vmatmul.mubr.msk.f32.gmra.mrb[30].mxu1 %vm671_vm2, %v11407_v9  ;;  %v12939_v9 = vld [vmem:[#allocation47_spill] sm:$0xff] }
 0x631   : > { %8836 = vmatprep.mubr.msk.f32.mxu1 %vm671_vm2, %v12873_v37 }
 0x634   : > { %8837 = vmatmul.mubr.msk.f32.vlgmr.msra.gmra.mrb[0].mxu1 %vm671_vm2, %v12874_v22 }
 0x635   : > { %8885 = vmatpush3.msk.msra.mxu1 %vm732_vm0, %v3761_v24  ;;  %8839 = vmatprep.mubr.msk.f32.mxu1 %vm671_vm2, %v12911_v45 }
 0x638   : > { %8840 = vmatmul.mubr.msk.f32.gmra.mrb[2].mxu1 %vm671_vm2, %v12912_v62 }
 0x639   : > { %8842 = vmatprep.mubr.msk.f32.mxu1 %vm671_vm2, %v12913_v14 }
 0x63c   : > { %8843 = vmatmul.mubr.msk.f32.gmra.mrb[4].mxu1 %vm671_vm2, %v12914_v50 }
 0x63d   : > { %8845 = vmatprep.mubr.msk.f32.mxu1 %vm671_vm2, %v12915_v6 }
 0x640   : > { %8846 = vmatmul.mubr.msk.f32.gmra.mrb[6].mxu1 %vm671_vm2, %v12916_v19 }
 0x641   : > { %8848 = vmatprep.mubr.msk.f32.mxu1 %vm671_vm2, %v12917_v17 }
 0x644   : > { %8849 = vmatmul.mubr.msk.f32.gmra.mrb[8].mxu1 %vm671_vm2, %v12918_v35 }
 0x645   : > { %8851 = vmatprep.mubr.msk.f32.mxu1 %vm671_vm2, %v12919_v44 }
 0x648   : > { %8852 = vmatmul.mubr.msk.f32.gmra.mrb[10].mxu1 %vm671_vm2, %v12920_v18 }
 0x649   : > { %8854 = vmatprep.mubr.msk.f32.mxu1 %vm671_vm2, %v12885_v26 }
 0x64c   : > { %8855 = vmatmul.mubr.msk.f32.gmra.mrb[12].mxu1 %vm671_vm2, %v12886_v59 }
 0x64d   : > { %8857 = vmatprep.mubr.msk.f32.mxu1 %vm671_vm2, %v12921_v52 }
 0x650   : > { %8858 = vmatmul.mubr.msk.f32.gmra.mrb[14].mxu1 %vm671_vm2, %v12922_v47 }
 0x651   : > { %8860 = vmatprep.mubr.msk.f32.mxu1 %vm671_vm2, %v12923_v28 }
 0x654   : > { %8861 = vmatmul.mubr.msk.f32.gmra.mrb[16].mxu1 %vm671_vm2, %v12890_v38 }
 0x655   : > { %8863 = vmatprep.mubr.msk.f32.mxu1 %vm671_vm2, %v12924_v40 }
 0x658   : > { %8864 = vmatmul.mubr.msk.f32.gmra.mrb[18].mxu1 %vm671_vm2, %v12925_v56 }
 0x659   : > { %8866 = vmatprep.mubr.msk.f32.mxu1 %vm671_vm2, %v12926_v0 }
 0x65c   : > { %8867 = vmatmul.mubr.msk.f32.gmra.mrb[20].mxu1 %vm671_vm2, %v12927_v57 }
 0x65d   : > { %8869 = vmatprep.mubr.msk.f32.mxu1 %vm671_vm2, %v11399_v46  ;;  %v12938_v46 = vld [vmem:[#allocation45_spill] sm:$0xff] }
 0x660   : > { %8870 = vmatmul.mubr.msk.f32.gmra.mrb[22].mxu1 %vm671_vm2, %v12928_v34 }
 0x661   : > { %8872 = vmatprep.mubr.msk.f32.mxu1 %vm671_vm2, %v12929_v51 }
 0x664   : > { %8873 = vmatmul.mubr.msk.f32.gmra.mrb[24].mxu1 %vm671_vm2, %v11431_v12 }
 0x665   : > { %8875 = vmatprep.mubr.msk.f32.mxu1 %vm671_vm2, %v11437_v16 }
 0x668   : > { %8876 = vmatmul.mubr.msk.f32.gmra.mrb[26].mxu1 %vm671_vm2, %v12896_v55 }
 0x669   : > { %8878 = vmatprep.mubr.msk.f32.mxu1 %vm671_vm2, %v11871_v29  ;;  %v12941_v29 = vld [vmem:[#allocation49_spill] sm:$0xff] }
 0x66c   : > { %8879 = vmatmul.mubr.msk.f32.gmra.mrb[28].mxu1 %vm671_vm2, %v11876_v1 }
 0x66d   : > { %8881 = vmatprep.mubr.msk.f32.mxu1 %vm671_vm2, %v11437_v16 }
 0x670   : > { %8882 = vmatmul.mubr.msk.f32.gmra.mrb[30].mxu1 %vm671_vm2, %v12896_v55 }
 0x671   : > { %8886 = vmatprep.mubr.msk.f32.mxu1 %vm671_vm2, %v12898_v53 }
 0x674   : > { %8887 = vmatmul.mubr.msk.f32.vlgmr.msra.gmra.mrb[0].mxu1 %vm671_vm2, %v12899_v48 }
 0x675   : > { %8889 = vmatprep.mubr.msk.f32.mxu1 %vm671_vm2, %v12930_v3 }
 0x678   : > { %8890 = vmatmul.mubr.msk.f32.gmra.mrb[2].mxu1 %vm671_vm2, %v11565_v21 }
 0x679   : > { %8892 = vmatprep.mubr.msk.f32.mxu1 %vm671_vm2, %v12931_v20 }
 0x67c   : > { %8893 = vmatmul.mubr.msk.f32.gmra.mrb[4].mxu1 %vm671_vm2, %v11578_v41 }
 0x67d   : > { %8895 = vmatprep.mubr.msk.f32.mxu1 %vm671_vm2, %v12932_v60 }
 0x680   : > { %8896 = vmatmul.mubr.msk.f32.gmra.mrb[6].mxu1 %vm671_vm2, %v11591_v30 }
 0x681   : > { %8898 = vmatprep.mubr.msk.f32.mxu1 %vm671_vm2, %v12933_v36 }
 0x684   : > { %8899 = vmatmul.mubr.msk.f32.gmra.mrb[8].mxu1 %vm671_vm2, %v11604_v32 }
 0x685   : > { %8901 = vmatprep.mubr.msk.f32.mxu1 %vm671_vm2, %v12934_v58 }
 0x688   : > { %8902 = vmatmul.mubr.msk.f32.gmra.mrb[10].mxu1 %vm671_vm2, %v11617_v5 }
 0x689   : > { %8904 = vmatprep.mubr.msk.f32.mxu1 %vm671_vm2, %v12935_v49 }
 0x68c   : > { %8905 = vmatmul.mubr.msk.f32.gmra.mrb[12].mxu1 %vm671_vm2, %v11630_v7 }
 0x68d   : > { %8907 = vmatprep.mubr.msk.f32.mxu1 %vm671_vm2, %v12936_v25 }
 0x690   : > { %8908 = vmatmul.mubr.msk.f32.gmra.mrb[14].mxu1 %vm671_vm2, %v11643_v63 }
 0x691   : > { %8910 = vmatprep.mubr.msk.f32.mxu1 %vm671_vm2, %v12907_v39 }
 0x694   : > { %8911 = vmatmul.mubr.msk.f32.gmra.mrb[16].mxu1 %vm671_vm2, %v12937_v15 }
 0x695   : > { %8913 = vmatprep.mubr.msk.f32.mxu1 %vm671_vm2, %v12938_v46 }
 0x698   : > { %8914 = vmatmul.mubr.msk.f32.gmra.mrb[18].mxu1 %vm671_vm2, %v11669_v8 }
 0x699   : > { %8916 = vmatprep.mubr.msk.f32.mxu1 %vm671_vm2, %v12909_v54 }
 0x69c   : > { %8917 = vmatmul.mubr.msk.f32.gmra.mrb[20].mxu1 %vm671_vm2, %v12939_v9 }
 0x69d   : > { %8919 = vmatprep.mubr.msk.f32.mxu1 %vm671_vm2, %v12940_v27 }
 0x6a0   : > { %8920 = vmatmul.mubr.msk.f32.gmra.mrb[22].mxu1 %vm671_vm2, %v11695_v33 }
 0x6a1   : > { %8922 = vmatprep.mubr.msk.f32.mxu1 %vm671_vm2, %v12941_v29 }
 0x6a4   : > { %8923 = vmatmul.mubr.msk.f32.gmra.mrb[24].mxu1 %vm671_vm2, %v11708_v13 }
 0x6a5   : > { %8925 = vmatprep.mubr.msk.f32.mxu1 %vm671_vm2, %v11714_v31 }
 0x6a8   : > { %8926 = vmatmul.mubr.msk.f32.gmra.mrb[26].mxu1 %vm671_vm2, %v11719_v42 }
 0x6a9   : > { %8928 = vmatprep.mubr.msk.f32.mxu1 %vm671_vm2, %v11948_v61 }
 0x6ac   : > { %8929 = vmatmul.mubr.msk.f32.gmra.mrb[28].mxu1 %vm671_vm2, %v11953_v4 }
 0x6ad   : > { %8931 = vmatprep.mubr.msk.f32.mxu1 %vm671_vm2, %v11714_v31 }
 0x6b0   : > { %8932 = vmatmul.mubr.msk.f32.gmra.mrb[30].mxu1 %vm671_vm2, %v11719_v42 }
 0x747   : > { %v12155_v1 = vpop.f32.mrb[0].mxu1 }
 0x748   : > { %v6423_v12 = vsel %vm671_vm2, %v12155_v1, 0.0  ;;  %v12159_v16 = vpop.f32.mrb[1].mxu1 }
 0x749   : > { %v6422_v21 = vsel %vm671_vm2, %v12159_v16, 0.0 }
 0x74a   : > { %v6424_v41 = vadd.f32 %v6423_v12, %v6422_v21 }
 0x74b   : > { %v12163_v30 = vpop.f32.mrb[2].mxu1 }
 0x74c   : > { %v12165_v32 = vpop.f32.mrb[3].mxu1  ;;  %v6427_v63 = vsel %vm671_vm2, %v12163_v30, 0.0 }
 0x74d   : > { %v6425_v5 = vsel %vm671_vm2, %v12165_v32, 0.0 }
 0x74e   : > { %v6426_v7 = vadd.f32 %v6425_v5, %v6424_v41 }
 0x74f   : > { %v12171_v11 = vpop.f32.mrb[4].mxu1 }
 0x750   : > { %v12173_v8 = vpop.f32.mrb[5].mxu1  ;;  %v6428_v2 = vadd.f32 %v6427_v63, %v6426_v7  ;;  %v6431_v4 = vsel %vm671_vm2, %v12171_v11, 0.0 }
 0x751   : > { %v6429_v33 = vsel %vm671_vm2, %v12173_v8, 0.0 }
 0x752   : > { %v6430_v13 = vadd.f32 %v6429_v33, %v6428_v2 }
 0x753   : > { %v12179_v31 = vpop.f32.mrb[6].mxu1 }
 0x754   : > { %v12181_v42 = vpop.f32.mrb[7].mxu1  ;;  %v6432_v43 = vadd.f32 %v6431_v4, %v6430_v13  ;;  %v6435_v26 = vsel %vm671_vm2, %v12179_v31, 0.0 }
 0x755   : > { %v6433_v37 = vsel %vm671_vm2, %v12181_v42, 0.0 }
 0x756   : > { %v6434_v22 = vadd.f32 %v6433_v37, %v6432_v43 }
 0x757   : > { %v12187_v59 = vpop.f32.mrb[8].mxu1 }
 0x758   : > { %v12189_v38 = vpop.f32.mrb[9].mxu1  ;;  %v6436_v55 = vadd.f32 %v6435_v26, %v6434_v22  ;;  %v6439_v48 = vsel %vm671_vm2, %v12187_v59, 0.0 }
 0x759   : > { %v6437_v10 = vsel %vm671_vm2, %v12189_v38, 0.0 }
 0x75a   : > { %v6438_v53 = vadd.f32 %v6437_v10, %v6436_v55 }
 0x75b   : > { %v12195_v23 = vpop.f32.mrb[10].mxu1 }
 0x75c   : > { %v12197_v54 = vpop.f32.mrb[11].mxu1  ;;  %v6440_v61 = vadd.f32 %v6439_v48, %v6438_v53  ;;  %v6443_v45 = vsel %vm671_vm2, %v12195_v23, 0.0 }
 0x75d   : > { %v6441_v39 = vsel %vm671_vm2, %v12197_v54, 0.0 }
 0x75e   : > { %v6442_v24 = vadd.f32 %v6441_v39, %v6440_v61 }
 0x75f   : > { %v12203_v62 = vpop.f32.mrb[12].mxu1 }
 0x760   : > { %v12205_v14 = vpop.f32.mrb[13].mxu1  ;;  %v6444_v50 = vadd.f32 %v6443_v45, %v6442_v24  ;;  %v6447_v17 = vsel %vm671_vm2, %v12203_v62, 0.0 }
 0x761   : > { %v6445_v6 = vsel %vm671_vm2, %v12205_v14, 0.0 }
 0x762   : > { %v6446_v19 = vadd.f32 %v6445_v6, %v6444_v50 }
 0x763   : > { %v12211_v35 = vpop.f32.mrb[14].mxu1 }
 0x764   : > { %v12213_v44 = vpop.f32.mrb[15].mxu1  ;;  %v6448_v18 = vadd.f32 %v6447_v17, %v6446_v19  ;;  %v6451_v28 = vsel %vm671_vm2, %v12211_v35, 0.0 }
 0x765   : > { %v6449_v52 = vsel %vm671_vm2, %v12213_v44, 0.0 }
 0x766   : > { %v6450_v47 = vadd.f32 %v6449_v52, %v6448_v18 }
 0x767   : > { %v12219_v40 = vpop.f32.mrb[16].mxu1 }
 0x768   : > { %v12221_v56 = vpop.f32.mrb[17].mxu1  ;;  %v6452_v0 = vadd.f32 %v6451_v28, %v6450_v47  ;;  %v6455_v51 = vsel %vm671_vm2, %v12219_v40, 0.0 }
 0x769   : > { %v6453_v57 = vsel %vm671_vm2, %v12221_v56, 0.0 }
 0x76a   : > { %v6454_v34 = vadd.f32 %v6453_v57, %v6452_v0 }
 0x76b   : > { %v12227_v3 = vpop.f32.mrb[18].mxu1 }
 0x76c   : > { %v12229_v20 = vpop.f32.mrb[19].mxu1  ;;  %v6456_v60 = vadd.f32 %v6455_v51, %v6454_v34  ;;  %v6459_v49 = vsel %vm671_vm2, %v12227_v3, 0.0 }
 0x76d   : > { %v6457_v36 = vsel %vm671_vm2, %v12229_v20, 0.0 }
 0x76e   : > { %v6458_v58 = vadd.f32 %v6457_v36, %v6456_v60 }
 0x76f   : > { %v12235_v25 = vpop.f32.mrb[20].mxu1 }
 0x770   : > { %v12237_v15 = vpop.f32.mrb[21].mxu1  ;;  %v6460_v46 = vadd.f32 %v6459_v49, %v6458_v58  ;;  %v6463_v29 = vsel %vm671_vm2, %v12235_v25, 0.0 }
 0x771   : > { %v6461_v9 = vsel %vm671_vm2, %v12237_v15, 0.0 }
 0x772   : > { %v6462_v27 = vadd.f32 %v6461_v9, %v6460_v46 }
 0x773   : > { %v8921_v12 = vpop.f32.mrb[22].mxu1 }
 0x774   : > { %v6341_v21 = vpop.f32.mrb[23].mxu1  ;;  %v6464_v41 = vadd.f32 %v6463_v29, %v6462_v27  ;;  %v6467_v63 = vsel %vm671_vm2, %v8921_v12, 0.0 }
 0x775   : > { %v6465_v5 = vsel %vm671_vm2, %v6341_v21, 0.0 }
 0x776   : > { %v6466_v7 = vadd.f32 %v6465_v5, %v6464_v41 }
 0x777   : > { %v8924_v2 = vpop.f32.mrb[24].mxu1 }
 0x778   : > { %v6351_v33 = vpop.f32.mrb[25].mxu1  ;;  %v6468_v13 = vadd.f32 %v6467_v63, %v6466_v7  ;;  %v6471_v37 = vsel %vm671_vm2, %v8924_v2, 0.0 }
 0x779   : > { %v6469_v4 = vsel %vm671_vm2, %v6351_v33, 0.0 }
 0x77a   : > { %v6470_v43 = vadd.f32 %v6469_v4, %v6468_v13 }
 0x77b   : > { %v8927_v22 = vpop.f32.mrb[26].mxu1 }
 0x77c   : > { %v6361_v26 = vpop.f32.mrb[27].mxu1  ;;  %v6472_v55 = vadd.f32 %v6471_v37, %v6470_v43  ;;  %v6475_v48 = vsel %vm671_vm2, %v8927_v22, 0.0 }
 0x77d   : > { %v6473_v10 = vsel %vm671_vm2, %v6361_v26, 0.0 }
 0x77e   : > { %v6474_v53 = vadd.f32 %v6473_v10, %v6472_v55 }
 0x77f   : > { %v8930_v61 = vpop.f32.mrb[28].mxu1 }
 0x780   : > { %v6371_v39 = vpop.f32.mrb[29].mxu1  ;;  %v6476_v24 = vadd.f32 %v6475_v48, %v6474_v53  ;;  %v6479_v6 = vsel %vm671_vm2, %v8930_v61, 0.0 }
 0x781   : > { %v6477_v45 = vsel %vm671_vm2, %v6371_v39, 0.0 }
 0x782   : > { %v6478_v50 = vadd.f32 %v6477_v45, %v6476_v24 }
 0x783   : > { %v8933_v19 = vpop.f32.mrb[30].mxu1 }
 0x784   : > { %v6381_v17 = vpop.f32.mrb[31].mxu1  ;;  %v6480_v18 = vadd.f32 %v6479_v6, %v6478_v50  ;;  %v6483_v28 = vsel %vm671_vm2, %v8933_v19, 0.0 }
 0x785   : > { %v6481_v52 = vsel %vm671_vm2, %v6381_v17, 0.0 }
 0x786   : > { %v6482_v47 = vadd.f32 %v6481_v52, %v6480_v18 }
 0x788   : > { %v6484_v0 = vadd.f32 %v6483_v28, %v6482_v47 }
 0x78a   : > { %v6485_v57 = vrot.slane %v6484_v0, 4 }
 0x78c   : > { %v6486_v34 = vadd.f32 %v6485_v57, %v6484_v0 }
 0x78e   : > { %v6487_v51 = vrot.slane %v6486_v34, 2 }
 0x790   : > { %v6488_v60 = vadd.f32 %v6487_v51, %v6486_v34 }
 0x792   : > { %v6489_v36 = vrot.slane %v6488_v60, 1 }
 0x794   : > { %v6490_v58 = vadd.f32 %v6489_v36, %v6488_v60 }
 0x796   : > { %v6491_v49 = vmul.f32 0.00390625, %v6490_v58 }
 0x798   : > { %v12254_v46 = vsub.f32 %v12159_v16, %v6491_v49  ;;  %v12257_v9 = vsub.f32 %v12155_v1, %v6491_v49  ;;  %v12260_v27 = vsub.f32 %v12165_v32, %v6491_v49  ;;  %v12263_v29 = vsub.f32 %v12163_v30, %v6491_v49 }
 0x799   : > { %v12266_v41 = vsub.f32 %v12173_v8, %v6491_v49  ;;  %v12269_v5 = vsub.f32 %v12171_v11, %v6491_v49  ;;  %v12272_v7 = vsub.f32 %v12181_v42, %v6491_v49  ;;  %v12275_v16 = vsub.f32 %v12179_v31, %v6491_v49 }
 0x79a   : > { %v12278_v1 = vsub.f32 %v12189_v38, %v6491_v49  ;;  %v12281_v32 = vsub.f32 %v12187_v59, %v6491_v49  ;;  %v12284_v30 = vsub.f32 %v12197_v54, %v6491_v49  ;;  %v12287_v8 = vsub.f32 %v12195_v23, %v6491_v49 }
 0x79b   : > { %v12290_v11 = vsub.f32 %v12205_v14, %v6491_v49  ;;  %v12293_v42 = vsub.f32 %v12203_v62, %v6491_v49  ;;  %v12296_v31 = vsub.f32 %v12213_v44, %v6491_v49  ;;  %v12299_v38 = vsub.f32 %v12211_v35, %v6491_v49 }
 0x79c   : > { %v12302_v59 = vsub.f32 %v12221_v56, %v6491_v49  ;;  %v12305_v54 = vsub.f32 %v12219_v40, %v6491_v49  ;;  %v12308_v23 = vsub.f32 %v12229_v20, %v6491_v49  ;;  %v12311_v14 = vsub.f32 %v12227_v3, %v6491_v49 }
 0x79d   : > { %v12314_v62 = vsub.f32 %v12237_v15, %v6491_v49  ;;  %v12317_v44 = vsub.f32 %v12235_v25, %v6491_v49  ;;  %v12319_v35 = vsub.f32 %v6341_v21, %v6491_v49  ;;  %v12321_v63 = vsub.f32 %v8921_v12, %v6491_v49 }
 0x79e   : > { %v12323_v56 = vsub.f32 %v6351_v33, %v6491_v49  ;;  %v12325_v40 = vsub.f32 %v8924_v2, %v6491_v49  ;;  %v12327_v13 = vsub.f32 %v6361_v26, %v6491_v49  ;;  %v12329_v20 = vsub.f32 %v8927_v22, %v6491_v49 }
 0x79f   : > { %v12331_v3 = vsub.f32 %v6371_v39, %v6491_v49  ;;  %v12333_v4 = vsub.f32 %v8930_v61, %v6491_v49  ;;  %v12335_v15 = vsub.f32 %v6381_v17, %v6491_v49  ;;  %v12337_v25 = vsub.f32 %v8933_v19, %v6491_v49 }
 0x7a0   : > { %v6524_v12 = vmul.f32 %v12254_v46, %v12254_v46  ;;  %v6525_v21 = vmul.f32 %v12257_v9, %v12257_v9  ;;  %v6526_v2 = vmul.f32 %v12260_v27, %v12260_v27  ;;  %v6527_v33 = vmul.f32 %v12263_v29, %v12263_v29 }
 0x7a1   : > { %v6528_v26 = vmul.f32 %v12266_v41, %v12266_v41  ;;  %v6529_v53 = vmul.f32 %v12269_v5, %v12269_v5  ;;  %v6530_v39 = vmul.f32 %v12272_v7, %v12272_v7  ;;  %v6531_v50 = vmul.f32 %v12275_v16, %v12275_v16 }
 0x7a2   : > { %v6556_v43 = vsel %vm671_vm2, %v6524_v12, 0.0  ;;  %v6557_v37 = vsel %vm671_vm2, %v6525_v21, 0.0  ;;  %v6559_v55 = vsel %vm671_vm2, %v6526_v2, 0.0  ;;  %v6561_v48 = vsel %vm671_vm2, %v6527_v33, 0.0 }
 0x7a3   : > { %v6558_v22 = vadd.f32 %v6557_v37, %v6556_v43  ;;  %v6563_v24 = vsel %vm671_vm2, %v6528_v26, 0.0  ;;  %v6565_v6 = vsel %vm671_vm2, %v6529_v53, 0.0  ;;  %v6532_v17 = vmul.f32 %v12278_v1, %v12278_v1 }
 0x7a4   : > { %v6567_v18 = vsel %vm671_vm2, %v6530_v39, 0.0  ;;  %v6533_v47 = vmul.f32 %v12281_v32, %v12281_v32  ;;  %v6569_v28 = vsel %vm671_vm2, %v6531_v50, 0.0  ;;  %v6534_v57 = vmul.f32 %v12284_v30, %v12284_v30 }
 0x7a5   : > { %v6560_v10 = vadd.f32 %v6559_v55, %v6558_v22  ;;  %v6571_v34 = vsel %vm671_vm2, %v6532_v17, 0.0  ;;  %v6535_v60 = vmul.f32 %v12287_v8, %v12287_v8  ;;  %v6536_v49 = vmul.f32 %v12290_v11, %v12290_v11 }
 0x7a6   : > { %v6573_v36 = vsel %vm671_vm2, %v6533_v47, 0.0  ;;  %v6575_v12 = vsel %vm671_vm2, %v6534_v57, 0.0  ;;  %v6537_v2 = vmul.f32 %v12293_v42, %v12293_v42  ;;  %v6538_v37 = vmul.f32 %v12296_v31, %v12296_v31 }
 0x7a7   : > { %v6562_v61 = vadd.f32 %v6561_v48, %v6560_v10  ;;  %v6577_v33 = vsel %vm671_vm2, %v6535_v60, 0.0  ;;  %v6579_v22 = vsel %vm671_vm2, %v6536_v49, 0.0  ;;  %v6539_v55 = vmul.f32 %v12299_v38, %v12299_v38 }
 0x7a8   : > { %v6581_v10 = vsel %vm671_vm2, %v6537_v2, 0.0  ;;  %v6540_v48 = vmul.f32 %v12302_v59, %v12302_v59 }
 0x7a9   : > { %v6564_v45 = vadd.f32 %v6563_v24, %v6562_v61  ;;  %v6583_v61 = vsel %vm671_vm2, %v6538_v37, 0.0  ;;  %v6541_v24 = vmul.f32 %v12305_v54, %v12305_v54 }
 0x7ab   : > { %v6566_v19 = vadd.f32 %v6565_v6, %v6564_v45  ;;  %v6585_v45 = vsel %vm671_vm2, %v6539_v55, 0.0  ;;  %v6542_v6 = vmul.f32 %v12308_v23, %v12308_v23 }
 0x7ad   : > { %v6568_v52 = vadd.f32 %v6567_v18, %v6566_v19  ;;  %v6587_v19 = vsel %vm671_vm2, %v6540_v48, 0.0  ;;  %v6543_v18 = vmul.f32 %v12311_v14, %v12311_v14 }
 0x7af   : > { %v6570_v0 = vadd.f32 %v6569_v28, %v6568_v52  ;;  %v6589_v52 = vsel %vm671_vm2, %v6541_v24, 0.0  ;;  %v6544_v28 = vmul.f32 %v12314_v62, %v12314_v62 }
 0x7b1   : > { %v6572_v51 = vadd.f32 %v6571_v34, %v6570_v0  ;;  %v6591_v0 = vsel %vm671_vm2, %v6542_v6, 0.0  ;;  %v6545_v34 = vmul.f32 %v12317_v44, %v12317_v44 }
 0x7b3   : > { %v6574_v58 = vadd.f32 %v6573_v36, %v6572_v51  ;;  %v6593_v51 = vsel %vm671_vm2, %v6543_v18, 0.0  ;;  %v6546_v36 = vmul.f32 %v12319_v35, %v12319_v35 }
 0x7b5   : > { %v6576_v21 = vadd.f32 %v6575_v12, %v6574_v58  ;;  %v6595_v58 = vsel %vm671_vm2, %v6544_v28, 0.0  ;;  %v6547_v12 = vmul.f32 %v12321_v63, %v12321_v63 }
 0x7b7   : > { %v6578_v43 = vadd.f32 %v6577_v33, %v6576_v21  ;;  %v6597_v21 = vsel %vm671_vm2, %v6545_v34, 0.0  ;;  %v6548_v33 = vmul.f32 %v12323_v56, %v12323_v56 }
 0x7b9   : > { %v6580_v26 = vadd.f32 %v6579_v22, %v6578_v43  ;;  %v6599_v43 = vsel %vm671_vm2, %v6546_v36, 0.0  ;;  %v6549_v22 = vmul.f32 %v12325_v40, %v12325_v40 }
 0x7bb   : > { %v6582_v53 = vadd.f32 %v6581_v10, %v6580_v26  ;;  %v6601_v26 = vsel %vm671_vm2, %v6547_v12, 0.0  ;;  %v6550_v10 = vmul.f32 %v12327_v13, %v12327_v13 }
 0x7bd   : > { %v6584_v39 = vadd.f32 %v6583_v61, %v6582_v53  ;;  %v6603_v53 = vsel %vm671_vm2, %v6548_v33, 0.0  ;;  %v6551_v61 = vmul.f32 %v12329_v20, %v12329_v20 }
 0x7bf   : > { %v6586_v50 = vadd.f32 %v6585_v45, %v6584_v39  ;;  %v6605_v39 = vsel %vm671_vm2, %v6549_v22, 0.0  ;;  %v6552_v45 = vmul.f32 %v12331_v3, %v12331_v3 }
 0x7c1   : > { %v6588_v17 = vadd.f32 %v6587_v19, %v6586_v50  ;;  %v6607_v50 = vsel %vm671_vm2, %v6550_v10, 0.0  ;;  %v6553_v19 = vmul.f32 %v12333_v4, %v12333_v4 }
 0x7c3   : > { %v6590_v47 = vadd.f32 %v6589_v52, %v6588_v17  ;;  %v6609_v17 = vsel %vm671_vm2, %v6551_v61, 0.0  ;;  %v6554_v52 = vmul.f32 %v12335_v15, %v12335_v15 }
 0x7c5   : > { %v6592_v57 = vadd.f32 %v6591_v0, %v6590_v47  ;;  %v6611_v47 = vsel %vm671_vm2, %v6552_v45, 0.0  ;;  %v6555_v0 = vmul.f32 %v12337_v25, %v12337_v25 }
 0x7c7   : > { %v6594_v60 = vadd.f32 %v6593_v51, %v6592_v57  ;;  %v6613_v57 = vsel %vm671_vm2, %v6553_v19, 0.0  ;;  %v6615_v51 = vsel %vm671_vm2, %v6554_v52, 0.0  ;;  %v6617_v36 = vsel %vm671_vm2, %v6555_v0, 0.0 }
 0x7c9   : > { %v6596_v49 = vadd.f32 %v6595_v58, %v6594_v60 }
 0x7cb   : > { %v6598_v2 = vadd.f32 %v6597_v21, %v6596_v49 }
 0x7cd   : > { %v6600_v37 = vadd.f32 %v6599_v43, %v6598_v2 }
 0x7cf   : > { %v6602_v55 = vadd.f32 %v6601_v26, %v6600_v37  ;;  %v6628_v26 = vld [vmem:[%s12558_s5] sm:$0x1] }
 0x7d1   : > { %v6604_v48 = vadd.f32 %v6603_v53, %v6602_v55  ;;  %v12942_v53 = vld [vmem:[#allocation19_spill] sm:$0xff] }
 0x7d3   : > { %v6606_v24 = vadd.f32 %v6605_v39, %v6604_v48  ;;  %v12943_v48 = vsub.s32 0, %v12942_v53  ;;  %v12445_v39 = vld [vmem:[%s12559_s6] ss:$0 sm:$0xff] }
 0x7d5   : > { %v6608_v6 = vadd.f32 %v6607_v50, %v6606_v24 }
 0x7d7   : > { %v6610_v18 = vadd.f32 %v6609_v17, %v6608_v6 }
 0x7d9   : > { %v6612_v28 = vadd.f32 %v6611_v47, %v6610_v18 }
 0x7db   : > { %v6614_v34 = vadd.f32 %v6613_v57, %v6612_v28 }
 0x7dd   : > { %v6616_v60 = vadd.f32 %v6615_v51, %v6614_v34 }
 0x7df   : > { %v6618_v58 = vadd.f32 %v6617_v36, %v6616_v60 }
 0x7e1   : > { %v6619_v49 = vrot.slane %v6618_v58, 4 }
 0x7e3   : > { %v6620_v12 = vadd.f32 %v6619_v49, %v6618_v58 }
 0x7e5   : > { %v6621_v21 = vrot.slane %v6620_v12, 2 }
 0x7e7   : > { %v6622_v2 = vadd.f32 %v6621_v21, %v6620_v12 }
 0x7e9   : > { %v6623_v33 = vrot.slane %v6622_v2, 1 }
 0x7eb   : > { %v6624_v43 = vadd.f32 %v6623_v33, %v6622_v2 }
 0x7ed   : > { %v6625_v37 = vmul.f32 0.00390625, %v6624_v43 }
 0x7ef   : > { %v6626_v22 = vadd.f32 1e-05, %v6625_v37 }
 0x7f1   : > { %9458 = vrsqrt.f32 %v6626_v22 }
 0x7fb   : > { %v9459_v55 = vpop.eup %9458 }
 0x7fc   : > { %v6629_v10 = vmul.f32 %v9459_v55, %v6628_v26 }
 0x7fe   : > { %v12440_v61 = vrot.slane %v6629_v10, %v12943_v48 }
 0x800   : > { %v6634_v24 = vmul.f32 %v12440_v61, %v12254_v46  ;;  %v6635_v50 = vmul.f32 %v12440_v61, %v12257_v9  ;;  %v6664_v6 = vmul.f32 %v12440_v61, %v12335_v15  ;;  %v6651_v19 = vmul.f32 %v12440_v61, %v12305_v54 }
 0x801   : > { %v6652_v17 = vmul.f32 %v12440_v61, %v12308_v23  ;;  %v6636_v18 = vmul.f32 %v12440_v61, %v12260_v27  ;;  %v6653_v46 = vmul.f32 %v12440_v61, %v12311_v14  ;;  %v6654_v52 = vmul.f32 %v12440_v61, %v12314_v62 }
 0x802   : > { %v6673_v45 = vadd.f32 %v12445_v39, %v6634_v24  ;;  %v6655_v9 = vmul.f32 %v12440_v61, %v12317_v44  ;;  %v6656_v15 = vmul.f32 %v12440_v61, %v12319_v35  ;;  %v6657_v54 = vmul.f32 %v12440_v61, %v12321_v63 }
 0x803   : > { %v6658_v23 = vmul.f32 %v12440_v61, %v12323_v56  ;;  %v6659_v27 = vmul.f32 %v12440_v61, %v12325_v40  ;;  %v6674_v14 = vadd.f32 %v12445_v39, %v6635_v50  ;;  %v6660_v62 = vmul.f32 %v12440_v61, %v12327_v13 }
 0x804   : > { %6705 = vxpose.xlu1.b32.start [1/16] (narrow) %v6673_v45, 8  ;;  %v6661_v44 = vmul.f32 %v12440_v61, %v12329_v20  ;;  %v6662_v35 = vmul.f32 %v12440_v61, %v12331_v3  ;;  %v6663_v63 = vmul.f32 %v12440_v61, %v12333_v4  ;;  %v6665_v56 = vmul.f32 %v12440_v61, %v12337_v25 }
 0x805   : > { %v6675_v40 = vadd.f32 %v12445_v39, %v6636_v18  ;;  %v6637_v47 = vmul.f32 %v12440_v61, %v12263_v29  ;;  %v6650_v13 = vmul.f32 %v12440_v61, %v12302_v59  ;;  %v6690_v20 = vadd.f32 %v12445_v39, %v6651_v19 }
 0x806   : > { %v6691_v28 = vadd.f32 %v12445_v39, %v6652_v17  ;;  %v6692_v3 = vadd.f32 %v12445_v39, %v6653_v46  ;;  %v6693_v4 = vadd.f32 %v12445_v39, %v6654_v52  ;;  %v6694_v25 = vadd.f32 %v12445_v39, %v6655_v9 }
 0x807   : > { %v6689_v0 = vadd.f32 %v12445_v39, %v6650_v13  ;;  %v6695_v57 = vadd.f32 %v12445_v39, %v6656_v15  ;;  %v6696_v34 = vadd.f32 %v12445_v39, %v6657_v54  ;;  %v6697_v29 = vadd.f32 %v12445_v39, %v6658_v23 }
 0x808   : > { %6706 = vxpose.xlu1.b32.cont [2/16] (narrow) %v6674_v14, 8  ;;  %v6698_v59 = vadd.f32 %v12445_v39, %v6659_v27  ;;  %v6699_v51 = vadd.f32 %v12445_v39, %v6660_v62  ;;  %v6700_v60 = vadd.f32 %v12445_v39, %v6661_v44  ;;  %v6701_v36 = vadd.f32 %v12445_v39, %v6662_v35 }
 0x809   : > { %v6702_v58 = vadd.f32 %v12445_v39, %v6663_v63  ;;  %v6703_v49 = vadd.f32 %v12445_v39, %v6664_v6  ;;  %v6704_v12 = vadd.f32 %v12445_v39, %v6665_v56  ;;  %v6676_v21 = vadd.f32 %v12445_v39, %v6637_v47 }
 0x80a   : > { %v6638_v2 = vmul.f32 %v12440_v61, %v12266_v41  ;;  %v6639_v43 = vmul.f32 %v12440_v61, %v12269_v5  ;;  %v6640_v22 = vmul.f32 %v12440_v61, %v12272_v7  ;;  %v6641_v55 = vmul.f32 %v12440_v61, %v12275_v16 }
 0x80b   : > { %v6642_v10 = vmul.f32 %v12440_v61, %v12278_v1  ;;  %v6643_v53 = vmul.f32 %v12440_v61, %v12281_v32  ;;  %v6644_v48 = vmul.f32 %v12440_v61, %v12284_v30  ;;  %v6645_v24 = vmul.f32 %v12440_v61, %v12287_v8 }
 0x80c   : > { %6707 = vxpose.xlu1.b32.cont [3/16] (narrow) %v6675_v40, 8  ;;  %v6677_v33 = vadd.f32 %v12445_v39, %v6638_v2  ;;  %v6678_v37 = vadd.f32 %v12445_v39, %v6639_v43  ;;  %v6679_v26 = vadd.f32 %v12445_v39, %v6640_v22  ;;  %v6680_v41 = vadd.f32 %v12445_v39, %v6641_v55 }
 0x80d   : > { %v6681_v5 = vadd.f32 %v12445_v39, %v6642_v10  ;;  %v6682_v7 = vadd.f32 %v12445_v39, %v6643_v53  ;;  %v6683_v16 = vadd.f32 %v12445_v39, %v6644_v48  ;;  %v6684_v1 = vadd.f32 %v12445_v39, %v6645_v24 }
 0x80e   : > { %v6646_v45 = vmul.f32 %v12440_v61, %v12290_v11  ;;  %v6647_v50 = vmul.f32 %v12440_v61, %v12293_v42  ;;  %v6648_v6 = vmul.f32 %v12440_v61, %v12296_v31  ;;  %v6649_v19 = vmul.f32 %v12440_v61, %v12299_v38  ;;  %v9460_v38 = vld [vmem:[%s9525_s29] sm:$0xff] }
 0x810   : > { %6708 = vxpose.xlu1.b32.cont [4/16] (narrow) %v6676_v21, 8  ;;  %v6685_v32 = vadd.f32 %v12445_v39, %v6646_v45  ;;  %v6686_v30 = vadd.f32 %v12445_v39, %v6647_v50  ;;  %v6687_v8 = vadd.f32 %v12445_v39, %v6648_v6  ;;  %v6688_v11 = vadd.f32 %v12445_v39, %v6649_v19  ;;  %v12944_v39 = vld [vmem:[#allocation2_spill] sm:$0xff] }
 0x814   : > { %6709 = vxpose.xlu1.b32.cont [5/16] (narrow) %v6677_v33, 8 }
 0x818   : > { %6710 = vxpose.xlu1.b32.cont [6/16] (narrow) %v6678_v37, 8 }
 0x81c   : > { %6711 = vxpose.xlu1.b32.cont [7/16] (narrow) %v6679_v26, 8 }
 0x820   : > { %6712 = vxpose.xlu1.b32.cont [8/16] (narrow) %v6680_v41, 8 }
 0x824   : > { %6713 = vxpose.xlu1.b32.cont [9/16] (narrow) %v6681_v5, 8 }
 0x828   : > { %6714 = vxpose.xlu1.b32.cont [10/16] (narrow) %v6682_v7, 8 }
 0x82c   : > { %6715 = vxpose.xlu1.b32.cont [11/16] (narrow) %v6683_v16, 8 }
 0x830   : > { %6716 = vxpose.xlu1.b32.cont [12/16] (narrow) %v6684_v1, 8 }
 0x834   : > { %6717 = vxpose.xlu1.b32.cont [13/16] (narrow) %v6685_v32, 8 }
 0x838   : > { %6718 = vxpose.xlu1.b32.cont [14/16] (narrow) %v6686_v30, 8 }
 0x83c   : > { %6719 = vxpose.xlu1.b32.cont [15/16] (narrow) %v6687_v8, 8 }
 0x840   : > { %6720 = vxpose.xlu1.b32.end [16/16] (narrow) %v6688_v11, 8 }
 0x844   : > { %6737 = vxpose.xlu1.b32.start [1/16] (narrow) %v6689_v0, 8 }
 0x848   : > { %6738 = vxpose.xlu1.b32.cont [2/16] (narrow) %v6690_v20, 8 }
 0x84c   : > { %6739 = vxpose.xlu1.b32.cont [3/16] (narrow) %v6691_v28, 8 }
 0x850   : > { %6740 = vxpose.xlu1.b32.cont [4/16] (narrow) %v6692_v3, 8 }
 0x854   : > { %6741 = vxpose.xlu1.b32.cont [5/16] (narrow) %v6693_v4, 8 }
 0x858   : > { %6742 = vxpose.xlu1.b32.cont [6/16] (narrow) %v6694_v25, 8 }
 0x85c   : > { %6743 = vxpose.xlu1.b32.cont [7/16] (narrow) %v6695_v57, 8 }
 0x860   : > { %6744 = vxpose.xlu1.b32.cont [8/16] (narrow) %v6696_v34, 8 }
 0x864   : > { %6745 = vxpose.xlu1.b32.cont [9/16] (narrow) %v6697_v29, 8 }
 0x868   : > { %6746 = vxpose.xlu1.b32.cont [10/16] (narrow) %v6698_v59, 8 }
 0x86c   : > { %6747 = vxpose.xlu1.b32.cont [11/16] (narrow) %v6699_v51, 8 }
 0x870   : > { %6748 = vxpose.xlu1.b32.cont [12/16] (narrow) %v6700_v60, 8 }
 0x874   : > { %6749 = vxpose.xlu1.b32.cont [13/16] (narrow) %v6701_v36, 8 }
 0x878   : > { %6750 = vxpose.xlu1.b32.cont [14/16] (narrow) %v6702_v58, 8 }
 0x87c   : > { %6751 = vxpose.xlu1.b32.cont [15/16] (narrow) %v6703_v49, 8 }
 0x880   : > { %6752 = vxpose.xlu1.b32.end [16/16] (narrow) %v6704_v12, 8 }
 0x884   : > { %v6721_v42 = vpop.trf.xlu1 }
 0x885   : > { %v6769_v61 = vadd.f32 %v9460_v38, %v6721_v42 }
 0x8c4   : > { %v6753_v31 = vpop.trf.xlu1 }
 0x8c5   : > { %v6770_v17 = vadd.f32 %v6753_v31, %v12944_v39 }
 0x8c7   : > { %v6773_v18 = vcombine.low %v6769_v61, %v6770_v17 }
 0x8c9   : > { %6775 = vst [vmem:[%s278_s15] sm:$0xff] %v6773_v18 }
 0x8ca PF: > { %s17_s24 = sadd.s32 1, %s9467_s24  }
 0x8cb   : > { %p14_p4 = scmp.ge.s32.totalorder %s17_s24, 4  }
 0x8cd   :  { %16 = sbr.rel (!%p14_p4) target bundleno = 1 (0x1), region = 78 }

</bundles_post_ra>
